<compile_context>
chip_gen: v5e
topology: v5e:2x2
jax: 0.10.0
libtpu: 0.0.40
codegen_flags: <defaults>
</compile_context>

<pallas_src>
import jax
import jax.numpy as jnp
from jax.experimental import pallas as pl
from jax.experimental.pallas import tpu as pltpu

NUM_HEADS = 4


def unity_kernel(x_ref, w_in_ref, b_in_ref,
                 w_qkv_ref, b_qkv_ref, w_ao_ref, b_ao_ref,
                 w_ih1_ref, w_hh1_ref, b1_ref,
                 w_ih2_ref, w_hh2_ref, b2_ref,
                 w_proj_ref, b_proj_ref,
                 out_ref):
    f32 = jnp.float32
    x = x_ref[...]                                 # (BB, S, Din)
    BB, S, Din = x.shape
    H = w_in_ref.shape[1]
    hd = H // NUM_HEADS

    # ---- input_transform: one (BB*S, Din) @ (Din, H) matmul ----
    x2 = x.reshape(BB * S, Din)
    h = jnp.dot(x2, w_in_ref[...], preferred_element_type=f32) + b_in_ref[...]

    # ---- MultiheadAttention (self-attention, 4 heads) ----
    # Fused qkv projection; the 1/sqrt(hd) scale is already folded into the q
    # columns of w_qkv/b_qkv on the host.
    qkv = jnp.dot(h, w_qkv_ref[...], preferred_element_type=f32) + b_qkv_ref[...]
    qkv3 = qkv.reshape(BB, S, 3 * H)               # leading-dim split, rows stay (b, s)

    w_ao = w_ao_ref[...]
    # Start the out-projection accumulator with its bias (hoisted broadcast).
    attended = jnp.broadcast_to(b_ao_ref[...], (BB * S, H))

    # Per-(batch, head) attention: heads unrolled (static 4), batch is a leading
    # batch dim of a batched dot_general. No masks, no (R,R) temporaries, no
    # sublane stack/un-stack of activations.
    for n in range(NUM_HEADS):
        q_n = qkv3[:, :, n * hd:(n + 1) * hd]                  # (BB, S, hd)
        k_n = qkv3[:, :, H + n * hd:H + (n + 1) * hd]
        v_n = qkv3[:, :, 2 * H + n * hd:2 * H + (n + 1) * hd]

        s_n = jnp.einsum('bqd,bkd->bqk', q_n, k_n,
                         preferred_element_type=f32)           # (BB, S, S)
        m_n = jnp.max(s_n, axis=-1, keepdims=True)
        e_n = jnp.exp(s_n - m_n)
        p_n = e_n * pl.reciprocal(jnp.sum(e_n, axis=-1, keepdims=True), approx=False)
        a_n = jnp.einsum('bqk,bkd->bqd', p_n, v_n,
                         preferred_element_type=f32)           # (BB, S, hd)

        # Fold this head straight through its rows of the out-projection weight:
        # equivalent to concat-over-heads @ w_ao, without any concat relayout.
        attended = attended + jnp.dot(a_n.reshape(BB * S, hd),
                                      w_ao[n * hd:(n + 1) * hd, :],
                                      preferred_element_type=f32)

    # ---- 2-layer LSTM (gate order i, f, g, o; zero initial state) ----
    # Layer-1 input gates for the whole sequence in one matmul.
    gx1 = (jnp.dot(attended, w_ih1_ref[...], preferred_element_type=f32)
           + b1_ref[...]).reshape(BB, S, 4 * H)

    w_hh1 = w_hh1_ref[...]
    w_ih2 = w_ih2_ref[...]
    w_hh2 = w_hh2_ref[...]
    b2 = jnp.broadcast_to(b2_ref[...], (BB, 4 * H))            # hoisted out of the loop

    h1 = jnp.zeros((BB, H), f32)
    c1 = jnp.zeros((BB, H), f32)
    h2 = jnp.zeros((BB, H), f32)
    c2 = jnp.zeros((BB, H), f32)

    def gates(g):
        i_g = jax.nn.sigmoid(g[:, 0 * H:1 * H])
        f_g = jax.nn.sigmoid(g[:, 1 * H:2 * H])
        g_g = jnp.tanh(g[:, 2 * H:3 * H])
        o_g = jax.nn.sigmoid(g[:, 3 * H:4 * H])
        return i_g, f_g, g_g, o_g

    # S is small & static -> Python unroll; only (h, c) state is carried.
    # gx1[:, t, :] is a static-index sublane gather that depends only on gx1, so it
    # overlaps the serial recurrence matmul chain.
    # TODO(synk): for large S switch to lax.fori_loop(..., unroll=True) to bound live ranges.
    for t in range(S):
        g1 = gx1[:, t, :] + jnp.dot(h1, w_hh1, preferred_element_type=f32)
        i1, f1, gg1, o1 = gates(g1)
        c1 = f1 * c1 + i1 * gg1
        h1 = o1 * jnp.tanh(c1)

        g2 = (jnp.dot(h1, w_ih2, preferred_element_type=f32)
              + jnp.dot(h2, w_hh2, preferred_element_type=f32) + b2)
        i2, f2, gg2, o2 = gates(g2)
        c2 = f2 * c2 + i2 * gg2
        h2 = o2 * jnp.tanh(c2)

    # ---- unity_projector on last timestep + sigmoid ----
    proj = jnp.dot(h2, w_proj_ref[...], preferred_element_type=f32) + b_proj_ref[...]
    out_ref[...] = jax.nn.sigmoid(proj)


def _choose_batch_block(B):
    """Rows of the batch handled per grid step.

    Attention is per-(batch, head) so VMEM scales linearly with the block: target
    the largest block (<=128) so every matmul — especially the serial LSTM
    recurrence — has M ~= 128 rows. On v7x (2 TensorCores) prefer >=2 'parallel'
    blocks when the batch is big enough; on v5e/v6e (1 TC) fewer, bigger blocks win.
    The wrapper pads B to a multiple of the block, so ragged batches never fall back
    to one odd-sized giant block.
    """
    MAX_BB = 128
    two_cores = False
    try:
        kind = jax.devices()[0].device_kind.lower().replace(" ", "")
        two_cores = ("v7" in kind) or ("tpu7" in kind)
    except Exception:
        pass

    target = (B + 1) // 2 if (two_cores and B >= 16) else B
    bb = min(target, MAX_BB)
    if bb != B:
        # More than one block: keep it 8-row (sublane) aligned; padding covers ragged B.
        bb = max(8, (bb // 8) * 8)
    return bb


def unity_forward(x, params):
    (w_in, b_in, w_qkv, b_qkv, w_ao, b_ao,
     w_ih1, w_hh1, b1, w_ih2, w_hh2, b2, w_proj, b_proj) = params
    B, S, Din = x.shape
    H = w_in.shape[1]
    hd = H // NUM_HEADS
    scale = float(hd) ** -0.5

    # Fold the softmax scale into the q columns of the in-projection (host side).
    w_qkv_s = jnp.concatenate([w_qkv[:, :H] * scale, w_qkv[:, H:]], axis=1)
    b_qkv_s = jnp.concatenate([b_qkv[:, :H] * scale, b_qkv[:, H:]], axis=1)

    weights = [w_in, b_in, w_qkv_s, b_qkv_s, w_ao, b_ao,
               w_ih1, w_hh1, b1, w_ih2, w_hh2, b2, w_proj, b_proj]

    BB = _choose_batch_block(B)
    B_pad = ((B + BB - 1) // BB) * BB
    x_p = x if B_pad == B else jnp.pad(x, ((0, B_pad - B), (0, 0), (0, 0)))
    grid = (B_pad // BB,)

    in_specs = [pl.BlockSpec((BB, S, Din), lambda i: (i, 0, 0))]
    for p in weights:
        nd = p.ndim
        in_specs.append(pl.BlockSpec(p.shape, lambda i, _nd=nd: (0,) * _nd))

    out = pl.pallas_call(
        unity_kernel,
        out_shape=jax.ShapeDtypeStruct((B_pad, 1), jnp.float32),
        grid=grid,
        in_specs=in_specs,
        # each program owns its own batch-block of output rows -> safe to run parallel
        out_specs=pl.BlockSpec((BB, 1), lambda i: (i, 0)),
        compiler_params=pltpu.CompilerParams(
            dimension_semantics=("parallel",),
            # Explicit, conservative scoped-VMEM budget: fine on v5e/v6e (128 MiB
            # physical) and within v7x's 64 MiB physical ceiling with headroom.
            vmem_limit_bytes=32 * 1024 * 1024,
        ),
    )(x_p, *weights)
    return out[:B]


def make_params(key, input_dim, hidden_dim):
    def xavier(k, shape):
        std = (2.0 / (shape[0] + shape[1])) ** 0.5
        return (std * jax.random.normal(k, shape)).astype(jnp.float32)

    ks = jax.random.split(key, 16)
    H = hidden_dim
    params = [
        xavier(ks[0], (input_dim, H)),                       # w_in
        0.01 * jax.random.normal(ks[1], (1, H)),             # b_in
        xavier(ks[2], (H, 3 * H)),                           # w_qkv (in_proj)
        0.01 * jax.random.normal(ks[3], (1, 3 * H)),         # b_qkv
        xavier(ks[4], (H, H)),                               # w_ao (out_proj)
        0.01 * jax.random.normal(ks[5], (1, H)),             # b_ao
        xavier(ks[6], (H, 4 * H)),                           # w_ih layer 1
        xavier(ks[7], (H, 4 * H)),                           # w_hh layer 1
        0.01 * jax.random.normal(ks[8], (1, 4 * H)),         # b layer 1 (b_ih + b_hh folded)
        xavier(ks[9], (H, 4 * H)),                           # w_ih layer 2
        xavier(ks[10], (H, 4 * H)),                          # w_hh layer 2
        0.01 * jax.random.normal(ks[11], (1, 4 * H)),        # b layer 2
        xavier(ks[12], (H, 1)),                              # w_proj
        0.01 * jax.random.normal(ks[13], (1, 1)),            # b_proj
    ]
    return [p.astype(jnp.float32) for p in params]


def unity_ref(x, params):
    # Pure-JAX reference (same math, plain slicing) for validation.
    (w_in, b_in, w_qkv, b_qkv, w_ao, b_ao,
     w_ih1, w_hh1, b1, w_ih2, w_hh2, b2, w_proj, b_proj) = params
    B, S, _ = x.shape
    H = w_in.shape[1]
    hd = H // NUM_HEADS

    h = x @ w_in + b_in
    qkv = h @ w_qkv + b_qkv
    q, k, v = qkv[..., :H], qkv[..., H:2 * H], qkv[..., 2 * H:]
    qh = q.reshape(B, S, NUM_HEADS, hd).transpose(0, 2, 1, 3)
    kh = k.reshape(B, S, NUM_HEADS, hd).transpose(0, 2, 1, 3)
    vh = v.reshape(B, S, NUM_HEADS, hd).transpose(0, 2, 1, 3)
    s = jnp.einsum('bhqd,bhkd->bhqk', qh, kh) * (hd ** -0.5)
    p = jax.nn.softmax(s, axis=-1)
    a = jnp.einsum('bhqk,bhkd->bhqd', p, vh).transpose(0, 2, 1, 3).reshape(B, S, H)
    attended = a @ w_ao + b_ao

    def lstm(inp, w_ih, w_hh, bias):
        gx = inp @ w_ih + bias
        h_t = jnp.zeros((B, H)); c_t = jnp.zeros((B, H))
        outs = []
        for t in range(S):
            g = gx[:, t] + h_t @ w_hh
            i_g = jax.nn.sigmoid(g[:, :H]); f_g = jax.nn.sigmoid(g[:, H:2 * H])
            g_g = jnp.tanh(g[:, 2 * H:3 * H]); o_g = jax.nn.sigmoid(g[:, 3 * H:])
            c_t = f_g * c_t + i_g * g_g
            h_t = o_g * jnp.tanh(c_t)
            outs.append(h_t)
        return jnp.stack(outs, axis=1)

    out1 = lstm(attended, w_ih1, w_hh1, b1)
    out2 = lstm(out1, w_ih2, w_hh2, b2)
    return jax.nn.sigmoid(out2[:, -1, :] @ w_proj + b_proj)


if __name__ == "__main__":
    B, S, INPUT_DIM, HIDDEN_DIM = 2, 8, 16, 32
    key = jax.random.PRNGKey(0)
    kx, kp = jax.random.split(key)
    x = jax.random.normal(kx, (B, S, INPUT_DIM), jnp.float32)
    params = make_params(kp, INPUT_DIM, HIDDEN_DIM)

    out = jax.block_until_ready(unity_forward(x, params))
    ref = jax.block_until_ready(unity_ref(x, params))
    assert out.shape == (B, 1)
    assert jnp.allclose(out, ref, atol=1e-5, rtol=1e-5), (out, ref)
    print("KERNEL_OK")
</pallas_src>

<mosaic_0001>
module attributes {stable_mosaic.version = 11 : i64} {
  func.func @unity_kernel(%arg0: i32, %arg1: memref<2x8x16xf32, #tpu.memory_space<vmem>>, %arg2: memref<16x32xf32, #tpu.memory_space<vmem>>, %arg3: memref<1x32xf32, #tpu.memory_space<vmem>>, %arg4: memref<32x96xf32, #tpu.memory_space<vmem>>, %arg5: memref<1x96xf32, #tpu.memory_space<vmem>>, %arg6: memref<32x32xf32, #tpu.memory_space<vmem>>, %arg7: memref<1x32xf32, #tpu.memory_space<vmem>>, %arg8: memref<32x128xf32, #tpu.memory_space<vmem>>, %arg9: memref<32x128xf32, #tpu.memory_space<vmem>>, %arg10: memref<1x128xf32, #tpu.memory_space<vmem>>, %arg11: memref<32x128xf32, #tpu.memory_space<vmem>>, %arg12: memref<32x128xf32, #tpu.memory_space<vmem>>, %arg13: memref<1x128xf32, #tpu.memory_space<vmem>>, %arg14: memref<32x1xf32, #tpu.memory_space<vmem>>, %arg15: memref<1x1xf32, #tpu.memory_space<vmem>>, %arg16: memref<2x1xf32, #tpu.memory_space<vmem>>) attributes {dimension_semantics = [#tpu.dimension_semantics<parallel>], iteration_bounds = array<i64: 1>, scalar_prefetch = 0 : i64, scratch_operands = 0 : i64, tpu.core_type = #tpu.core_type<tc>, window_params = [{transform_indices = @transform_0, window_bounds = array<i64: 2, 8, 16>}, {pipeline_mode = #tpu.pipeline_mode<synchronous>, transform_indices = @transform_1, window_bounds = array<i64: 16, 32>}, {pipeline_mode = #tpu.pipeline_mode<synchronous>, transform_indices = @transform_2, window_bounds = array<i64: 1, 32>}, {pipeline_mode = #tpu.pipeline_mode<synchronous>, transform_indices = @transform_3, window_bounds = array<i64: 32, 96>}, {pipeline_mode = #tpu.pipeline_mode<synchronous>, transform_indices = @transform_4, window_bounds = array<i64: 1, 96>}, {pipeline_mode = #tpu.pipeline_mode<synchronous>, transform_indices = @transform_5, window_bounds = array<i64: 32, 32>}, {pipeline_mode = #tpu.pipeline_mode<synchronous>, transform_indices = @transform_6, window_bounds = array<i64: 1, 32>}, {pipeline_mode = #tpu.pipeline_mode<synchronous>, transform_indices = @transform_7, window_bounds = array<i64: 32, 128>}, {pipeline_mode = #tpu.pipeline_mode<synchronous>, transform_indices = @transform_8, window_bounds = array<i64: 32, 128>}, {pipeline_mode = #tpu.pipeline_mode<synchronous>, transform_indices = @transform_9, window_bounds = array<i64: 1, 128>}, {pipeline_mode = #tpu.pipeline_mode<synchronous>, transform_indices = @transform_10, window_bounds = array<i64: 32, 128>}, {pipeline_mode = #tpu.pipeline_mode<synchronous>, transform_indices = @transform_11, window_bounds = array<i64: 32, 128>}, {pipeline_mode = #tpu.pipeline_mode<synchronous>, transform_indices = @transform_12, window_bounds = array<i64: 1, 128>}, {pipeline_mode = #tpu.pipeline_mode<synchronous>, transform_indices = @transform_13, window_bounds = array<i64: 32, 1>}, {pipeline_mode = #tpu.pipeline_mode<synchronous>, transform_indices = @transform_14, window_bounds = array<i64: 1, 1>}, {transform_indices = @transform_15, window_bounds = array<i64: 2, 1>}]} {
    %c0 = arith.constant 0 : index
    %c0_0 = arith.constant 0 : index
    %c0_1 = arith.constant 0 : index
    %0 = vector.load %arg1[%c0, %c0_0, %c0_1] : memref<2x8x16xf32, #tpu.memory_space<vmem>>, vector<2x8x16xf32>
    %1 = vector.shape_cast %0 : vector<2x8x16xf32> to vector<16x16xf32>
    %c0_2 = arith.constant 0 : index
    %c0_3 = arith.constant 0 : index
    %2 = vector.load %arg2[%c0_2, %c0_3] : memref<16x32xf32, #tpu.memory_space<vmem>>, vector<16x32xf32>
    %cst = arith.constant dense<0.000000e+00> : vector<16x32xf32>
    %3 = tpu.matmul %1, %2, %cst {dimension_numbers = #tpu.dot_dimension_numbers<[1], [0], [0], [1], [0, 0, 1, 1], [], []>} : vector<16x16xf32>, vector<16x32xf32>, vector<16x32xf32> -> vector<16x32xf32>
    %c0_4 = arith.constant 0 : index
    %c0_5 = arith.constant 0 : index
    %4 = vector.load %arg3[%c0_4, %c0_5] : memref<1x32xf32, #tpu.memory_space<vmem>>, vector<1x32xf32>
    %5 = vector.broadcast %4 : vector<1x32xf32> to vector<16x32xf32>
    %6 = arith.addf %3, %5 : vector<16x32xf32>
    %c0_6 = arith.constant 0 : index
    %c0_7 = arith.constant 0 : index
    %7 = vector.load %arg4[%c0_6, %c0_7] : memref<32x96xf32, #tpu.memory_space<vmem>>, vector<32x96xf32>
    %cst_8 = arith.constant dense<0.000000e+00> : vector<16x96xf32>
    %8 = tpu.matmul %6, %7, %cst_8 {dimension_numbers = #tpu.dot_dimension_numbers<[1], [0], [0], [1], [0, 0, 1, 1], [], []>} : vector<16x32xf32>, vector<32x96xf32>, vector<16x96xf32> -> vector<16x96xf32>
    %c0_9 = arith.constant 0 : index
    %c0_10 = arith.constant 0 : index
    %9 = vector.load %arg5[%c0_9, %c0_10] : memref<1x96xf32, #tpu.memory_space<vmem>>, vector<1x96xf32>
    %10 = vector.broadcast %9 : vector<1x96xf32> to vector<16x96xf32>
    %11 = arith.addf %8, %10 : vector<16x96xf32>
    %12 = vector.shape_cast %11 : vector<16x96xf32> to vector<2x8x96xf32>
    %c0_11 = arith.constant 0 : index
    %c0_12 = arith.constant 0 : index
    %13 = vector.load %arg6[%c0_11, %c0_12] : memref<32x32xf32, #tpu.memory_space<vmem>>, vector<32x32xf32>
    %c0_13 = arith.constant 0 : index
    %c0_14 = arith.constant 0 : index
    %14 = vector.load %arg7[%c0_13, %c0_14] : memref<1x32xf32, #tpu.memory_space<vmem>>, vector<1x32xf32>
    %15 = vector.shape_cast %14 : vector<1x32xf32> to vector<1x32xf32>
    %16 = vector.broadcast %15 : vector<1x32xf32> to vector<16x32xf32>
    %17 = vector.extract_strided_slice %12 {offsets = [0, 0, 0], sizes = [2, 8, 8], strides = [1, 1, 1]} : vector<2x8x96xf32> to vector<2x8x8xf32>
    %18 = vector.extract_strided_slice %12 {offsets = [0, 0, 32], sizes = [2, 8, 8], strides = [1, 1, 1]} : vector<2x8x96xf32> to vector<2x8x8xf32>
    %19 = vector.extract_strided_slice %12 {offsets = [0, 0, 64], sizes = [2, 8, 8], strides = [1, 1, 1]} : vector<2x8x96xf32> to vector<2x8x8xf32>
    "tpu.trace_start"() <{level = 10 : i32, message = "bqd,bkd->bqk"}> : () -> ()
    %cst_15 = arith.constant dense<0.000000e+00> : vector<2x8x8xf32>
    %20 = tpu.matmul %17, %18, %cst_15 {dimension_numbers = #tpu.dot_dimension_numbers<[2], [2], [1], [1], [0, 0, 0, 1, 1, 1], [0], [0]>} : vector<2x8x8xf32>, vector<2x8x8xf32>, vector<2x8x8xf32> -> vector<2x8x8xf32>
    "tpu.trace_stop"() : () -> ()
    %cst_16 = arith.constant dense<0xFF800000> : vector<2x8xf32>
    %21 = vector.multi_reduction <maximumf>, %20, %cst_16 [2] : vector<2x8x8xf32> to vector<2x8xf32>
    %22 = vector.shape_cast %21 : vector<2x8xf32> to vector<2x8x1xf32>
    %23 = vector.broadcast %22 : vector<2x8x1xf32> to vector<2x8x8xf32>
    %24 = arith.subf %20, %23 : vector<2x8x8xf32>
    %25 = math.exp %24 : vector<2x8x8xf32>
    %cst_17 = arith.constant dense<0.000000e+00> : vector<2x8xf32>
    %26 = vector.multi_reduction <add>, %25, %cst_17 [2] : vector<2x8x8xf32> to vector<2x8xf32>
    %27 = vector.shape_cast %26 : vector<2x8xf32> to vector<2x8x1xf32>
    %28 = tpu.reciprocal %27 : vector<2x8x1xf32> -> vector<2x8x1xf32>
    %29 = vector.broadcast %28 : vector<2x8x1xf32> to vector<2x8x8xf32>
    %30 = arith.mulf %25, %29 : vector<2x8x8xf32>
    "tpu.trace_start"() <{level = 10 : i32, message = "bqk,bkd->bqd"}> : () -> ()
    %cst_18 = arith.constant dense<0.000000e+00> : vector<2x8x8xf32>
    %31 = tpu.matmul %30, %19, %cst_18 {dimension_numbers = #tpu.dot_dimension_numbers<[2], [1], [1], [2], [0, 0, 0, 1, 1, 2], [0], [0]>} : vector<2x8x8xf32>, vector<2x8x8xf32>, vector<2x8x8xf32> -> vector<2x8x8xf32>
    "tpu.trace_stop"() : () -> ()
    %32 = vector.shape_cast %31 : vector<2x8x8xf32> to vector<16x8xf32>
    %33 = vector.extract_strided_slice %13 {offsets = [0, 0], sizes = [8, 32], strides = [1, 1]} : vector<32x32xf32> to vector<8x32xf32>
    %cst_19 = arith.constant dense<0.000000e+00> : vector<16x32xf32>
    %34 = tpu.matmul %32, %33, %cst_19 {dimension_numbers = #tpu.dot_dimension_numbers<[1], [0], [0], [1], [0, 0, 1, 1], [], []>} : vector<16x8xf32>, vector<8x32xf32>, vector<16x32xf32> -> vector<16x32xf32>
    %35 = arith.addf %16, %34 : vector<16x32xf32>
    %36 = vector.extract_strided_slice %12 {offsets = [0, 0, 8], sizes = [2, 8, 8], strides = [1, 1, 1]} : vector<2x8x96xf32> to vector<2x8x8xf32>
    %37 = vector.extract_strided_slice %12 {offsets = [0, 0, 40], sizes = [2, 8, 8], strides = [1, 1, 1]} : vector<2x8x96xf32> to vector<2x8x8xf32>
    %38 = vector.extract_strided_slice %12 {offsets = [0, 0, 72], sizes = [2, 8, 8], strides = [1, 1, 1]} : vector<2x8x96xf32> to vector<2x8x8xf32>
    "tpu.trace_start"() <{level = 10 : i32, message = "bqd,bkd->bqk"}> : () -> ()
    %cst_20 = arith.constant dense<0.000000e+00> : vector<2x8x8xf32>
    %39 = tpu.matmul %36, %37, %cst_20 {dimension_numbers = #tpu.dot_dimension_numbers<[2], [2], [1], [1], [0, 0, 0, 1, 1, 1], [0], [0]>} : vector<2x8x8xf32>, vector<2x8x8xf32>, vector<2x8x8xf32> -> vector<2x8x8xf32>
    "tpu.trace_stop"() : () -> ()
    %cst_21 = arith.constant dense<0xFF800000> : vector<2x8xf32>
    %40 = vector.multi_reduction <maximumf>, %39, %cst_21 [2] : vector<2x8x8xf32> to vector<2x8xf32>
    %41 = vector.shape_cast %40 : vector<2x8xf32> to vector<2x8x1xf32>
    %42 = vector.broadcast %41 : vector<2x8x1xf32> to vector<2x8x8xf32>
    %43 = arith.subf %39, %42 : vector<2x8x8xf32>
    %44 = math.exp %43 : vector<2x8x8xf32>
    %cst_22 = arith.constant dense<0.000000e+00> : vector<2x8xf32>
    %45 = vector.multi_reduction <add>, %44, %cst_22 [2] : vector<2x8x8xf32> to vector<2x8xf32>
    %46 = vector.shape_cast %45 : vector<2x8xf32> to vector<2x8x1xf32>
    %47 = tpu.reciprocal %46 : vector<2x8x1xf32> -> vector<2x8x1xf32>
    %48 = vector.broadcast %47 : vector<2x8x1xf32> to vector<2x8x8xf32>
    %49 = arith.mulf %44, %48 : vector<2x8x8xf32>
    "tpu.trace_start"() <{level = 10 : i32, message = "bqk,bkd->bqd"}> : () -> ()
    %cst_23 = arith.constant dense<0.000000e+00> : vector<2x8x8xf32>
    %50 = tpu.matmul %49, %38, %cst_23 {dimension_numbers = #tpu.dot_dimension_numbers<[2], [1], [1], [2], [0, 0, 0, 1, 1, 2], [0], [0]>} : vector<2x8x8xf32>, vector<2x8x8xf32>, vector<2x8x8xf32> -> vector<2x8x8xf32>
    "tpu.trace_stop"() : () -> ()
    %51 = vector.shape_cast %50 : vector<2x8x8xf32> to vector<16x8xf32>
    %52 = vector.extract_strided_slice %13 {offsets = [8, 0], sizes = [8, 32], strides = [1, 1]} : vector<32x32xf32> to vector<8x32xf32>
    %cst_24 = arith.constant dense<0.000000e+00> : vector<16x32xf32>
    %53 = tpu.matmul %51, %52, %cst_24 {dimension_numbers = #tpu.dot_dimension_numbers<[1], [0], [0], [1], [0, 0, 1, 1], [], []>} : vector<16x8xf32>, vector<8x32xf32>, vector<16x32xf32> -> vector<16x32xf32>
    %54 = arith.addf %35, %53 : vector<16x32xf32>
    %55 = vector.extract_strided_slice %12 {offsets = [0, 0, 16], sizes = [2, 8, 8], strides = [1, 1, 1]} : vector<2x8x96xf32> to vector<2x8x8xf32>
    %56 = vector.extract_strided_slice %12 {offsets = [0, 0, 48], sizes = [2, 8, 8], strides = [1, 1, 1]} : vector<2x8x96xf32> to vector<2x8x8xf32>
    %57 = vector.extract_strided_slice %12 {offsets = [0, 0, 80], sizes = [2, 8, 8], strides = [1, 1, 1]} : vector<2x8x96xf32> to vector<2x8x8xf32>
    "tpu.trace_start"() <{level = 10 : i32, message = "bqd,bkd->bqk"}> : () -> ()
    %cst_25 = arith.constant dense<0.000000e+00> : vector<2x8x8xf32>
    %58 = tpu.matmul %55, %56, %cst_25 {dimension_numbers = #tpu.dot_dimension_numbers<[2], [2], [1], [1], [0, 0, 0, 1, 1, 1], [0], [0]>} : vector<2x8x8xf32>, vector<2x8x8xf32>, vector<2x8x8xf32> -> vector<2x8x8xf32>
    "tpu.trace_stop"() : () -> ()
    %cst_26 = arith.constant dense<0xFF800000> : vector<2x8xf32>
    %59 = vector.multi_reduction <maximumf>, %58, %cst_26 [2] : vector<2x8x8xf32> to vector<2x8xf32>
    %60 = vector.shape_cast %59 : vector<2x8xf32> to vector<2x8x1xf32>
    %61 = vector.broadcast %60 : vector<2x8x1xf32> to vector<2x8x8xf32>
    %62 = arith.subf %58, %61 : vector<2x8x8xf32>
    %63 = math.exp %62 : vector<2x8x8xf32>
    %cst_27 = arith.constant dense<0.000000e+00> : vector<2x8xf32>
    %64 = vector.multi_reduction <add>, %63, %cst_27 [2] : vector<2x8x8xf32> to vector<2x8xf32>
    %65 = vector.shape_cast %64 : vector<2x8xf32> to vector<2x8x1xf32>
    %66 = tpu.reciprocal %65 : vector<2x8x1xf32> -> vector<2x8x1xf32>
    %67 = vector.broadcast %66 : vector<2x8x1xf32> to vector<2x8x8xf32>
    %68 = arith.mulf %63, %67 : vector<2x8x8xf32>
    "tpu.trace_start"() <{level = 10 : i32, message = "bqk,bkd->bqd"}> : () -> ()
    %cst_28 = arith.constant dense<0.000000e+00> : vector<2x8x8xf32>
    %69 = tpu.matmul %68, %57, %cst_28 {dimension_numbers = #tpu.dot_dimension_numbers<[2], [1], [1], [2], [0, 0, 0, 1, 1, 2], [0], [0]>} : vector<2x8x8xf32>, vector<2x8x8xf32>, vector<2x8x8xf32> -> vector<2x8x8xf32>
    "tpu.trace_stop"() : () -> ()
    %70 = vector.shape_cast %69 : vector<2x8x8xf32> to vector<16x8xf32>
    %71 = vector.extract_strided_slice %13 {offsets = [16, 0], sizes = [8, 32], strides = [1, 1]} : vector<32x32xf32> to vector<8x32xf32>
    %cst_29 = arith.constant dense<0.000000e+00> : vector<16x32xf32>
    %72 = tpu.matmul %70, %71, %cst_29 {dimension_numbers = #tpu.dot_dimension_numbers<[1], [0], [0], [1], [0, 0, 1, 1], [], []>} : vector<16x8xf32>, vector<8x32xf32>, vector<16x32xf32> -> vector<16x32xf32>
    %73 = arith.addf %54, %72 : vector<16x32xf32>
    %74 = vector.extract_strided_slice %12 {offsets = [0, 0, 24], sizes = [2, 8, 8], strides = [1, 1, 1]} : vector<2x8x96xf32> to vector<2x8x8xf32>
    %75 = vector.extract_strided_slice %12 {offsets = [0, 0, 56], sizes = [2, 8, 8], strides = [1, 1, 1]} : vector<2x8x96xf32> to vector<2x8x8xf32>
    %76 = vector.extract_strided_slice %12 {offsets = [0, 0, 88], sizes = [2, 8, 8], strides = [1, 1, 1]} : vector<2x8x96xf32> to vector<2x8x8xf32>
    "tpu.trace_start"() <{level = 10 : i32, message = "bqd,bkd->bqk"}> : () -> ()
    %cst_30 = arith.constant dense<0.000000e+00> : vector<2x8x8xf32>
    %77 = tpu.matmul %74, %75, %cst_30 {dimension_numbers = #tpu.dot_dimension_numbers<[2], [2], [1], [1], [0, 0, 0, 1, 1, 1], [0], [0]>} : vector<2x8x8xf32>, vector<2x8x8xf32>, vector<2x8x8xf32> -> vector<2x8x8xf32>
    "tpu.trace_stop"() : () -> ()
    %cst_31 = arith.constant dense<0xFF800000> : vector<2x8xf32>
    %78 = vector.multi_reduction <maximumf>, %77, %cst_31 [2] : vector<2x8x8xf32> to vector<2x8xf32>
    %79 = vector.shape_cast %78 : vector<2x8xf32> to vector<2x8x1xf32>
    %80 = vector.broadcast %79 : vector<2x8x1xf32> to vector<2x8x8xf32>
    %81 = arith.subf %77, %80 : vector<2x8x8xf32>
    %82 = math.exp %81 : vector<2x8x8xf32>
    %cst_32 = arith.constant dense<0.000000e+00> : vector<2x8xf32>
    %83 = vector.multi_reduction <add>, %82, %cst_32 [2] : vector<2x8x8xf32> to vector<2x8xf32>
    %84 = vector.shape_cast %83 : vector<2x8xf32> to vector<2x8x1xf32>
    %85 = tpu.reciprocal %84 : vector<2x8x1xf32> -> vector<2x8x1xf32>
    %86 = vector.broadcast %85 : vector<2x8x1xf32> to vector<2x8x8xf32>
    %87 = arith.mulf %82, %86 : vector<2x8x8xf32>
    "tpu.trace_start"() <{level = 10 : i32, message = "bqk,bkd->bqd"}> : () -> ()
    %cst_33 = arith.constant dense<0.000000e+00> : vector<2x8x8xf32>
    %88 = tpu.matmul %87, %76, %cst_33 {dimension_numbers = #tpu.dot_dimension_numbers<[2], [1], [1], [2], [0, 0, 0, 1, 1, 2], [0], [0]>} : vector<2x8x8xf32>, vector<2x8x8xf32>, vector<2x8x8xf32> -> vector<2x8x8xf32>
    "tpu.trace_stop"() : () -> ()
    %89 = vector.shape_cast %88 : vector<2x8x8xf32> to vector<16x8xf32>
    %90 = vector.extract_strided_slice %13 {offsets = [24, 0], sizes = [8, 32], strides = [1, 1]} : vector<32x32xf32> to vector<8x32xf32>
    %cst_34 = arith.constant dense<0.000000e+00> : vector<16x32xf32>
    %91 = tpu.matmul %89, %90, %cst_34 {dimension_numbers = #tpu.dot_dimension_numbers<[1], [0], [0], [1], [0, 0, 1, 1], [], []>} : vector<16x8xf32>, vector<8x32xf32>, vector<16x32xf32> -> vector<16x32xf32>
    %92 = arith.addf %73, %91 : vector<16x32xf32>
    %c0_35 = arith.constant 0 : index
    %c0_36 = arith.constant 0 : index
    %93 = vector.load %arg8[%c0_35, %c0_36] : memref<32x128xf32, #tpu.memory_space<vmem>>, vector<32x128xf32>
    %cst_37 = arith.constant dense<0.000000e+00> : vector<16x128xf32>
    %94 = tpu.matmul %92, %93, %cst_37 {dimension_numbers = #tpu.dot_dimension_numbers<[1], [0], [0], [1], [0, 0, 1, 1], [], []>} : vector<16x32xf32>, vector<32x128xf32>, vector<16x128xf32> -> vector<16x128xf32>
    %c0_38 = arith.constant 0 : index
    %c0_39 = arith.constant 0 : index
    %95 = vector.load %arg10[%c0_38, %c0_39] : memref<1x128xf32, #tpu.memory_space<vmem>>, vector<1x128xf32>
    %96 = vector.broadcast %95 : vector<1x128xf32> to vector<16x128xf32>
    %97 = arith.addf %94, %96 : vector<16x128xf32>
    %98 = vector.shape_cast %97 : vector<16x128xf32> to vector<2x8x128xf32>
    %c0_40 = arith.constant 0 : index
    %c0_41 = arith.constant 0 : index
    %99 = vector.load %arg9[%c0_40, %c0_41] : memref<32x128xf32, #tpu.memory_space<vmem>>, vector<32x128xf32>
    %c0_42 = arith.constant 0 : index
    %c0_43 = arith.constant 0 : index
    %100 = vector.load %arg11[%c0_42, %c0_43] : memref<32x128xf32, #tpu.memory_space<vmem>>, vector<32x128xf32>
    %c0_44 = arith.constant 0 : index
    %c0_45 = arith.constant 0 : index
    %101 = vector.load %arg12[%c0_44, %c0_45] : memref<32x128xf32, #tpu.memory_space<vmem>>, vector<32x128xf32>
    %c0_46 = arith.constant 0 : index
    %c0_47 = arith.constant 0 : index
    %102 = vector.load %arg13[%c0_46, %c0_47] : memref<1x128xf32, #tpu.memory_space<vmem>>, vector<1x128xf32>
    %103 = vector.shape_cast %102 : vector<1x128xf32> to vector<1x128xf32>
    %104 = vector.broadcast %103 : vector<1x128xf32> to vector<2x128xf32>
    %cst_48 = arith.constant 0.000000e+00 : f32
    %105 = vector.broadcast %cst_48 : f32 to vector<2x32xf32>
    %cst_49 = arith.constant 0.000000e+00 : f32
    %106 = vector.broadcast %cst_49 : f32 to vector<2x32xf32>
    %cst_50 = arith.constant 0.000000e+00 : f32
    %107 = vector.broadcast %cst_50 : f32 to vector<2x32xf32>
    %cst_51 = arith.constant 0.000000e+00 : f32
    %108 = vector.broadcast %cst_51 : f32 to vector<2x32xf32>
    %109 = vector.extract_strided_slice %98 {offsets = [0, 0, 0], sizes = [2, 1, 128], strides = [1, 1, 1]} : vector<2x8x128xf32> to vector<2x1x128xf32>
    %110 = vector.shape_cast %109 : vector<2x1x128xf32> to vector<2x128xf32>
    %cst_52 = arith.constant dense<0.000000e+00> : vector<2x128xf32>
    %111 = tpu.matmul %105, %99, %cst_52 {dimension_numbers = #tpu.dot_dimension_numbers<[1], [0], [0], [1], [0, 0, 1, 1], [], []>} : vector<2x32xf32>, vector<32x128xf32>, vector<2x128xf32> -> vector<2x128xf32>
    %112 = arith.addf %110, %111 : vector<2x128xf32>
    %113 = vector.extract_strided_slice %112 {offsets = [0, 0], sizes = [2, 32], strides = [1, 1]} : vector<2x128xf32> to vector<2x32xf32>
    %114 = arith.negf %113 : vector<2x32xf32>
    %115 = math.exp %114 : vector<2x32xf32>
    %cst_53 = arith.constant 1.000000e+00 : f32
    %116 = vector.broadcast %cst_53 : f32 to vector<2x32xf32>
    %117 = arith.addf %116, %115 : vector<2x32xf32>
    %118 = arith.divf %116, %117 : vector<2x32xf32>
    %119 = vector.extract_strided_slice %112 {offsets = [0, 32], sizes = [2, 32], strides = [1, 1]} : vector<2x128xf32> to vector<2x32xf32>
    %120 = arith.negf %119 : vector<2x32xf32>
    %121 = math.exp %120 : vector<2x32xf32>
    %cst_54 = arith.constant 1.000000e+00 : f32
    %122 = vector.broadcast %cst_54 : f32 to vector<2x32xf32>
    %123 = arith.addf %122, %121 : vector<2x32xf32>
    %124 = arith.divf %122, %123 : vector<2x32xf32>
    %125 = vector.extract_strided_slice %112 {offsets = [0, 64], sizes = [2, 32], strides = [1, 1]} : vector<2x128xf32> to vector<2x32xf32>
    %126 = math.tanh %125 : vector<2x32xf32>
    %127 = vector.extract_strided_slice %112 {offsets = [0, 96], sizes = [2, 32], strides = [1, 1]} : vector<2x128xf32> to vector<2x32xf32>
    %128 = arith.negf %127 : vector<2x32xf32>
    %129 = math.exp %128 : vector<2x32xf32>
    %cst_55 = arith.constant 1.000000e+00 : f32
    %130 = vector.broadcast %cst_55 : f32 to vector<2x32xf32>
    %131 = arith.addf %130, %129 : vector<2x32xf32>
    %132 = arith.divf %130, %131 : vector<2x32xf32>
    %133 = arith.mulf %124, %106 : vector<2x32xf32>
    %134 = arith.mulf %118, %126 : vector<2x32xf32>
    %135 = arith.addf %133, %134 : vector<2x32xf32>
    %136 = math.tanh %135 : vector<2x32xf32>
    %137 = arith.mulf %132, %136 : vector<2x32xf32>
    %cst_56 = arith.constant dense<0.000000e+00> : vector<2x128xf32>
    %138 = tpu.matmul %137, %100, %cst_56 {dimension_numbers = #tpu.dot_dimension_numbers<[1], [0], [0], [1], [0, 0, 1, 1], [], []>} : vector<2x32xf32>, vector<32x128xf32>, vector<2x128xf32> -> vector<2x128xf32>
    %cst_57 = arith.constant dense<0.000000e+00> : vector<2x128xf32>
    %139 = tpu.matmul %107, %101, %cst_57 {dimension_numbers = #tpu.dot_dimension_numbers<[1], [0], [0], [1], [0, 0, 1, 1], [], []>} : vector<2x32xf32>, vector<32x128xf32>, vector<2x128xf32> -> vector<2x128xf32>
    %140 = arith.addf %138, %139 : vector<2x128xf32>
    %141 = arith.addf %140, %104 : vector<2x128xf32>
    %142 = vector.extract_strided_slice %141 {offsets = [0, 0], sizes = [2, 32], strides = [1, 1]} : vector<2x128xf32> to vector<2x32xf32>
    %143 = arith.negf %142 : vector<2x32xf32>
    %144 = math.exp %143 : vector<2x32xf32>
    %cst_58 = arith.constant 1.000000e+00 : f32
    %145 = vector.broadcast %cst_58 : f32 to vector<2x32xf32>
    %146 = arith.addf %145, %144 : vector<2x32xf32>
    %147 = arith.divf %145, %146 : vector<2x32xf32>
    %148 = vector.extract_strided_slice %141 {offsets = [0, 32], sizes = [2, 32], strides = [1, 1]} : vector<2x128xf32> to vector<2x32xf32>
    %149 = arith.negf %148 : vector<2x32xf32>
    %150 = math.exp %149 : vector<2x32xf32>
    %cst_59 = arith.constant 1.000000e+00 : f32
    %151 = vector.broadcast %cst_59 : f32 to vector<2x32xf32>
    %152 = arith.addf %151, %150 : vector<2x32xf32>
    %153 = arith.divf %151, %152 : vector<2x32xf32>
    %154 = vector.extract_strided_slice %141 {offsets = [0, 64], sizes = [2, 32], strides = [1, 1]} : vector<2x128xf32> to vector<2x32xf32>
    %155 = math.tanh %154 : vector<2x32xf32>
    %156 = vector.extract_strided_slice %141 {offsets = [0, 96], sizes = [2, 32], strides = [1, 1]} : vector<2x128xf32> to vector<2x32xf32>
    %157 = arith.negf %156 : vector<2x32xf32>
    %158 = math.exp %157 : vector<2x32xf32>
    %cst_60 = arith.constant 1.000000e+00 : f32
    %159 = vector.broadcast %cst_60 : f32 to vector<2x32xf32>
    %160 = arith.addf %159, %158 : vector<2x32xf32>
    %161 = arith.divf %159, %160 : vector<2x32xf32>
    %162 = arith.mulf %153, %108 : vector<2x32xf32>
    %163 = arith.mulf %147, %155 : vector<2x32xf32>
    %164 = arith.addf %162, %163 : vector<2x32xf32>
    %165 = math.tanh %164 : vector<2x32xf32>
    %166 = arith.mulf %161, %165 : vector<2x32xf32>
    %167 = vector.extract_strided_slice %98 {offsets = [0, 1, 0], sizes = [2, 1, 128], strides = [1, 1, 1]} : vector<2x8x128xf32> to vector<2x1x128xf32>
    %168 = vector.shape_cast %167 : vector<2x1x128xf32> to vector<2x128xf32>
    %cst_61 = arith.constant dense<0.000000e+00> : vector<2x128xf32>
    %169 = tpu.matmul %137, %99, %cst_61 {dimension_numbers = #tpu.dot_dimension_numbers<[1], [0], [0], [1], [0, 0, 1, 1], [], []>} : vector<2x32xf32>, vector<32x128xf32>, vector<2x128xf32> -> vector<2x128xf32>
    %170 = arith.addf %168, %169 : vector<2x128xf32>
    %171 = vector.extract_strided_slice %170 {offsets = [0, 0], sizes = [2, 32], strides = [1, 1]} : vector<2x128xf32> to vector<2x32xf32>
    %172 = arith.negf %171 : vector<2x32xf32>
    %173 = math.exp %172 : vector<2x32xf32>
    %cst_62 = arith.constant 1.000000e+00 : f32
    %174 = vector.broadcast %cst_62 : f32 to vector<2x32xf32>
    %175 = arith.addf %174, %173 : vector<2x32xf32>
    %176 = arith.divf %174, %175 : vector<2x32xf32>
    %177 = vector.extract_strided_slice %170 {offsets = [0, 32], sizes = [2, 32], strides = [1, 1]} : vector<2x128xf32> to vector<2x32xf32>
    %178 = arith.negf %177 : vector<2x32xf32>
    %179 = math.exp %178 : vector<2x32xf32>
    %cst_63 = arith.constant 1.000000e+00 : f32
    %180 = vector.broadcast %cst_63 : f32 to vector<2x32xf32>
    %181 = arith.addf %180, %179 : vector<2x32xf32>
    %182 = arith.divf %180, %181 : vector<2x32xf32>
    %183 = vector.extract_strided_slice %170 {offsets = [0, 64], sizes = [2, 32], strides = [1, 1]} : vector<2x128xf32> to vector<2x32xf32>
    %184 = math.tanh %183 : vector<2x32xf32>
    %185 = vector.extract_strided_slice %170 {offsets = [0, 96], sizes = [2, 32], strides = [1, 1]} : vector<2x128xf32> to vector<2x32xf32>
    %186 = arith.negf %185 : vector<2x32xf32>
    %187 = math.exp %186 : vector<2x32xf32>
    %cst_64 = arith.constant 1.000000e+00 : f32
    %188 = vector.broadcast %cst_64 : f32 to vector<2x32xf32>
    %189 = arith.addf %188, %187 : vector<2x32xf32>
    %190 = arith.divf %188, %189 : vector<2x32xf32>
    %191 = arith.mulf %182, %135 : vector<2x32xf32>
    %192 = arith.mulf %176, %184 : vector<2x32xf32>
    %193 = arith.addf %191, %192 : vector<2x32xf32>
    %194 = math.tanh %193 : vector<2x32xf32>
    %195 = arith.mulf %190, %194 : vector<2x32xf32>
    %cst_65 = arith.constant dense<0.000000e+00> : vector<2x128xf32>
    %196 = tpu.matmul %195, %100, %cst_65 {dimension_numbers = #tpu.dot_dimension_numbers<[1], [0], [0], [1], [0, 0, 1, 1], [], []>} : vector<2x32xf32>, vector<32x128xf32>, vector<2x128xf32> -> vector<2x128xf32>
    %cst_66 = arith.constant dense<0.000000e+00> : vector<2x128xf32>
    %197 = tpu.matmul %166, %101, %cst_66 {dimension_numbers = #tpu.dot_dimension_numbers<[1], [0], [0], [1], [0, 0, 1, 1], [], []>} : vector<2x32xf32>, vector<32x128xf32>, vector<2x128xf32> -> vector<2x128xf32>
    %198 = arith.addf %196, %197 : vector<2x128xf32>
    %199 = arith.addf %198, %104 : vector<2x128xf32>
    %200 = vector.extract_strided_slice %199 {offsets = [0, 0], sizes = [2, 32], strides = [1, 1]} : vector<2x128xf32> to vector<2x32xf32>
    %201 = arith.negf %200 : vector<2x32xf32>
    %202 = math.exp %201 : vector<2x32xf32>
    %cst_67 = arith.constant 1.000000e+00 : f32
    %203 = vector.broadcast %cst_67 : f32 to vector<2x32xf32>
    %204 = arith.addf %203, %202 : vector<2x32xf32>
    %205 = arith.divf %203, %204 : vector<2x32xf32>
    %206 = vector.extract_strided_slice %199 {offsets = [0, 32], sizes = [2, 32], strides = [1, 1]} : vector<2x128xf32> to vector<2x32xf32>
    %207 = arith.negf %206 : vector<2x32xf32>
    %208 = math.exp %207 : vector<2x32xf32>
    %cst_68 = arith.constant 1.000000e+00 : f32
    %209 = vector.broadcast %cst_68 : f32 to vector<2x32xf32>
    %210 = arith.addf %209, %208 : vector<2x32xf32>
    %211 = arith.divf %209, %210 : vector<2x32xf32>
    %212 = vector.extract_strided_slice %199 {offsets = [0, 64], sizes = [2, 32], strides = [1, 1]} : vector<2x128xf32> to vector<2x32xf32>
    %213 = math.tanh %212 : vector<2x32xf32>
    %214 = vector.extract_strided_slice %199 {offsets = [0, 96], sizes = [2, 32], strides = [1, 1]} : vector<2x128xf32> to vector<2x32xf32>
    %215 = arith.negf %214 : vector<2x32xf32>
    %216 = math.exp %215 : vector<2x32xf32>
    %cst_69 = arith.constant 1.000000e+00 : f32
    %217 = vector.broadcast %cst_69 : f32 to vector<2x32xf32>
    %218 = arith.addf %217, %216 : vector<2x32xf32>
    %219 = arith.divf %217, %218 : vector<2x32xf32>
    %220 = arith.mulf %211, %164 : vector<2x32xf32>
    %221 = arith.mulf %205, %213 : vector<2x32xf32>
    %222 = arith.addf %220, %221 : vector<2x32xf32>
    %223 = math.tanh %222 : vector<2x32xf32>
    %224 = arith.mulf %219, %223 : vector<2x32xf32>
    %225 = vector.extract_strided_slice %98 {offsets = [0, 2, 0], sizes = [2, 1, 128], strides = [1, 1, 1]} : vector<2x8x128xf32> to vector<2x1x128xf32>
    %226 = vector.shape_cast %225 : vector<2x1x128xf32> to vector<2x128xf32>
    %cst_70 = arith.constant dense<0.000000e+00> : vector<2x128xf32>
    %227 = tpu.matmul %195, %99, %cst_70 {dimension_numbers = #tpu.dot_dimension_numbers<[1], [0], [0], [1], [0, 0, 1, 1], [], []>} : vector<2x32xf32>, vector<32x128xf32>, vector<2x128xf32> -> vector<2x128xf32>
    %228 = arith.addf %226, %227 : vector<2x128xf32>
    %229 = vector.extract_strided_slice %228 {offsets = [0, 0], sizes = [2, 32], strides = [1, 1]} : vector<2x128xf32> to vector<2x32xf32>
    %230 = arith.negf %229 : vector<2x32xf32>
    %231 = math.exp %230 : vector<2x32xf32>
    %cst_71 = arith.constant 1.000000e+00 : f32
    %232 = vector.broadcast %cst_71 : f32 to vector<2x32xf32>
    %233 = arith.addf %232, %231 : vector<2x32xf32>
    %234 = arith.divf %232, %233 : vector<2x32xf32>
    %235 = vector.extract_strided_slice %228 {offsets = [0, 32], sizes = [2, 32], strides = [1, 1]} : vector<2x128xf32> to vector<2x32xf32>
    %236 = arith.negf %235 : vector<2x32xf32>
    %237 = math.exp %236 : vector<2x32xf32>
    %cst_72 = arith.constant 1.000000e+00 : f32
    %238 = vector.broadcast %cst_72 : f32 to vector<2x32xf32>
    %239 = arith.addf %238, %237 : vector<2x32xf32>
    %240 = arith.divf %238, %239 : vector<2x32xf32>
    %241 = vector.extract_strided_slice %228 {offsets = [0, 64], sizes = [2, 32], strides = [1, 1]} : vector<2x128xf32> to vector<2x32xf32>
    %242 = math.tanh %241 : vector<2x32xf32>
    %243 = vector.extract_strided_slice %228 {offsets = [0, 96], sizes = [2, 32], strides = [1, 1]} : vector<2x128xf32> to vector<2x32xf32>
    %244 = arith.negf %243 : vector<2x32xf32>
    %245 = math.exp %244 : vector<2x32xf32>
    %cst_73 = arith.constant 1.000000e+00 : f32
    %246 = vector.broadcast %cst_73 : f32 to vector<2x32xf32>
    %247 = arith.addf %246, %245 : vector<2x32xf32>
    %248 = arith.divf %246, %247 : vector<2x32xf32>
    %249 = arith.mulf %240, %193 : vector<2x32xf32>
    %250 = arith.mulf %234, %242 : vector<2x32xf32>
    %251 = arith.addf %249, %250 : vector<2x32xf32>
    %252 = math.tanh %251 : vector<2x32xf32>
    %253 = arith.mulf %248, %252 : vector<2x32xf32>
    %cst_74 = arith.constant dense<0.000000e+00> : vector<2x128xf32>
    %254 = tpu.matmul %253, %100, %cst_74 {dimension_numbers = #tpu.dot_dimension_numbers<[1], [0], [0], [1], [0, 0, 1, 1], [], []>} : vector<2x32xf32>, vector<32x128xf32>, vector<2x128xf32> -> vector<2x128xf32>
    %cst_75 = arith.constant dense<0.000000e+00> : vector<2x128xf32>
    %255 = tpu.matmul %224, %101, %cst_75 {dimension_numbers = #tpu.dot_dimension_numbers<[1], [0], [0], [1], [0, 0, 1, 1], [], []>} : vector<2x32xf32>, vector<32x128xf32>, vector<2x128xf32> -> vector<2x128xf32>
    %256 = arith.addf %254, %255 : vector<2x128xf32>
    %257 = arith.addf %256, %104 : vector<2x128xf32>
    %258 = vector.extract_strided_slice %257 {offsets = [0, 0], sizes = [2, 32], strides = [1, 1]} : vector<2x128xf32> to vector<2x32xf32>
    %259 = arith.negf %258 : vector<2x32xf32>
    %260 = math.exp %259 : vector<2x32xf32>
    %cst_76 = arith.constant 1.000000e+00 : f32
    %261 = vector.broadcast %cst_76 : f32 to vector<2x32xf32>
    %262 = arith.addf %261, %260 : vector<2x32xf32>
    %263 = arith.divf %261, %262 : vector<2x32xf32>
    %264 = vector.extract_strided_slice %257 {offsets = [0, 32], sizes = [2, 32], strides = [1, 1]} : vector<2x128xf32> to vector<2x32xf32>
    %265 = arith.negf %264 : vector<2x32xf32>
    %266 = math.exp %265 : vector<2x32xf32>
    %cst_77 = arith.constant 1.000000e+00 : f32
    %267 = vector.broadcast %cst_77 : f32 to vector<2x32xf32>
    %268 = arith.addf %267, %266 : vector<2x32xf32>
    %269 = arith.divf %267, %268 : vector<2x32xf32>
    %270 = vector.extract_strided_slice %257 {offsets = [0, 64], sizes = [2, 32], strides = [1, 1]} : vector<2x128xf32> to vector<2x32xf32>
    %271 = math.tanh %270 : vector<2x32xf32>
    %272 = vector.extract_strided_slice %257 {offsets = [0, 96], sizes = [2, 32], strides = [1, 1]} : vector<2x128xf32> to vector<2x32xf32>
    %273 = arith.negf %272 : vector<2x32xf32>
    %274 = math.exp %273 : vector<2x32xf32>
    %cst_78 = arith.constant 1.000000e+00 : f32
    %275 = vector.broadcast %cst_78 : f32 to vector<2x32xf32>
    %276 = arith.addf %275, %274 : vector<2x32xf32>
    %277 = arith.divf %275, %276 : vector<2x32xf32>
    %278 = arith.mulf %269, %222 : vector<2x32xf32>
    %279 = arith.mulf %263, %271 : vector<2x32xf32>
    %280 = arith.addf %278, %279 : vector<2x32xf32>
    %281 = math.tanh %280 : vector<2x32xf32>
    %282 = arith.mulf %277, %281 : vector<2x32xf32>
    %283 = vector.extract_strided_slice %98 {offsets = [0, 3, 0], sizes = [2, 1, 128], strides = [1, 1, 1]} : vector<2x8x128xf32> to vector<2x1x128xf32>
    %284 = vector.shape_cast %283 : vector<2x1x128xf32> to vector<2x128xf32>
    %cst_79 = arith.constant dense<0.000000e+00> : vector<2x128xf32>
    %285 = tpu.matmul %253, %99, %cst_79 {dimension_numbers = #tpu.dot_dimension_numbers<[1], [0], [0], [1], [0, 0, 1, 1], [], []>} : vector<2x32xf32>, vector<32x128xf32>, vector<2x128xf32> -> vector<2x128xf32>
    %286 = arith.addf %284, %285 : vector<2x128xf32>
    %287 = vector.extract_strided_slice %286 {offsets = [0, 0], sizes = [2, 32], strides = [1, 1]} : vector<2x128xf32> to vector<2x32xf32>
    %288 = arith.negf %287 : vector<2x32xf32>
    %289 = math.exp %288 : vector<2x32xf32>
    %cst_80 = arith.constant 1.000000e+00 : f32
    %290 = vector.broadcast %cst_80 : f32 to vector<2x32xf32>
    %291 = arith.addf %290, %289 : vector<2x32xf32>
    %292 = arith.divf %290, %291 : vector<2x32xf32>
    %293 = vector.extract_strided_slice %286 {offsets = [0, 32], sizes = [2, 32], strides = [1, 1]} : vector<2x128xf32> to vector<2x32xf32>
    %294 = arith.negf %293 : vector<2x32xf32>
    %295 = math.exp %294 : vector<2x32xf32>
    %cst_81 = arith.constant 1.000000e+00 : f32
    %296 = vector.broadcast %cst_81 : f32 to vector<2x32xf32>
    %297 = arith.addf %296, %295 : vector<2x32xf32>
    %298 = arith.divf %296, %297 : vector<2x32xf32>
    %299 = vector.extract_strided_slice %286 {offsets = [0, 64], sizes = [2, 32], strides = [1, 1]} : vector<2x128xf32> to vector<2x32xf32>
    %300 = math.tanh %299 : vector<2x32xf32>
    %301 = vector.extract_strided_slice %286 {offsets = [0, 96], sizes = [2, 32], strides = [1, 1]} : vector<2x128xf32> to vector<2x32xf32>
    %302 = arith.negf %301 : vector<2x32xf32>
    %303 = math.exp %302 : vector<2x32xf32>
    %cst_82 = arith.constant 1.000000e+00 : f32
    %304 = vector.broadcast %cst_82 : f32 to vector<2x32xf32>
    %305 = arith.addf %304, %303 : vector<2x32xf32>
    %306 = arith.divf %304, %305 : vector<2x32xf32>
    %307 = arith.mulf %298, %251 : vector<2x32xf32>
    %308 = arith.mulf %292, %300 : vector<2x32xf32>
    %309 = arith.addf %307, %308 : vector<2x32xf32>
    %310 = math.tanh %309 : vector<2x32xf32>
    %311 = arith.mulf %306, %310 : vector<2x32xf32>
    %cst_83 = arith.constant dense<0.000000e+00> : vector<2x128xf32>
    %312 = tpu.matmul %311, %100, %cst_83 {dimension_numbers = #tpu.dot_dimension_numbers<[1], [0], [0], [1], [0, 0, 1, 1], [], []>} : vector<2x32xf32>, vector<32x128xf32>, vector<2x128xf32> -> vector<2x128xf32>
    %cst_84 = arith.constant dense<0.000000e+00> : vector<2x128xf32>
    %313 = tpu.matmul %282, %101, %cst_84 {dimension_numbers = #tpu.dot_dimension_numbers<[1], [0], [0], [1], [0, 0, 1, 1], [], []>} : vector<2x32xf32>, vector<32x128xf32>, vector<2x128xf32> -> vector<2x128xf32>
    %314 = arith.addf %312, %313 : vector<2x128xf32>
    %315 = arith.addf %314, %104 : vector<2x128xf32>
    %316 = vector.extract_strided_slice %315 {offsets = [0, 0], sizes = [2, 32], strides = [1, 1]} : vector<2x128xf32> to vector<2x32xf32>
    %317 = arith.negf %316 : vector<2x32xf32>
    %318 = math.exp %317 : vector<2x32xf32>
    %cst_85 = arith.constant 1.000000e+00 : f32
    %319 = vector.broadcast %cst_85 : f32 to vector<2x32xf32>
    %320 = arith.addf %319, %318 : vector<2x32xf32>
    %321 = arith.divf %319, %320 : vector<2x32xf32>
    %322 = vector.extract_strided_slice %315 {offsets = [0, 32], sizes = [2, 32], strides = [1, 1]} : vector<2x128xf32> to vector<2x32xf32>
    %323 = arith.negf %322 : vector<2x32xf32>
    %324 = math.exp %323 : vector<2x32xf32>
    %cst_86 = arith.constant 1.000000e+00 : f32
    %325 = vector.broadcast %cst_86 : f32 to vector<2x32xf32>
    %326 = arith.addf %325, %324 : vector<2x32xf32>
    %327 = arith.divf %325, %326 : vector<2x32xf32>
    %328 = vector.extract_strided_slice %315 {offsets = [0, 64], sizes = [2, 32], strides = [1, 1]} : vector<2x128xf32> to vector<2x32xf32>
    %329 = math.tanh %328 : vector<2x32xf32>
    %330 = vector.extract_strided_slice %315 {offsets = [0, 96], sizes = [2, 32], strides = [1, 1]} : vector<2x128xf32> to vector<2x32xf32>
    %331 = arith.negf %330 : vector<2x32xf32>
    %332 = math.exp %331 : vector<2x32xf32>
    %cst_87 = arith.constant 1.000000e+00 : f32
    %333 = vector.broadcast %cst_87 : f32 to vector<2x32xf32>
    %334 = arith.addf %333, %332 : vector<2x32xf32>
    %335 = arith.divf %333, %334 : vector<2x32xf32>
    %336 = arith.mulf %327, %280 : vector<2x32xf32>
    %337 = arith.mulf %321, %329 : vector<2x32xf32>
    %338 = arith.addf %336, %337 : vector<2x32xf32>
    %339 = math.tanh %338 : vector<2x32xf32>
    %340 = arith.mulf %335, %339 : vector<2x32xf32>
    %341 = vector.extract_strided_slice %98 {offsets = [0, 4, 0], sizes = [2, 1, 128], strides = [1, 1, 1]} : vector<2x8x128xf32> to vector<2x1x128xf32>
    %342 = vector.shape_cast %341 : vector<2x1x128xf32> to vector<2x128xf32>
    %cst_88 = arith.constant dense<0.000000e+00> : vector<2x128xf32>
    %343 = tpu.matmul %311, %99, %cst_88 {dimension_numbers = #tpu.dot_dimension_numbers<[1], [0], [0], [1], [0, 0, 1, 1], [], []>} : vector<2x32xf32>, vector<32x128xf32>, vector<2x128xf32> -> vector<2x128xf32>
    %344 = arith.addf %342, %343 : vector<2x128xf32>
    %345 = vector.extract_strided_slice %344 {offsets = [0, 0], sizes = [2, 32], strides = [1, 1]} : vector<2x128xf32> to vector<2x32xf32>
    %346 = arith.negf %345 : vector<2x32xf32>
    %347 = math.exp %346 : vector<2x32xf32>
    %cst_89 = arith.constant 1.000000e+00 : f32
    %348 = vector.broadcast %cst_89 : f32 to vector<2x32xf32>
    %349 = arith.addf %348, %347 : vector<2x32xf32>
    %350 = arith.divf %348, %349 : vector<2x32xf32>
    %351 = vector.extract_strided_slice %344 {offsets = [0, 32], sizes = [2, 32], strides = [1, 1]} : vector<2x128xf32> to vector<2x32xf32>
    %352 = arith.negf %351 : vector<2x32xf32>
    %353 = math.exp %352 : vector<2x32xf32>
    %cst_90 = arith.constant 1.000000e+00 : f32
    %354 = vector.broadcast %cst_90 : f32 to vector<2x32xf32>
    %355 = arith.addf %354, %353 : vector<2x32xf32>
    %356 = arith.divf %354, %355 : vector<2x32xf32>
    %357 = vector.extract_strided_slice %344 {offsets = [0, 64], sizes = [2, 32], strides = [1, 1]} : vector<2x128xf32> to vector<2x32xf32>
    %358 = math.tanh %357 : vector<2x32xf32>
    %359 = vector.extract_strided_slice %344 {offsets = [0, 96], sizes = [2, 32], strides = [1, 1]} : vector<2x128xf32> to vector<2x32xf32>
    %360 = arith.negf %359 : vector<2x32xf32>
    %361 = math.exp %360 : vector<2x32xf32>
    %cst_91 = arith.constant 1.000000e+00 : f32
    %362 = vector.broadcast %cst_91 : f32 to vector<2x32xf32>
    %363 = arith.addf %362, %361 : vector<2x32xf32>
    %364 = arith.divf %362, %363 : vector<2x32xf32>
    %365 = arith.mulf %356, %309 : vector<2x32xf32>
    %366 = arith.mulf %350, %358 : vector<2x32xf32>
    %367 = arith.addf %365, %366 : vector<2x32xf32>
    %368 = math.tanh %367 : vector<2x32xf32>
    %369 = arith.mulf %364, %368 : vector<2x32xf32>
    %cst_92 = arith.constant dense<0.000000e+00> : vector<2x128xf32>
    %370 = tpu.matmul %369, %100, %cst_92 {dimension_numbers = #tpu.dot_dimension_numbers<[1], [0], [0], [1], [0, 0, 1, 1], [], []>} : vector<2x32xf32>, vector<32x128xf32>, vector<2x128xf32> -> vector<2x128xf32>
    %cst_93 = arith.constant dense<0.000000e+00> : vector<2x128xf32>
    %371 = tpu.matmul %340, %101, %cst_93 {dimension_numbers = #tpu.dot_dimension_numbers<[1], [0], [0], [1], [0, 0, 1, 1], [], []>} : vector<2x32xf32>, vector<32x128xf32>, vector<2x128xf32> -> vector<2x128xf32>
    %372 = arith.addf %370, %371 : vector<2x128xf32>
    %373 = arith.addf %372, %104 : vector<2x128xf32>
    %374 = vector.extract_strided_slice %373 {offsets = [0, 0], sizes = [2, 32], strides = [1, 1]} : vector<2x128xf32> to vector<2x32xf32>
    %375 = arith.negf %374 : vector<2x32xf32>
    %376 = math.exp %375 : vector<2x32xf32>
    %cst_94 = arith.constant 1.000000e+00 : f32
    %377 = vector.broadcast %cst_94 : f32 to vector<2x32xf32>
    %378 = arith.addf %377, %376 : vector<2x32xf32>
    %379 = arith.divf %377, %378 : vector<2x32xf32>
    %380 = vector.extract_strided_slice %373 {offsets = [0, 32], sizes = [2, 32], strides = [1, 1]} : vector<2x128xf32> to vector<2x32xf32>
    %381 = arith.negf %380 : vector<2x32xf32>
    %382 = math.exp %381 : vector<2x32xf32>
    %cst_95 = arith.constant 1.000000e+00 : f32
    %383 = vector.broadcast %cst_95 : f32 to vector<2x32xf32>
    %384 = arith.addf %383, %382 : vector<2x32xf32>
    %385 = arith.divf %383, %384 : vector<2x32xf32>
    %386 = vector.extract_strided_slice %373 {offsets = [0, 64], sizes = [2, 32], strides = [1, 1]} : vector<2x128xf32> to vector<2x32xf32>
    %387 = math.tanh %386 : vector<2x32xf32>
    %388 = vector.extract_strided_slice %373 {offsets = [0, 96], sizes = [2, 32], strides = [1, 1]} : vector<2x128xf32> to vector<2x32xf32>
    %389 = arith.negf %388 : vector<2x32xf32>
    %390 = math.exp %389 : vector<2x32xf32>
    %cst_96 = arith.constant 1.000000e+00 : f32
    %391 = vector.broadcast %cst_96 : f32 to vector<2x32xf32>
    %392 = arith.addf %391, %390 : vector<2x32xf32>
    %393 = arith.divf %391, %392 : vector<2x32xf32>
    %394 = arith.mulf %385, %338 : vector<2x32xf32>
    %395 = arith.mulf %379, %387 : vector<2x32xf32>
    %396 = arith.addf %394, %395 : vector<2x32xf32>
    %397 = math.tanh %396 : vector<2x32xf32>
    %398 = arith.mulf %393, %397 : vector<2x32xf32>
    %399 = vector.extract_strided_slice %98 {offsets = [0, 5, 0], sizes = [2, 1, 128], strides = [1, 1, 1]} : vector<2x8x128xf32> to vector<2x1x128xf32>
    %400 = vector.shape_cast %399 : vector<2x1x128xf32> to vector<2x128xf32>
    %cst_97 = arith.constant dense<0.000000e+00> : vector<2x128xf32>
    %401 = tpu.matmul %369, %99, %cst_97 {dimension_numbers = #tpu.dot_dimension_numbers<[1], [0], [0], [1], [0, 0, 1, 1], [], []>} : vector<2x32xf32>, vector<32x128xf32>, vector<2x128xf32> -> vector<2x128xf32>
    %402 = arith.addf %400, %401 : vector<2x128xf32>
    %403 = vector.extract_strided_slice %402 {offsets = [0, 0], sizes = [2, 32], strides = [1, 1]} : vector<2x128xf32> to vector<2x32xf32>
    %404 = arith.negf %403 : vector<2x32xf32>
    %405 = math.exp %404 : vector<2x32xf32>
    %cst_98 = arith.constant 1.000000e+00 : f32
    %406 = vector.broadcast %cst_98 : f32 to vector<2x32xf32>
    %407 = arith.addf %406, %405 : vector<2x32xf32>
    %408 = arith.divf %406, %407 : vector<2x32xf32>
    %409 = vector.extract_strided_slice %402 {offsets = [0, 32], sizes = [2, 32], strides = [1, 1]} : vector<2x128xf32> to vector<2x32xf32>
    %410 = arith.negf %409 : vector<2x32xf32>
    %411 = math.exp %410 : vector<2x32xf32>
    %cst_99 = arith.constant 1.000000e+00 : f32
    %412 = vector.broadcast %cst_99 : f32 to vector<2x32xf32>
    %413 = arith.addf %412, %411 : vector<2x32xf32>
    %414 = arith.divf %412, %413 : vector<2x32xf32>
    %415 = vector.extract_strided_slice %402 {offsets = [0, 64], sizes = [2, 32], strides = [1, 1]} : vector<2x128xf32> to vector<2x32xf32>
    %416 = math.tanh %415 : vector<2x32xf32>
    %417 = vector.extract_strided_slice %402 {offsets = [0, 96], sizes = [2, 32], strides = [1, 1]} : vector<2x128xf32> to vector<2x32xf32>
    %418 = arith.negf %417 : vector<2x32xf32>
    %419 = math.exp %418 : vector<2x32xf32>
    %cst_100 = arith.constant 1.000000e+00 : f32
    %420 = vector.broadcast %cst_100 : f32 to vector<2x32xf32>
    %421 = arith.addf %420, %419 : vector<2x32xf32>
    %422 = arith.divf %420, %421 : vector<2x32xf32>
    %423 = arith.mulf %414, %367 : vector<2x32xf32>
    %424 = arith.mulf %408, %416 : vector<2x32xf32>
    %425 = arith.addf %423, %424 : vector<2x32xf32>
    %426 = math.tanh %425 : vector<2x32xf32>
    %427 = arith.mulf %422, %426 : vector<2x32xf32>
    %cst_101 = arith.constant dense<0.000000e+00> : vector<2x128xf32>
    %428 = tpu.matmul %427, %100, %cst_101 {dimension_numbers = #tpu.dot_dimension_numbers<[1], [0], [0], [1], [0, 0, 1, 1], [], []>} : vector<2x32xf32>, vector<32x128xf32>, vector<2x128xf32> -> vector<2x128xf32>
    %cst_102 = arith.constant dense<0.000000e+00> : vector<2x128xf32>
    %429 = tpu.matmul %398, %101, %cst_102 {dimension_numbers = #tpu.dot_dimension_numbers<[1], [0], [0], [1], [0, 0, 1, 1], [], []>} : vector<2x32xf32>, vector<32x128xf32>, vector<2x128xf32> -> vector<2x128xf32>
    %430 = arith.addf %428, %429 : vector<2x128xf32>
    %431 = arith.addf %430, %104 : vector<2x128xf32>
    %432 = vector.extract_strided_slice %431 {offsets = [0, 0], sizes = [2, 32], strides = [1, 1]} : vector<2x128xf32> to vector<2x32xf32>
    %433 = arith.negf %432 : vector<2x32xf32>
    %434 = math.exp %433 : vector<2x32xf32>
    %cst_103 = arith.constant 1.000000e+00 : f32
    %435 = vector.broadcast %cst_103 : f32 to vector<2x32xf32>
    %436 = arith.addf %435, %434 : vector<2x32xf32>
    %437 = arith.divf %435, %436 : vector<2x32xf32>
    %438 = vector.extract_strided_slice %431 {offsets = [0, 32], sizes = [2, 32], strides = [1, 1]} : vector<2x128xf32> to vector<2x32xf32>
    %439 = arith.negf %438 : vector<2x32xf32>
    %440 = math.exp %439 : vector<2x32xf32>
    %cst_104 = arith.constant 1.000000e+00 : f32
    %441 = vector.broadcast %cst_104 : f32 to vector<2x32xf32>
    %442 = arith.addf %441, %440 : vector<2x32xf32>
    %443 = arith.divf %441, %442 : vector<2x32xf32>
    %444 = vector.extract_strided_slice %431 {offsets = [0, 64], sizes = [2, 32], strides = [1, 1]} : vector<2x128xf32> to vector<2x32xf32>
    %445 = math.tanh %444 : vector<2x32xf32>
    %446 = vector.extract_strided_slice %431 {offsets = [0, 96], sizes = [2, 32], strides = [1, 1]} : vector<2x128xf32> to vector<2x32xf32>
    %447 = arith.negf %446 : vector<2x32xf32>
    %448 = math.exp %447 : vector<2x32xf32>
    %cst_105 = arith.constant 1.000000e+00 : f32
    %449 = vector.broadcast %cst_105 : f32 to vector<2x32xf32>
    %450 = arith.addf %449, %448 : vector<2x32xf32>
    %451 = arith.divf %449, %450 : vector<2x32xf32>
    %452 = arith.mulf %443, %396 : vector<2x32xf32>
    %453 = arith.mulf %437, %445 : vector<2x32xf32>
    %454 = arith.addf %452, %453 : vector<2x32xf32>
    %455 = math.tanh %454 : vector<2x32xf32>
    %456 = arith.mulf %451, %455 : vector<2x32xf32>
    %457 = vector.extract_strided_slice %98 {offsets = [0, 6, 0], sizes = [2, 1, 128], strides = [1, 1, 1]} : vector<2x8x128xf32> to vector<2x1x128xf32>
    %458 = vector.shape_cast %457 : vector<2x1x128xf32> to vector<2x128xf32>
    %cst_106 = arith.constant dense<0.000000e+00> : vector<2x128xf32>
    %459 = tpu.matmul %427, %99, %cst_106 {dimension_numbers = #tpu.dot_dimension_numbers<[1], [0], [0], [1], [0, 0, 1, 1], [], []>} : vector<2x32xf32>, vector<32x128xf32>, vector<2x128xf32> -> vector<2x128xf32>
    %460 = arith.addf %458, %459 : vector<2x128xf32>
    %461 = vector.extract_strided_slice %460 {offsets = [0, 0], sizes = [2, 32], strides = [1, 1]} : vector<2x128xf32> to vector<2x32xf32>
    %462 = arith.negf %461 : vector<2x32xf32>
    %463 = math.exp %462 : vector<2x32xf32>
    %cst_107 = arith.constant 1.000000e+00 : f32
    %464 = vector.broadcast %cst_107 : f32 to vector<2x32xf32>
    %465 = arith.addf %464, %463 : vector<2x32xf32>
    %466 = arith.divf %464, %465 : vector<2x32xf32>
    %467 = vector.extract_strided_slice %460 {offsets = [0, 32], sizes = [2, 32], strides = [1, 1]} : vector<2x128xf32> to vector<2x32xf32>
    %468 = arith.negf %467 : vector<2x32xf32>
    %469 = math.exp %468 : vector<2x32xf32>
    %cst_108 = arith.constant 1.000000e+00 : f32
    %470 = vector.broadcast %cst_108 : f32 to vector<2x32xf32>
    %471 = arith.addf %470, %469 : vector<2x32xf32>
    %472 = arith.divf %470, %471 : vector<2x32xf32>
    %473 = vector.extract_strided_slice %460 {offsets = [0, 64], sizes = [2, 32], strides = [1, 1]} : vector<2x128xf32> to vector<2x32xf32>
    %474 = math.tanh %473 : vector<2x32xf32>
    %475 = vector.extract_strided_slice %460 {offsets = [0, 96], sizes = [2, 32], strides = [1, 1]} : vector<2x128xf32> to vector<2x32xf32>
    %476 = arith.negf %475 : vector<2x32xf32>
    %477 = math.exp %476 : vector<2x32xf32>
    %cst_109 = arith.constant 1.000000e+00 : f32
    %478 = vector.broadcast %cst_109 : f32 to vector<2x32xf32>
    %479 = arith.addf %478, %477 : vector<2x32xf32>
    %480 = arith.divf %478, %479 : vector<2x32xf32>
    %481 = arith.mulf %472, %425 : vector<2x32xf32>
    %482 = arith.mulf %466, %474 : vector<2x32xf32>
    %483 = arith.addf %481, %482 : vector<2x32xf32>
    %484 = math.tanh %483 : vector<2x32xf32>
    %485 = arith.mulf %480, %484 : vector<2x32xf32>
    %cst_110 = arith.constant dense<0.000000e+00> : vector<2x128xf32>
    %486 = tpu.matmul %485, %100, %cst_110 {dimension_numbers = #tpu.dot_dimension_numbers<[1], [0], [0], [1], [0, 0, 1, 1], [], []>} : vector<2x32xf32>, vector<32x128xf32>, vector<2x128xf32> -> vector<2x128xf32>
    %cst_111 = arith.constant dense<0.000000e+00> : vector<2x128xf32>
    %487 = tpu.matmul %456, %101, %cst_111 {dimension_numbers = #tpu.dot_dimension_numbers<[1], [0], [0], [1], [0, 0, 1, 1], [], []>} : vector<2x32xf32>, vector<32x128xf32>, vector<2x128xf32> -> vector<2x128xf32>
    %488 = arith.addf %486, %487 : vector<2x128xf32>
    %489 = arith.addf %488, %104 : vector<2x128xf32>
    %490 = vector.extract_strided_slice %489 {offsets = [0, 0], sizes = [2, 32], strides = [1, 1]} : vector<2x128xf32> to vector<2x32xf32>
    %491 = arith.negf %490 : vector<2x32xf32>
    %492 = math.exp %491 : vector<2x32xf32>
    %cst_112 = arith.constant 1.000000e+00 : f32
    %493 = vector.broadcast %cst_112 : f32 to vector<2x32xf32>
    %494 = arith.addf %493, %492 : vector<2x32xf32>
    %495 = arith.divf %493, %494 : vector<2x32xf32>
    %496 = vector.extract_strided_slice %489 {offsets = [0, 32], sizes = [2, 32], strides = [1, 1]} : vector<2x128xf32> to vector<2x32xf32>
    %497 = arith.negf %496 : vector<2x32xf32>
    %498 = math.exp %497 : vector<2x32xf32>
    %cst_113 = arith.constant 1.000000e+00 : f32
    %499 = vector.broadcast %cst_113 : f32 to vector<2x32xf32>
    %500 = arith.addf %499, %498 : vector<2x32xf32>
    %501 = arith.divf %499, %500 : vector<2x32xf32>
    %502 = vector.extract_strided_slice %489 {offsets = [0, 64], sizes = [2, 32], strides = [1, 1]} : vector<2x128xf32> to vector<2x32xf32>
    %503 = math.tanh %502 : vector<2x32xf32>
    %504 = vector.extract_strided_slice %489 {offsets = [0, 96], sizes = [2, 32], strides = [1, 1]} : vector<2x128xf32> to vector<2x32xf32>
    %505 = arith.negf %504 : vector<2x32xf32>
    %506 = math.exp %505 : vector<2x32xf32>
    %cst_114 = arith.constant 1.000000e+00 : f32
    %507 = vector.broadcast %cst_114 : f32 to vector<2x32xf32>
    %508 = arith.addf %507, %506 : vector<2x32xf32>
    %509 = arith.divf %507, %508 : vector<2x32xf32>
    %510 = arith.mulf %501, %454 : vector<2x32xf32>
    %511 = arith.mulf %495, %503 : vector<2x32xf32>
    %512 = arith.addf %510, %511 : vector<2x32xf32>
    %513 = math.tanh %512 : vector<2x32xf32>
    %514 = arith.mulf %509, %513 : vector<2x32xf32>
    %515 = vector.extract_strided_slice %98 {offsets = [0, 7, 0], sizes = [2, 1, 128], strides = [1, 1, 1]} : vector<2x8x128xf32> to vector<2x1x128xf32>
    %516 = vector.shape_cast %515 : vector<2x1x128xf32> to vector<2x128xf32>
    %cst_115 = arith.constant dense<0.000000e+00> : vector<2x128xf32>
    %517 = tpu.matmul %485, %99, %cst_115 {dimension_numbers = #tpu.dot_dimension_numbers<[1], [0], [0], [1], [0, 0, 1, 1], [], []>} : vector<2x32xf32>, vector<32x128xf32>, vector<2x128xf32> -> vector<2x128xf32>
    %518 = arith.addf %516, %517 : vector<2x128xf32>
    %519 = vector.extract_strided_slice %518 {offsets = [0, 0], sizes = [2, 32], strides = [1, 1]} : vector<2x128xf32> to vector<2x32xf32>
    %520 = arith.negf %519 : vector<2x32xf32>
    %521 = math.exp %520 : vector<2x32xf32>
    %cst_116 = arith.constant 1.000000e+00 : f32
    %522 = vector.broadcast %cst_116 : f32 to vector<2x32xf32>
    %523 = arith.addf %522, %521 : vector<2x32xf32>
    %524 = arith.divf %522, %523 : vector<2x32xf32>
    %525 = vector.extract_strided_slice %518 {offsets = [0, 32], sizes = [2, 32], strides = [1, 1]} : vector<2x128xf32> to vector<2x32xf32>
    %526 = arith.negf %525 : vector<2x32xf32>
    %527 = math.exp %526 : vector<2x32xf32>
    %cst_117 = arith.constant 1.000000e+00 : f32
    %528 = vector.broadcast %cst_117 : f32 to vector<2x32xf32>
    %529 = arith.addf %528, %527 : vector<2x32xf32>
    %530 = arith.divf %528, %529 : vector<2x32xf32>
    %531 = vector.extract_strided_slice %518 {offsets = [0, 64], sizes = [2, 32], strides = [1, 1]} : vector<2x128xf32> to vector<2x32xf32>
    %532 = math.tanh %531 : vector<2x32xf32>
    %533 = vector.extract_strided_slice %518 {offsets = [0, 96], sizes = [2, 32], strides = [1, 1]} : vector<2x128xf32> to vector<2x32xf32>
    %534 = arith.negf %533 : vector<2x32xf32>
    %535 = math.exp %534 : vector<2x32xf32>
    %cst_118 = arith.constant 1.000000e+00 : f32
    %536 = vector.broadcast %cst_118 : f32 to vector<2x32xf32>
    %537 = arith.addf %536, %535 : vector<2x32xf32>
    %538 = arith.divf %536, %537 : vector<2x32xf32>
    %539 = arith.mulf %530, %483 : vector<2x32xf32>
    %540 = arith.mulf %524, %532 : vector<2x32xf32>
    %541 = arith.addf %539, %540 : vector<2x32xf32>
    %542 = math.tanh %541 : vector<2x32xf32>
    %543 = arith.mulf %538, %542 : vector<2x32xf32>
    %cst_119 = arith.constant dense<0.000000e+00> : vector<2x128xf32>
    %544 = tpu.matmul %543, %100, %cst_119 {dimension_numbers = #tpu.dot_dimension_numbers<[1], [0], [0], [1], [0, 0, 1, 1], [], []>} : vector<2x32xf32>, vector<32x128xf32>, vector<2x128xf32> -> vector<2x128xf32>
    %cst_120 = arith.constant dense<0.000000e+00> : vector<2x128xf32>
    %545 = tpu.matmul %514, %101, %cst_120 {dimension_numbers = #tpu.dot_dimension_numbers<[1], [0], [0], [1], [0, 0, 1, 1], [], []>} : vector<2x32xf32>, vector<32x128xf32>, vector<2x128xf32> -> vector<2x128xf32>
    %546 = arith.addf %544, %545 : vector<2x128xf32>
    %547 = arith.addf %546, %104 : vector<2x128xf32>
    %548 = vector.extract_strided_slice %547 {offsets = [0, 0], sizes = [2, 32], strides = [1, 1]} : vector<2x128xf32> to vector<2x32xf32>
    %549 = arith.negf %548 : vector<2x32xf32>
    %550 = math.exp %549 : vector<2x32xf32>
    %cst_121 = arith.constant 1.000000e+00 : f32
    %551 = vector.broadcast %cst_121 : f32 to vector<2x32xf32>
    %552 = arith.addf %551, %550 : vector<2x32xf32>
    %553 = arith.divf %551, %552 : vector<2x32xf32>
    %554 = vector.extract_strided_slice %547 {offsets = [0, 32], sizes = [2, 32], strides = [1, 1]} : vector<2x128xf32> to vector<2x32xf32>
    %555 = arith.negf %554 : vector<2x32xf32>
    %556 = math.exp %555 : vector<2x32xf32>
    %cst_122 = arith.constant 1.000000e+00 : f32
    %557 = vector.broadcast %cst_122 : f32 to vector<2x32xf32>
    %558 = arith.addf %557, %556 : vector<2x32xf32>
    %559 = arith.divf %557, %558 : vector<2x32xf32>
    %560 = vector.extract_strided_slice %547 {offsets = [0, 64], sizes = [2, 32], strides = [1, 1]} : vector<2x128xf32> to vector<2x32xf32>
    %561 = math.tanh %560 : vector<2x32xf32>
    %562 = vector.extract_strided_slice %547 {offsets = [0, 96], sizes = [2, 32], strides = [1, 1]} : vector<2x128xf32> to vector<2x32xf32>
    %563 = arith.negf %562 : vector<2x32xf32>
    %564 = math.exp %563 : vector<2x32xf32>
    %cst_123 = arith.constant 1.000000e+00 : f32
    %565 = vector.broadcast %cst_123 : f32 to vector<2x32xf32>
    %566 = arith.addf %565, %564 : vector<2x32xf32>
    %567 = arith.divf %565, %566 : vector<2x32xf32>
    %568 = arith.mulf %559, %512 : vector<2x32xf32>
    %569 = arith.mulf %553, %561 : vector<2x32xf32>
    %570 = arith.addf %568, %569 : vector<2x32xf32>
    %571 = math.tanh %570 : vector<2x32xf32>
    %572 = arith.mulf %567, %571 : vector<2x32xf32>
    %c0_124 = arith.constant 0 : index
    %c0_125 = arith.constant 0 : index
    %573 = vector.load %arg14[%c0_124, %c0_125] : memref<32x1xf32, #tpu.memory_space<vmem>>, vector<32x1xf32>
    %cst_126 = arith.constant dense<0.000000e+00> : vector<2x1xf32>
    %574 = tpu.matmul %572, %573, %cst_126 {dimension_numbers = #tpu.dot_dimension_numbers<[1], [0], [0], [1], [0, 0, 1, 1], [], []>} : vector<2x32xf32>, vector<32x1xf32>, vector<2x1xf32> -> vector<2x1xf32>
    %c0_127 = arith.constant 0 : index
    %c0_128 = arith.constant 0 : index
    %575 = vector.load %arg15[%c0_127, %c0_128] : memref<1x1xf32, #tpu.memory_space<vmem>>, vector<1x1xf32>
    %576 = vector.broadcast %575 : vector<1x1xf32> to vector<2x1xf32>
    %577 = arith.addf %574, %576 : vector<2x1xf32>
    %578 = arith.negf %577 : vector<2x1xf32>
    %579 = math.exp %578 : vector<2x1xf32>
    %cst_129 = arith.constant 1.000000e+00 : f32
    %580 = vector.broadcast %cst_129 : f32 to vector<2x1xf32>
    %581 = arith.addf %580, %579 : vector<2x1xf32>
    %582 = arith.divf %580, %581 : vector<2x1xf32>
    %c0_130 = arith.constant 0 : index
    %c0_131 = arith.constant 0 : index
    %583 = vector.load %arg16[%c0_130, %c0_131] : memref<2x1xf32, #tpu.memory_space<vmem>>, vector<2x1xf32>
    tpu.vector_store %arg16[%c0_130, %c0_131], %582 {strides = array<i32>} : memref<2x1xf32, #tpu.memory_space<vmem>>, vector<2x1xf32>,
    return
  }
  func.func @transform_0(%arg0: i32) -> (i32, i32, i32) {
    %c0_i32 = arith.constant 0 : i32
    %c0_i32_0 = arith.constant 0 : i32
    %c0_i32_1 = arith.constant 0 : i32
    return %arg0, %c0_i32, %c0_i32_0 : i32, i32, i32
  }
  func.func @transform_1(%arg0: i32) -> (i32, i32) {
    %c0_i32 = arith.constant 0 : i32
    %c0_i32_0 = arith.constant 0 : i32
    %c0_i32_1 = arith.constant 0 : i32
    return %c0_i32, %c0_i32_0 : i32, i32
  }
  func.func @transform_2(%arg0: i32) -> (i32, i32) {
    %c0_i32 = arith.constant 0 : i32
    %c0_i32_0 = arith.constant 0 : i32
    %c0_i32_1 = arith.constant 0 : i32
    return %c0_i32, %c0_i32_0 : i32, i32
  }
  func.func @transform_3(%arg0: i32) -> (i32, i32) {
    %c0_i32 = arith.constant 0 : i32
    %c0_i32_0 = arith.constant 0 : i32
    %c0_i32_1 = arith.constant 0 : i32
    return %c0_i32, %c0_i32_0 : i32, i32
  }
  func.func @transform_4(%arg0: i32) -> (i32, i32) {
    %c0_i32 = arith.constant 0 : i32
    %c0_i32_0 = arith.constant 0 : i32
    %c0_i32_1 = arith.constant 0 : i32
    return %c0_i32, %c0_i32_0 : i32, i32
  }
  func.func @transform_5(%arg0: i32) -> (i32, i32) {
    %c0_i32 = arith.constant 0 : i32
    %c0_i32_0 = arith.constant 0 : i32
    %c0_i32_1 = arith.constant 0 : i32
    return %c0_i32, %c0_i32_0 : i32, i32
  }
  func.func @transform_6(%arg0: i32) -> (i32, i32) {
    %c0_i32 = arith.constant 0 : i32
    %c0_i32_0 = arith.constant 0 : i32
    %c0_i32_1 = arith.constant 0 : i32
    return %c0_i32, %c0_i32_0 : i32, i32
  }
  func.func @transform_7(%arg0: i32) -> (i32, i32) {
    %c0_i32 = arith.constant 0 : i32
    %c0_i32_0 = arith.constant 0 : i32
    %c0_i32_1 = arith.constant 0 : i32
    return %c0_i32, %c0_i32_0 : i32, i32
  }
  func.func @transform_8(%arg0: i32) -> (i32, i32) {
    %c0_i32 = arith.constant 0 : i32
    %c0_i32_0 = arith.constant 0 : i32
    %c0_i32_1 = arith.constant 0 : i32
    return %c0_i32, %c0_i32_0 : i32, i32
  }
  func.func @transform_9(%arg0: i32) -> (i32, i32) {
    %c0_i32 = arith.constant 0 : i32
    %c0_i32_0 = arith.constant 0 : i32
    %c0_i32_1 = arith.constant 0 : i32
    return %c0_i32, %c0_i32_0 : i32, i32
  }
  func.func @transform_10(%arg0: i32) -> (i32, i32) {
    %c0_i32 = arith.constant 0 : i32
    %c0_i32_0 = arith.constant 0 : i32
    %c0_i32_1 = arith.constant 0 : i32
    return %c0_i32, %c0_i32_0 : i32, i32
  }
  func.func @transform_11(%arg0: i32) -> (i32, i32) {
    %c0_i32 = arith.constant 0 : i32
    %c0_i32_0 = arith.constant 0 : i32
    %c0_i32_1 = arith.constant 0 : i32
    return %c0_i32, %c0_i32_0 : i32, i32
  }
  func.func @transform_12(%arg0: i32) -> (i32, i32) {
    %c0_i32 = arith.constant 0 : i32
    %c0_i32_0 = arith.constant 0 : i32
    %c0_i32_1 = arith.constant 0 : i32
    return %c0_i32, %c0_i32_0 : i32, i32
  }
  func.func @transform_13(%arg0: i32) -> (i32, i32) {
    %c0_i32 = arith.constant 0 : i32
    %c0_i32_0 = arith.constant 0 : i32
    %c0_i32_1 = arith.constant 0 : i32
    return %c0_i32, %c0_i32_0 : i32, i32
  }
  func.func @transform_14(%arg0: i32) -> (i32, i32) {
    %c0_i32 = arith.constant 0 : i32
    %c0_i32_0 = arith.constant 0 : i32
    %c0_i32_1 = arith.constant 0 : i32
    return %c0_i32, %c0_i32_0 : i32, i32
  }
  func.func @transform_15(%arg0: i32) -> (i32, i32) {
    %c0_i32 = arith.constant 0 : i32
    %c0_i32_0 = arith.constant 0 : i32
    return %arg0, %c0_i32 : i32, i32
  }
}

</mosaic_0001>

<bundles_post_ra>
// kernel: tpu_custom_call.1
= control target key start
LH: loop header
LB: loop body
LE: loop exit
PB: predicated region body
PF: predicated region fallthrough
CT: control target
= control target key end

     0   :  { %s3884_s0 = inlined_call_operand.hbm [shape: f32[2,8,16], index: 0, kind: input, shape index: {}]   ;;  %s3885_s1 = inlined_call_operand.hbm [shape: f32[16,32], index: 1, kind: input, shape index: {}]   ;;  %s3886_s2 = inlined_call_operand.vmem [shape: f32[1,32], index: 2, kind: input, shape index: {}]   ;;  %s3887_s3 = inlined_call_operand.vmem [shape: f32[32,96], index: 3, kind: input, shape index: {}]   ;;  %s3888_s4 = inlined_call_operand.vmem [shape: f32[1,96], index: 4, kind: input, shape index: {}]   ;;  %s3889_s5 = inlined_call_operand.hbm [shape: f32[32,32], index: 5, kind: input, shape index: {}]   ;;  %s3890_s6 = inlined_call_operand.vmem [shape: f32[1,32], index: 6, kind: input, shape index: {}]   ;;  %s3891_s7 = inlined_call_operand.hbm [shape: f32[32,128], index: 7, kind: input, shape index: {}]   ;;  %s3892_s8 = inlined_call_operand.hbm [shape: f32[32,128], index: 8, kind: input, shape index: {}]   ;;  %s3893_s9 = inlined_call_operand.vmem [shape: f32[1,128], index: 9, kind: input, shape index: {}]   ;;  %s3894_s10 = inlined_call_operand.hbm [shape: f32[32,128], index: 10, kind: input, shape index: {}]   ;;  %s3895_s11 = inlined_call_operand.hbm [shape: f32[32,128], index: 11, kind: input, shape index: {}]   ;;  %s3896_s12 = inlined_call_operand.vmem [shape: f32[1,128], index: 12, kind: input, shape index: {}]   ;;  %s3897_s13 = inlined_call_operand.vmem [shape: f32[32,1], index: 13, kind: input, shape index: {}]   ;;  %s3898_s14 = inlined_call_operand.<no memory space> [shape: f32[1,1], index: 14, kind: input, shape index: {}]   ;;  %s3899_s15 = inlined_call_operand.vmem [shape: f32[2,1], index: 15, kind: output, shape index: {}]  }
   0x1   :  { %v20_v0 = vstv %s3898_s14 }
   0x2   :  { %21 = vst [vmem:[#allocation2] sm:$0x1] %v20_v0 }
   0x3   :  { %22 = vsyncpa [#allocation4], 0 }
   0x4   :  { %23 = vsyncpa [#allocation6], 0 }
   0x5   :  { %24 = vsyncpa [#allocation9], 0 }
   0x6   :  { %25 = vsyncpa [#allocation12], 0  ;;  %s43_s22 = sshll.u32 %s3885_s1, 4  ;;  %s3224_s23 = smov [#allocation5]   ;;  %s44_s22 = int_to_ptr.hbm [resolvable:$true] %s43_s22 }
   0x7   :  { %s45_s24 = sshll.u32 %s3224_s23, 4  ;;  %s77_s27 = sshll.u32 %s3891_s7, 4  ;;  %s46_s24 = int_to_ptr.vmem [resolvable:$true] %s45_s24  ;;  %s78_s27 = int_to_ptr.hbm [resolvable:$true] %s77_s27 }
   0x8   :  { %s3225_s28 = smov 128   ;;  %s3226_s29 = smov 8  }
   0x9   :  { %51 = dma.hbm_to_vmem [thread:$0]  %s44_s22, 256, %s46_s24, [#allocation6], %s3225_s28, %s3225_s28, %s3226_s29  }
   0xa   :  { %s3227_s14 = smov [#allocation8]   ;;  %s105_s1 = sshll.u32 %s3894_s10, 4  ;;  %s106_s1 = int_to_ptr.hbm [resolvable:$true] %s105_s1 }
   0xb   :  { %s79_s30 = sshll.u32 %s3227_s14, 4  ;;  %s30_s19 = sshll.u32 %s3884_s0, 4  ;;  %s80_s30 = int_to_ptr.vmem [resolvable:$true] %s79_s30  ;;  %s31_s19 = int_to_ptr.hbm [resolvable:$true] %s30_s19 }
   0xc   :  { %85 = dma.hbm_to_vmem [thread:$0]  %s78_s27, 512, %s80_s30, [#allocation9], %s3225_s28, %s3225_s28, %s3226_s29  }
   0xd   :  { %s3228_s20 = smov [#allocation11]   ;;  %s3229_s22 = smov [#allocation3]  }
   0xe   :  { %s107_s21 = sshll.u32 %s3228_s20, 4  ;;  %s32_s10 = sshll.u32 %s3229_s22, 4  ;;  %s108_s21 = int_to_ptr.vmem [resolvable:$true] %s107_s21  ;;  %s33_s10 = int_to_ptr.vmem [resolvable:$true] %s32_s10 }
   0xf   :  { %113 = dma.hbm_to_vmem [thread:$0]  %s106_s1, 512, %s108_s21, [#allocation12], %s3225_s28, %s3225_s28, %s3226_s29  }
  0x10   :  { %s62_s25 = sshll.u32 %s3889_s5, 4  ;;  %s90_s27 = sshll.u32 %s3892_s8, 4  ;;  %s63_s25 = int_to_ptr.hbm [resolvable:$true] %s62_s25  ;;  %s91_s27 = int_to_ptr.hbm [resolvable:$true] %s90_s27 }
  0x11   :  { %38 = dma.hbm_to_vmem [thread:$0]  %s31_s19, 256, %s33_s10, [#allocation4], %s3225_s28, %s3225_s28, %s3226_s29  }
  0x12   :  { %s3230_s14 = smov [#allocation7]   ;;  %s3231_s16 = smov [#allocation10]  }
  0x13   :  { %s64_s30 = sshll.u32 %s3230_s14, 4  ;;  %s92_s5 = sshll.u32 %s3231_s16, 4  ;;  %s65_s30 = int_to_ptr.vmem [resolvable:$true] %s64_s30  ;;  %s93_s5 = int_to_ptr.vmem [resolvable:$true] %s92_s5 }
  0x14   :  { %70 = dma.hbm_to_vmem [thread:$0]  %s63_s25, 512, %s65_s30, [#allocation6], %s3225_s28, %s3225_s28, %s3226_s29  }
  0x15   :  { %s118_s7 = sshll.u32 %s3895_s11, 4  ;;  %s3232_s8 = smov [#allocation13]   ;;  %s119_s7 = int_to_ptr.hbm [resolvable:$true] %s118_s7 }
  0x16   :  { %98 = dma.hbm_to_vmem [thread:$0]  %s91_s27, 512, %s93_s5, [#allocation9], %s3225_s28, %s3225_s28, %s3226_s29  }
  0x17   :  { %s120_s18 = sshll.u32 %s3232_s8, 4  ;;  %s121_s18 = int_to_ptr.vmem [resolvable:$true] %s120_s18 }
  0x18   :  { %126 = dma.hbm_to_vmem [thread:$0]  %s119_s7, 512, %s121_s18, [#allocation12], %s3225_s28, %s3225_s28, %s3226_s29  }
  0x19   :  { %3216 = dma.done.wait [#allocation4], 256  }
  0x1a   :  { %3217 = vsyncadd [#allocation4], 4294967040 }
  0x1b   :  { %3218 = dma.done.wait [#allocation6], 768  }
  0x1c   :  { %3219 = vsyncadd [#allocation6], 4294966528 }
  0x1d   :  { %3220 = dma.done.wait [#allocation9], 1024  }
  0x1e   :  { %3221 = vsyncadd [#allocation9], 4294966272 }
  0x1f   :  { %3222 = dma.done.wait [#allocation12], 1024  }
  0x20   :  { %3223 = vsyncadd [#allocation12], 4294966272  ;;  %v164_v1 = vld [vmem:[#allocation5 + $0x8] sm:$0xff]  ;;  %v163_v2 = vld [vmem:[#allocation5] sm:$0xff]  ;;  %vm169_vm0 = vcmask 130048   ;;  %vm207_vm1 = vcmask 261120  }
  0x21   :  { %190 = vmatpush.msra.mxu0 %v164_v1  ;;  %v161_v3 = vld [vmem:[#allocation3] sm:$0xff]  ;;  %v202_v4 = vld [vmem:[%s3887_s3 + $0x18] sm:$0xff]  ;;  %v201_v5 = vld [vmem:[%s3887_s3 + $0x10] sm:$0xff]  ;;  %s3235_s26 = smov 88   ;;  %vm248_vm2 = vcmask 64512   ;;  %s3237_s27 = smov 56  }
  0x22   :  { %226 = vmatpush.msra.mxu1 %v202_v4  ;;  %v162_v6 = vld [vmem:[#allocation3 + $0x8] sm:$0xff]  ;;  %v199_v8 = vld [vmem:[%s3887_s3] sm:$0xff]  ;;  %s3238_s14 = smov 80   ;;  %s3239_s30 = smov 112  }
  0x23   :  { %191 = vmatpush.msra.mxu0 %v163_v2  ;;  %v200_v7 = vld [vmem:[%s3887_s3 + $0x8] sm:$0xff]  ;;  %v2801_v9 = vld [vmem:[%s3886_s2] ss:$0 sm:$0xff]  ;;  %s3233_s3 = smov 64   ;;  %s3234_s2 = smov 96  }
  0x24   :  { %2688 = vmatmul.msk.f32.vlgmr.msra.gmra.mxu0 %vm169_vm0, %v161_v3  ;;  %227 = vmatpush.msra.mxu1 %v201_v5  ;;  %v2802_v14 = vld [vmem:[%s3888_s4] ss:$0 sm:$0xff]  ;;  %s3236_s4 = smov 120   ;;  %v237_v52 = vld [vmem:[#allocation7] sm:$0xff]  ;;  %s3240_s16 = smov 48  }
  0x25   :  { %421 = vmatpush.msrb.mxu0 %v237_v52  ;;  %s3241_s5 = smov 72   ;;  %s3242_s17 = smov 104  }
  0x26   :  { %228 = vmatpush.msra.mxu1 %v200_v7  ;;  %s3243_s1 = smov 40  }
  0x28   :  { %229 = vmatpush.msra.mxu1 %v199_v8 }
  0x2c   :  { %2689 = vmatmul.msk.f32.gmra.mxu0 %vm169_vm0, %v162_v6 }
  0xa1   :  { %v193_v10 = vpop.f32.mrf.mxu0 }
  0xa2   :  { %v194_v11 = vadd.f32 %v2801_v9, %v193_v10 }
  0xa4   :  { %2690 = vmatmul.msk.f32.vlgmr.msra.gmra.mxu1 %vm207_vm1, %v194_v11 }
  0xa9   :  { %v196_v12 = vpop.f32.mrf.mxu0 }
  0xaa   :  { %v197_v13 = vadd.f32 %v2801_v9, %v196_v12 }
  0xac   :  { %2691 = vmatmul.msk.f32.gmra.mxu1 %vm207_vm1, %v197_v13 }
 0x121   :  { %v231_v15 = vpop.f32.mrf.mxu1 }
 0x122   :  { %v3391_v16 = vadd.f32 %v2802_v14, %v231_v15 }
 0x124   :  { %348 = vrot.lane.b32.xlu2 %v3391_v16, %s3233_s3  ;;  %246 = vrot.lane.b32.xlu0 %v3391_v16, %s3234_s2 }
 0x129   :  { %v234_v17 = vpop.f32.mrf.mxu1 }
 0x12a   :  { %v3396_v18 = vadd.f32 %v2802_v14, %v234_v17 }
 0x12c   :  { %433 = vrot.lane.b32.xlu2 %v3391_v16, %s3235_s26  ;;  %274 = vrot.lane.b32.xlu0 %v3396_v18, %s3234_s2 }
 0x134   :  { %431 = vrot.lane.b32.xlu0 %v3391_v16, %s3236_s4 }
 0x13c   :  { %374 = vrot.lane.b32.xlu0 %v3396_v18, %s3233_s3 }
 0x144   :  { %459 = vrot.lane.b32.xlu0 %v3396_v18, %s3236_s4 }
 0x17e   :  { %v349_v19 = vpop.permute.xlu2 %348 }
 0x186   :  { %v434_v21 = vpop.permute.xlu2 %433 }
 0x196   :  { %v247_v20 = vpop.permute.xlu0 %246 }
 0x197   :  { %2692 = vmatpush.xpose.msk.msra.mxu2 %vm248_vm2, %v247_v20 }
 0x19a   :  { %2693 = vmatmul.msk.f32.vlgmr.msra.gmra.mxu2 %vm248_vm2, %v3391_v16 }
 0x19b   :  { %369 = vmatpush.msrb.mxu2 %v349_v19 }
 0x19d   :  { %2700 = vmatpush.xpose.msk.msra.mxu2 %vm248_vm2, %v434_v21 }
 0x19e   :  { %v275_v22 = vpop.permute.xlu0 %274 }
 0x19f   :  { %2694 = vmatpush.xpose.msk.msra.mxu3 %vm248_vm2, %v275_v22 }
 0x1a2   :  { %2695 = vmatmul.msk.f32.vlgmr.msra.gmra.mxu3 %vm248_vm2, %v3396_v18 }
 0x1a6   :  { %v432_v23 = vpop.permute.xlu0 %431 }
 0x1ae   :  { %v375_v24 = vpop.permute.xlu0 %374 }
 0x1af   :  { %395 = vmatpush.msrb.mxu3 %v375_v24 }
 0x1b6   :  { %v460_v6 = vpop.permute.xlu0 %459 }
 0x21d   :  { %v270_v25 = vpop.f32.mrf.mxu2 }
 0x21e   :  { %v300_v26 = vsel %vm248_vm2, %v270_v25, -inf }
 0x21f   :  { %301 = vmax.xlane.f32.xlu1 %v300_v26 }
 0x225   :  { %v297_v32 = vpop.f32.mrf.mxu3 }
 0x226   :  { %v303_v33 = vsel %vm248_vm2, %v297_v32, -inf }
 0x292   :  { %v302_v27 = vpop.xlane.xlu1 %301 }
 0x293   :  { %v306_v28 = vsub.f32 %v270_v25, %v302_v27 }
 0x295   :  { %v308_v29 = vmul.f32 1.442695, %v306_v28 }
 0x297   :  { %2807 = vpow2.f32 %v308_v29 }
 0x29d   :  { %v2808_v30 = vpop.eup %2807 }
 0x29e   :  { %v312_v31 = vsel %vm248_vm2, %v2808_v30, 0.0 }
 0x29f   :  { %313 = vadd.xlane.f32.xlu1 %v312_v31 }
 0x2a7   :  { %304 = vmax.xlane.f32.xlu1 %v303_v33 }
 0x2c0   :  { %461 = vrot.lane.b32.xlu1 %v3396_v18, %s3235_s26 }
 0x312   :  { %v314_v34 = vpop.xlane.xlu1 %313 }
 0x313   :  { %2809 = vrcp.f32 %v314_v34  ;;  %v329_v40 = vand.u32 2147483648, %v314_v34  ;;  %v327_v43 = vand.u32 2147483647, %v314_v34  ;;  %vm323_vm4 = vweird.f32 %v314_v34 }
 0x315   :  { %v330_v45 = vor.u32 1.1754944e-38, %v329_v40  ;;  %vm328_vm6 = vcmp.eq.f32.partialorder %v327_v43, 8.507059e+37 }
 0x319   :  { %v2810_v35 = vpop.eup %2809 }
 0x31a   :  { %v319_v36 = vmul.f32 %v2810_v35, %v314_v34  ;;  %v305_v37 = vpop.xlane.xlu1 %304  ;;  %vm324_vm3 = vweird.f32 %v2810_v35 }
 0x31b   :  { %v307_v38 = vsub.f32 %v297_v32, %v305_v37  ;;  %vm325_vm5 = vmor %vm323_vm4, %vm324_vm3 }
 0x31c   :  { %v320_v39 = vsub.f32 1.0, %v319_v36 }
 0x31d   :  { %v310_v41 = vmul.f32 1.442695, %v307_v38 }
 0x31e   :  { %v321_v42 = vmul.f32 %v2810_v35, %v320_v39 }
 0x31f   :  { %2811 = vpow2.f32 %v310_v41 }
 0x320   :  { %v322_v44 = vadd.f32 %v2810_v35, %v321_v42 }
 0x322   :  { %v326_v46 = vsel %vm325_vm5, %v2810_v35, %v322_v44  ;;  %v238_v35 = vld [vmem:[#allocation7 + $0x8] sm:$0xff] }
 0x323   :  { %v331_v47 = vsel %vm328_vm6, %v330_v45, %v326_v46 }
 0x324   :  { %v346_v48 = vmul.f32 %v2808_v30, %v331_v47 }
 0x325   :  { %v2812_v49 = vpop.eup %2811 }
 0x326   :  { %2696 = vmatmul.msk.f32.vlgmr.msrb.gmra.mxu2 %vm248_vm2, %v346_v48  ;;  %v315_v50 = vsel %vm248_vm2, %v2812_v49, 0.0 }
 0x327   :  { %316 = vadd.xlane.f32.xlu2 %v315_v50 }
 0x32e   :  { %2701 = vmatmul.msk.f32.vlgmr.msra.gmra.mxu2 %vm248_vm2, %v432_v23 }
 0x332   :  { %v462_v51 = vpop.permute.xlu1 %461 }
 0x333   :  { %2702 = vmatpush.xpose.msk.msra.mxu3 %vm248_vm2, %v462_v51 }
 0x33f   :  { %535 = vrot.lane.b32.xlu2 %v3391_v16, %s3237_s27 }
 0x347   :  { %620 = vrot.lane.b32.xlu2 %v3391_v16, %s3238_s14 }
 0x39a   :  { %v317_v53 = vpop.xlane.xlu2 %316 }
 0x39b   :  { %2813 = vrcp.f32 %v317_v53  ;;  %v343_v58 = vand.u32 2147483648, %v317_v53  ;;  %v341_v60 = vand.u32 2147483647, %v317_v53  ;;  %vm337_vm8 = vweird.f32 %v317_v53 }
 0x39d   :  { %v344_v62 = vor.u32 1.1754944e-38, %v343_v58  ;;  %vm342_vm10 = vcmp.eq.f32.partialorder %v341_v60, 8.507059e+37 }
 0x3a1   :  { %v2814_v54 = vpop.eup %2813 }
 0x3a2   :  { %v333_v55 = vmul.f32 %v2814_v54, %v317_v53  ;;  %v536_v56 = vpop.permute.xlu2 %535  ;;  %vm338_vm7 = vweird.f32 %v2814_v54 }
 0x3a3   :  { %556 = vmatpush.msrb.mxu1 %v536_v56  ;;  %vm339_vm9 = vmor %vm337_vm8, %vm338_vm7 }
 0x3a4   :  { %v334_v57 = vsub.f32 1.0, %v333_v55 }
 0x3a6   :  { %v335_v59 = vmul.f32 %v2814_v54, %v334_v57 }
 0x3a8   :  { %v336_v61 = vadd.f32 %v2814_v54, %v335_v59 }
 0x3a9   :  { %v371_v63 = vpop.f32.mrf.mxu2 }
 0x3aa   :  { %2698 = vmatmul.msk.f32.vlgmr.msrb.gmra.mxu0 %vm248_vm2, %v371_v63  ;;  %v621_v0 = vpop.permute.xlu2 %620  ;;  %v340_v1 = vsel %vm339_vm9, %v2814_v54, %v336_v61 }
 0x3ab   :  { %2708 = vmatpush.xpose.msk.msra.mxu1 %vm248_vm2, %v621_v0  ;;  %v345_v2 = vsel %vm342_vm10, %v344_v62, %v340_v1 }
 0x3ac   :  { %v347_v3 = vmul.f32 %v2812_v49, %v345_v2 }
 0x3ae   :  { %2697 = vmatmul.msk.f32.vlgmr.msrb.gmra.mxu3 %vm248_vm2, %v347_v3 }
 0x3af   :  { %608 = vmatpush.msrb.mxu3 %v238_v35 }
 0x3b1   :  { %v456_v4 = vpop.f32.mrf.mxu2 }
 0x3b2   :  { %v487_v5 = vsel %vm248_vm2, %v456_v4, -inf }
 0x3b3   :  { %488 = vmax.xlane.f32.xlu0 %v487_v5 }
 0x3b6   :  { %2703 = vmatmul.msk.f32.vlgmr.msra.gmra.mxu3 %vm248_vm2, %v460_v6 }
 0x3c7   :  { %618 = vrot.lane.b32.xlu0 %v3391_v16, %s3239_s30 }
 0x426   :  { %v489_v7 = vpop.xlane.xlu0 %488 }
 0x427   :  { %v493_v8 = vsub.f32 %v456_v4, %v489_v7  ;;  %v3462_v1 = vpop.f32.mrf.mxu0 }
 0x429   :  { %v495_v9 = vmul.f32 1.442695, %v493_v8 }
 0x42b   :  { %2815 = vpow2.f32 %v495_v9 }
 0x431   :  { %v2816_v10 = vpop.eup %2815  ;;  %v397_v11 = vpop.f32.mrf.mxu3 }
 0x432   :  { %2699 = vmatmul.msk.f32.gmra.mxu0 %vm248_vm2, %v397_v11  ;;  %v499_v12 = vsel %vm248_vm2, %v2816_v10, 0.0 }
 0x433   :  { %500 = vadd.xlane.f32.xlu1 %v499_v12 }
 0x439   :  { %v484_v13 = vpop.f32.mrf.mxu3  ;;  %v619_v34 = vpop.permute.xlu0 %618 }
 0x43a   :  { %v490_v14 = vsel %vm248_vm2, %v484_v13, -inf }
 0x43b   :  { %491 = vmax.xlane.f32.xlu2 %v490_v14 }
 0x453   :  { %722 = vrot.lane.b32.xlu2 %v3391_v16, %s3240_s16 }
 0x45b   :  { %807 = vrot.lane.b32.xlu2 %v3391_v16, %s3241_s5 }
 0x463   :  { %646 = vrot.lane.b32.xlu2 %v3396_v18, %s3239_s30 }
 0x46b   :  { %833 = vrot.lane.b32.xlu2 %v3396_v18, %s3242_s17 }
 0x4a6   :  { %v501_v15 = vpop.xlane.xlu1 %500 }
 0x4a7   :  { %2817 = vrcp.f32 %v501_v15  ;;  %v516_v23 = vand.u32 2147483648, %v501_v15  ;;  %v514_v26 = vand.u32 2147483647, %v501_v15  ;;  %vm510_vm12 = vweird.f32 %v501_v15 }
 0x4a9   :  { %v517_v28 = vor.u32 1.1754944e-38, %v516_v23  ;;  %vm515_vm14 = vcmp.eq.f32.partialorder %v514_v26, 8.507059e+37  ;;  %v239_v23 = vld [vmem:[#allocation7 + $0x10] sm:$0xff] }
 0x4ad   :  { %v2818_v17 = vpop.eup %2817 }
 0x4ae   :  { %v506_v19 = vmul.f32 %v2818_v17, %v501_v15  ;;  %v492_v20 = vpop.xlane.xlu2 %491  ;;  %vm511_vm11 = vweird.f32 %v2818_v17 }
 0x4af   :  { %v494_v21 = vsub.f32 %v484_v13, %v492_v20  ;;  %vm512_vm13 = vmor %vm510_vm12, %vm511_vm11  ;;  %v3464_v6 = vpop.f32.mrf.mxu0 }
 0x4b0   :  { %v507_v22 = vsub.f32 1.0, %v506_v19 }
 0x4b1   :  { %v497_v24 = vmul.f32 1.442695, %v494_v21 }
 0x4b2   :  { %v508_v25 = vmul.f32 %v2818_v17, %v507_v22 }
 0x4b3   :  { %2819 = vpow2.f32 %v497_v24 }
 0x4b4   :  { %v509_v27 = vadd.f32 %v2818_v17, %v508_v25 }
 0x4b6   :  { %v513_v29 = vsel %vm512_vm13, %v2818_v17, %v509_v27  ;;  %v723_v45 = vpop.permute.xlu2 %722 }
 0x4b7   :  { %v518_v30 = vsel %vm515_vm14, %v517_v28, %v513_v29 }
 0x4b8   :  { %v533_v31 = vmul.f32 %v2816_v10, %v518_v30 }
 0x4b9   :  { %v2820_v32 = vpop.eup %2819 }
 0x4ba   :  { %2704 = vmatmul.msk.f32.vlgmr.msrb.gmra.mxu1 %vm248_vm2, %v533_v31  ;;  %v502_v33 = vsel %vm248_vm2, %v2820_v32, 0.0 }
 0x4bb   :  { %503 = vadd.xlane.f32.xlu1 %v502_v33 }
 0x4be   :  { %v808_v53 = vpop.permute.xlu2 %807 }
 0x4c2   :  { %2709 = vmatmul.msk.f32.vlgmr.msra.gmra.mxu1 %vm248_vm2, %v619_v34 }
 0x4c6   :  { %v647_v60 = vpop.permute.xlu2 %646 }
 0x4ce   :  { %v834_v63 = vpop.permute.xlu2 %833 }
 0x4d4   :  { %561 = vrot.lane.b32.xlu1 %v3396_v18, %s3237_s27 }
 0x52e   :  { %v504_v36 = vpop.xlane.xlu1 %503 }
 0x52f   :  { %2821 = vrcp.f32 %v504_v36  ;;  %v530_v43 = vand.u32 2147483648, %v504_v36  ;;  %vm524_vm0 = vweird.f32 %v504_v36  ;;  %v528_v44 = vand.u32 2147483647, %v504_v36 }
 0x531   :  { %v531_v49 = vor.u32 1.1754944e-38, %v530_v43  ;;  %vm529_vm4 = vcmp.eq.f32.partialorder %v528_v44, 8.507059e+37 }
 0x535   :  { %v2822_v37 = vpop.eup %2821 }
 0x536   :  { %v520_v38 = vmul.f32 %v2822_v37, %v504_v36  ;;  %vm525_vm15 = vweird.f32 %v2822_v37 }
 0x537   :  { %v558_v39 = vpop.f32.mrf.mxu1  ;;  %vm526_vm3 = vmor %vm524_vm0, %vm525_vm15 }
 0x538   :  { %v521_v40 = vsub.f32 1.0, %v520_v38  ;;  %2706 = vmatmul.msk.f32.vlgmr.msrb.gmra.mxu3 %vm248_vm2, %v558_v39 }
 0x53a   :  { %v522_v41 = vmul.f32 %v2822_v37, %v521_v40 }
 0x53c   :  { %v523_v42 = vadd.f32 %v2822_v37, %v522_v41 }
 0x53e   :  { %v527_v47 = vsel %vm526_vm3, %v2822_v37, %v523_v42  ;;  %v2796_v37 = vpack.i.bf16 %v3396_v18, %v3391_v16 }
 0x53f   :  { %v643_v46 = vpop.f32.mrf.mxu1  ;;  %v532_v50 = vsel %vm529_vm4, %v531_v49, %v527_v47 }
 0x540   :  { %v674_v48 = vsel %vm248_vm2, %v643_v46, -inf  ;;  %v534_v52 = vmul.f32 %v2820_v32, %v532_v50 }
 0x541   :  { %675 = vmax.xlane.f32.xlu0 %v674_v48 }
 0x546   :  { %v562_v51 = vpop.permute.xlu1 %561 }
 0x547   :  { %582 = vmatpush.msrb.mxu2 %v562_v51 }
 0x548   :  { %2705 = vmatmul.msk.f32.vlgmr.msrb.gmra.mxu2 %vm248_vm2, %v534_v52 }
 0x549   :  { %743 = vmatpush.msra.mxu2 %v723_v45 }
 0x54b   :  { %2716 = vmatpush.xpose.msk.msrb.mxu2 %vm248_vm2, %v808_v53 }
 0x555   :  { %648 = vrot.lane.b32.xlu0 %v3396_v18, %s3238_s14 }
 0x55d   :  { %835 = vrot.lane.b32.xlu0 %v3396_v18, %s3241_s5 }
 0x5b4   :  { %v676_v54 = vpop.xlane.xlu0 %675 }
 0x5b5   :  { %v680_v55 = vsub.f32 %v643_v46, %v676_v54 }
 0x5b7   :  { %v682_v56 = vmul.f32 1.442695, %v680_v55 }
 0x5b9   :  { %2823 = vpow2.f32 %v682_v56 }
 0x5bb   :  { %v3466_v14 = vpop.f32.mrf.mxu3 }
 0x5bf   :  { %v2824_v57 = vpop.eup %2823 }
 0x5c0   :  { %v686_v58 = vsel %vm248_vm2, %v2824_v57, 0.0 }
 0x5c1   :  { %687 = vadd.xlane.f32.xlu1 %v686_v58 }
 0x5c7   :  { %v649_v59 = vpop.permute.xlu0 %648 }
 0x5c8   :  { %2710 = vmatpush.xpose.msk.msra.mxu0 %vm248_vm2, %v649_v59 }
 0x5cb   :  { %v584_v61 = vpop.f32.mrf.mxu2  ;;  %2711 = vmatmul.msk.f32.vlgmr.msra.gmra.mxu0 %vm248_vm2, %v647_v60 }
 0x5cc   :  { %2707 = vmatmul.msk.f32.gmra.mxu3 %vm248_vm2, %v584_v61  ;;  %795 = vmatpush.msrb.mxu0 %v239_v23  ;;  %v240_v23 = vld [vmem:[#allocation7 + $0x18] sm:$0xff] }
 0x5cf   :  { %v836_v62 = vpop.permute.xlu0 %835 }
 0x5d0   :  { %2718 = vmatpush.xpose.msk.msra.mxu3 %vm248_vm2, %v836_v62 }
 0x5d4   :  { %2719 = vmatmul.msk.f32.vlgmr.msra.gmra.mxu3 %vm248_vm2, %v834_v63 }
 0x5d5   :  { %982 = vmatpush.msrb.mxu3 %v240_v23 }
 0x5da   :  { %805 = vrot.lane.b32.xlu1 %v3391_v16, %s3242_s17 }
 0x634   :  { %v688_v0 = vpop.xlane.xlu1 %687 }
 0x635   :  { %2825 = vrcp.f32 %v688_v0  ;;  %v703_v5 = vand.u32 2147483648, %v688_v0  ;;  %v701_v8 = vand.u32 2147483647, %v688_v0  ;;  %vm697_vm6 = vweird.f32 %v688_v0 }
 0x637   :  { %v704_v10 = vor.u32 1.1754944e-38, %v703_v5  ;;  %vm702_vm8 = vcmp.eq.f32.partialorder %v701_v8, 8.507059e+37 }
 0x63b   :  { %v2826_v2 = vpop.eup %2825 }
 0x63c   :  { %v693_v3 = vmul.f32 %v2826_v2, %v688_v0  ;;  %vm698_vm5 = vweird.f32 %v2826_v2 }
 0x63d   :  { %vm699_vm7 = vmor %vm697_vm6, %vm698_vm5 }
 0x63e   :  { %v694_v4 = vsub.f32 1.0, %v693_v3 }
 0x640   :  { %v695_v7 = vmul.f32 %v2826_v2, %v694_v4 }
 0x642   :  { %v696_v9 = vadd.f32 %v2826_v2, %v695_v7 }
 0x644   :  { %v700_v11 = vsel %vm699_vm7, %v2826_v2, %v696_v9 }
 0x645   :  { %v705_v12 = vsel %vm702_vm8, %v704_v10, %v700_v11 }
 0x646   :  { %v720_v13 = vmul.f32 %v2824_v57, %v705_v12 }
 0x648   :  { %v671_v15 = vpop.f32.mrf.mxu0  ;;  %2712 = vmatmul.msk.f32.vlgmr.msra.gmra.mxu2 %vm248_vm2, %v720_v13 }
 0x649   :  { %v677_v17 = vsel %vm248_vm2, %v671_v15, -inf }
 0x64a   :  { %678 = vmax.xlane.f32.xlu0 %v677_v17 }
 0x64c   :  { %v806_v19 = vpop.permute.xlu1 %805 }
 0x64f   :  { %v3470_v20 = vpop.f32.mrf.mxu3 }
 0x650   :  { %2717 = vmatmul.msk.f32.vlgmr.msrb.gmra.mxu2 %vm248_vm2, %v806_v19 }
 0x657   :  { %v858_v21 = vpop.f32.mrf.mxu3 }
 0x658   :  { %v864_v22 = vsel %vm248_vm2, %v858_v21, -inf }
 0x659   :  { %865 = vmax.xlane.f32.xlu1 %v864_v22 }
 0x6bd   :  { %v679_v24 = vpop.xlane.xlu0 %678 }
 0x6be   :  { %v681_v25 = vsub.f32 %v671_v15, %v679_v24 }
 0x6c0   :  { %v684_v26 = vmul.f32 1.442695, %v681_v25 }
 0x6c2   :  { %2827 = vpow2.f32 %v684_v26 }
 0x6c8   :  { %v3474_v27 = vpop.eup %2827 }
 0x6c9   :  { %v689_v28 = vsel %vm248_vm2, %v3474_v27, 0.0 }
 0x6ca   :  { %690 = vadd.xlane.f32.xlu0 %v689_v28  ;;  %v994_v28 = vld [vmem:[#allocation8 + $0x10] sm:$0xff] }
 0x6cb   :  { %v745_v29 = vpop.f32.mrf.mxu2 }
 0x6cc   :  { %2714 = vmatmul.msk.f32.vlgmr.msrb.gmra.mxu0 %vm248_vm2, %v745_v29  ;;  %v866_v30 = vpop.xlane.xlu1 %865  ;;  %v3493_v29 = vld [vmem:[#allocation10 + $0x18] sm:$0xff] }
 0x6cd   :  { %v868_v31 = vsub.f32 %v858_v21, %v866_v30  ;;  %1060 = vmatpush.msra.mxu0 %v3493_v29  ;;  %v993_v30 = vld [vmem:[#allocation8 + $0x8] sm:$0xff] }
 0x6cf   :  { %v871_v32 = vmul.f32 1.442695, %v868_v31  ;;  %v3496_v31 = vld [vmem:[#allocation10 + $0x10] sm:$0xff] }
 0x6d0   :  { %1061 = vmatpush.msra.mxu0 %v3496_v31 }
 0x6d1   :  { %2829 = vpow2.f32 %v871_v32  ;;  %v992_v32 = vld [vmem:[#allocation8] sm:$0xff] }
 0x6d3   :  { %v830_v33 = vpop.f32.mrf.mxu2 }
 0x6d4   :  { %v861_v34 = vsel %vm248_vm2, %v830_v33, -inf }
 0x6d5   :  { %862 = vmax.xlane.f32.xlu2 %v861_v34  ;;  %v3502_v34 = vld [vmem:[#allocation10] sm:$0xff] }
 0x6d7   :  { %v2830_v35 = vpop.eup %2829 }
 0x6d8   :  { %v876_v36 = vsel %vm248_vm2, %v2830_v35, 0.0 }
 0x6d9   :  { %877 = vadd.xlane.f32.xlu0 %v876_v36  ;;  %v2803_v36 = vld [vmem:[%s3890_s6] ss:$0 sm:$0xff] }
 0x6ed   :  { %2797 = vrot.lane.b32.xlu0 %v2796_v37, %s3243_s1  ;;  %v429_v37 = vadd.f32 %v2803_v36, %v3462_v1  ;;  %v2804_v1 = vld [vmem:[%s3893_s9] ss:$0 sm:$0xff]  ;;  %s3245_s9 = smov 32  }
 0x73d   :  { %v691_v38 = vpop.xlane.xlu0 %690 }
 0x73e   :  { %v717_v62 = vand.u32 2147483648, %v691_v38  ;;  %vm711_vm14 = vweird.f32 %v691_v38  ;;  %v715_v63 = vand.u32 2147483647, %v691_v38 }
 0x740   :  { %v718_v3 = vor.u32 1.1754944e-38, %v717_v62  ;;  %vm716_vm0 = vcmp.eq.f32.partialorder %v715_v63, 8.507059e+37 }
 0x748   :  { %v863_v39 = vpop.xlane.xlu2 %862 }
 0x749   :  { %v867_v40 = vsub.f32 %v830_v33, %v863_v39  ;;  %v3499_v33 = vld [vmem:[#allocation10 + $0x8] sm:$0xff]  ;;  %v616_v39 = vadd.f32 %v3466_v14, %v429_v37 }
 0x74a   :  { %1062 = vmatpush.msra.mxu0 %v3499_v33 }
 0x74b   :  { %v869_v41 = vmul.f32 1.442695, %v867_v40 }
 0x74c   :  { %v878_v42 = vpop.xlane.xlu0 %877  ;;  %1063 = vmatpush.msra.mxu0 %v3502_v34 }
 0x74d   :  { %2831 = vpow2.f32 %v869_v41  ;;  %v904_v48 = vand.u32 2147483648, %v878_v42  ;;  %v902_v16 = vand.u32 2147483647, %v878_v42  ;;  %vm898_vm10 = vweird.f32 %v878_v42 }
 0x74e   :  { %2833 = vrcp.f32 %v878_v42 }
 0x74f   :  { %v905_v51 = vor.u32 1.1754944e-38, %v904_v48  ;;  %vm903_vm12 = vcmp.eq.f32.partialorder %v902_v16, 8.507059e+37  ;;  %2835 = vrcp.f32 %v691_v38 }
 0x753   :  { %v2832_v43 = vpop.eup %2831 }
 0x754   :  { %v2834_v44 = vpop.eup %2833  ;;  %v873_v45 = vsel %vm248_vm2, %v2832_v43, 0.0 }
 0x755   :  { %v894_v46 = vmul.f32 %v2834_v44, %v878_v42  ;;  %874 = vadd.xlane.f32.xlu2 %v873_v45  ;;  %vm899_vm9 = vweird.f32 %v2834_v44  ;;  %v2836_v57 = vpop.eup %2835 }
 0x756   :  { %vm900_vm11 = vmor %vm898_vm10, %vm899_vm9  ;;  %v707_v58 = vmul.f32 %v2836_v57, %v691_v38  ;;  %vm712_vm13 = vweird.f32 %v2836_v57  ;;  %v797_v38 = vpop.f32.mrf.mxu0 }
 0x757   :  { %v895_v47 = vsub.f32 1.0, %v894_v46  ;;  %vm713_vm15 = vmor %vm711_vm14, %vm712_vm13  ;;  %v803_v40 = vadd.f32 %v797_v38, %v616_v39  ;;  %v3540_v39 = vld [vmem:[#allocation13 + $0x18] sm:$0xff]  ;;  %vm1171_vm14 = vcmask 1041409  }
 0x758   :  { %v708_v59 = vsub.f32 1.0, %v707_v58  ;;  %1358 = vmatpush.msra.mxu3 %v3540_v39 }
 0x759   :  { %v896_v49 = vmul.f32 %v2834_v44, %v895_v47 }
 0x75a   :  { %v709_v60 = vmul.f32 %v2836_v57, %v708_v59 }
 0x75b   :  { %v897_v50 = vadd.f32 %v2834_v44, %v896_v49 }
 0x75c   :  { %v710_v61 = vadd.f32 %v2836_v57, %v709_v60 }
 0x75d   :  { %v901_v52 = vsel %vm900_vm11, %v2834_v44, %v897_v50 }
 0x75e   :  { %v906_v53 = vsel %vm903_vm12, %v905_v51, %v901_v52  ;;  %v714_v2 = vsel %vm713_vm15, %v2836_v57, %v710_v61 }
 0x75f   :  { %v2798_v54 = vpop.permute.xlu0 %2797  ;;  %v908_v56 = vmul.f32 %v2830_v35, %v906_v53  ;;  %v719_v4 = vsel %vm716_vm0, %v718_v3, %v714_v2  ;;  %v3244_v35 = vmov 0.0  }
 0x760   :  { %v2800_v55 = vunpack.i.h.bf16 %v2798_v54  ;;  %v721_v8 = vmul.f32 %v3474_v27, %v719_v4  ;;  %v2799_v9 = vunpack.i.l.bf16 %v2798_v54  ;;  %v995_v27 = vld [vmem:[#allocation8 + $0x18] sm:$0xff] }
 0x762   :  { %956 = vmatpush.msra.mxu2 %v2800_v55 }
 0x763   :  { %2721 = vmatmul.msk.f32.vlgmr.msra.gmra.mxu2 %vm248_vm2, %v908_v56 }
 0x764   :  { %1160 = vmatpush.msrb.mxu2 %v3540_v39 }
 0x76d   :  { %748 = vrot.lane.b32.xlu2 %v3396_v18, %s3240_s16 }
 0x7c8   :  { %v875_v0 = vpop.xlane.xlu2 %874 }
 0x7c9   :  { %2837 = vrcp.f32 %v875_v0  ;;  %v890_v11 = vand.u32 2147483648, %v875_v0  ;;  %v888_v13 = vand.u32 2147483647, %v875_v0  ;;  %vm884_vm4 = vweird.f32 %v875_v0 }
 0x7cb   :  { %v891_v17 = vor.u32 1.1754944e-38, %v890_v11  ;;  %vm889_vm6 = vcmp.eq.f32.partialorder %v888_v13, 8.507059e+37 }
 0x7cf   :  { %v2838_v5 = vpop.eup %2837 }
 0x7d0   :  { %v880_v7 = vmul.f32 %v2838_v5, %v875_v0  ;;  %v749_v18 = vpop.permute.xlu2 %748  ;;  %vm885_vm3 = vweird.f32 %v2838_v5 }
 0x7d1   :  { %769 = vmatpush.msrb.mxu1 %v749_v18  ;;  %vm886_vm5 = vmor %vm884_vm4, %vm885_vm3 }
 0x7d2   :  { %v881_v10 = vsub.f32 1.0, %v880_v7  ;;  %2713 = vmatmul.msk.f32.vlgmr.msrb.gmra.mxu1 %vm248_vm2, %v721_v8 }
 0x7d3   :  { %930 = vmatpush.msra.mxu1 %v2799_v9 }
 0x7d4   :  { %v882_v12 = vmul.f32 %v2838_v5, %v881_v10 }
 0x7d5   :  { %1018 = vmatpush.msrb.mxu1 %v995_v27 }
 0x7d6   :  { %v883_v15 = vadd.f32 %v2838_v5, %v882_v12 }
 0x7d7   :  { %1019 = vmatpush.msrb.mxu1 %v994_v28 }
 0x7d8   :  { %v887_v19 = vsel %vm886_vm5, %v2838_v5, %v883_v15 }
 0x7d9   :  { %v892_v21 = vsel %vm889_vm6, %v891_v17, %v887_v19  ;;  %1020 = vmatpush.msrb.mxu1 %v993_v30 }
 0x7da   :  { %v907_v22 = vmul.f32 %v2832_v43, %v892_v21  ;;  %v430_v43 = vadd.f32 %v2803_v36, %v3464_v6 }
 0x7db   :  { %1021 = vmatpush.msrb.mxu1 %v992_v32 }
 0x7dc   :  { %2720 = vmatmul.msk.f32.vlgmr.msra.gmra.mxu1 %vm248_vm2, %v907_v22  ;;  %v617_v45 = vadd.f32 %v3470_v20, %v430_v43  ;;  %v3550_v43 = vld [vmem:[#allocation13 + $0x8] sm:$0xff] }
 0x7e6   :  { %v958_v26 = vpop.f32.mrf.mxu2 }
 0x84f   :  { %v771_v24 = vpop.f32.mrf.mxu1 }
 0x850   :  { %2715 = vmatmul.msk.f32.gmra.mxu0 %vm248_vm2, %v771_v24 }
 0x858   :  { %1064 = vmatmul.f32.vlgmr.msra.gmra.mxu0 %v3244_v35 }
 0x859   :  { %v932_v25 = vpop.f32.mrf.mxu1 }
 0x85a   :  { %2722 = vmatmul.msk.f32.vlgmr.msrb.gmra.mxu3 %vm248_vm2, %v932_v25 }
 0x862   :  { %2723 = vmatmul.msk.f32.gmra.mxu3 %vm248_vm2, %v958_v26 }
 0x8cd   :  { %v800_v44 = vpop.f32.mrf.mxu0 }
 0x8ce   :  { %v804_v46 = vadd.f32 %v800_v44, %v617_v45  ;;  %v3555_v44 = vld [vmem:[#allocation11 + $0x8] sm:$0xff]  ;;  %v3558_v45 = vld [vmem:[#allocation13] sm:$0xff] }
 0x8d5   :  { %v1065_v49 = vpop.f32.mrf.mxu0 }
 0x8d6   :  { %v1069_v50 = vrot.slane %v1065_v49, 1 }
 0x8dd   :  { %v984_v41 = vpop.f32.mrf.mxu3 }
 0x8de   :  { %v990_v42 = vadd.f32 %v984_v41, %v803_v40  ;;  %v3542_v40 = vld [vmem:[#allocation13 + $0x10] sm:$0xff]  ;;  %v3545_v41 = vld [vmem:[#allocation11 + $0x18] sm:$0xff] }
 0x8df   :  { %1189 = vmatpush.msrb.mxu0 %v3545_v41  ;;  %1386 = vmatpush.msra.mxu1 %v3545_v41 }
 0x8e0   :  { %2724 = vmatmul.msk.f32.vlgmr.msrb.gmra.mxu1 %vm207_vm1, %v990_v42  ;;  %v3547_v42 = vld [vmem:[#allocation11 + $0x10] sm:$0xff]  ;;  %1161 = vmatpush.msrb.mxu2 %v3542_v40 }
 0x8e1   :  { %1359 = vmatpush.msra.mxu3 %v3542_v40  ;;  %1190 = vmatpush.msrb.mxu0 %v3547_v42 }
 0x8e2   :  { %1387 = vmatpush.msra.mxu1 %v3547_v42  ;;  %1162 = vmatpush.msrb.mxu2 %v3550_v43 }
 0x8e3   :  { %1360 = vmatpush.msra.mxu3 %v3550_v43  ;;  %1191 = vmatpush.msrb.mxu0 %v3555_v44 }
 0x8e4   :  { %1388 = vmatpush.msra.mxu1 %v3555_v44  ;;  %1163 = vmatpush.msrb.mxu2 %v3558_v45 }
 0x8e5   :  { %v987_v47 = vpop.f32.mrf.mxu3  ;;  %1361 = vmatpush.msra.mxu3 %v3558_v45  ;;  %1164 = vmatmul.f32.vlgmr.msrb.gmra.mxu2 %v3244_v35 }
 0x8e6   :  { %v991_v48 = vadd.f32 %v987_v47, %v804_v46  ;;  %v3563_v46 = vld [vmem:[#allocation11] sm:$0xff]  ;;  %1247 = vmatpush.msra.mxu2 %v3493_v29 }
 0x8e7   :  { %1192 = vmatpush.msrb.mxu0 %v3563_v46  ;;  %1389 = vmatpush.msra.mxu1 %v3563_v46 }
 0x8e8   :  { %2725 = vmatmul.msk.f32.gmra.mxu1 %vm207_vm1, %v991_v48  ;;  %1585 = vmatpush.msrb.mxu3 %v3545_v41 }
 0x8e9   :  { %1444 = vmatpush.msra.mxu0 %v3493_v29  ;;  %1248 = vmatpush.msra.mxu2 %v3496_v31 }
 0x8ea   :  { %1643 = vmatpush.msrb.mxu1 %v3493_v29  ;;  %1586 = vmatpush.msrb.mxu3 %v3547_v42 }
 0x8eb   :  { %1445 = vmatpush.msra.mxu0 %v3496_v31  ;;  %1249 = vmatpush.msra.mxu2 %v3499_v33 }
 0x8ec   :  { %1644 = vmatpush.msrb.mxu1 %v3496_v31  ;;  %1587 = vmatpush.msrb.mxu3 %v3555_v44 }
 0x8ed   :  { %1446 = vmatpush.msra.mxu0 %v3499_v33  ;;  %1250 = vmatpush.msra.mxu2 %v3502_v34 }
 0x8ee   :  { %1645 = vmatpush.msrb.mxu1 %v3499_v33  ;;  %1588 = vmatpush.msrb.mxu3 %v3563_v46 }
 0x8ef   :  { %1447 = vmatpush.msra.mxu0 %v3502_v34  ;;  %1556 = vmatpush.msrb.mxu2 %v3540_v39 }
 0x8f0   :  { %1646 = vmatpush.msrb.mxu1 %v3502_v34 }
 0x8f1   :  { %1557 = vmatpush.msrb.mxu2 %v3542_v40 }
 0x8f3   :  { %1558 = vmatpush.msrb.mxu2 %v3550_v43 }
 0x8f5   :  { %1559 = vmatpush.msrb.mxu2 %v3558_v45 }
 0x95d   :  { %v1023_v14 = vpop.f32.mrf.mxu1 }
 0x95e   :  { %v3518_v16 = vadd.f32 %v2804_v1, %v1023_v14 }
 0x960   :  { %v1072_v6 = vadd.f32 %v1065_v49, %v3518_v16 }
 0x962   :  { %2839 = vtanh.f32 %v1072_v6  ;;  %v2726_v55 = vmul.f32 -1.442695, %v1072_v6 }
 0x965   :  { %v1026_v51 = vpop.f32.mrf.mxu1 }
 0x966   :  { %v3521_v52 = vadd.f32 %v2804_v1, %v1026_v51  ;;  %v3609_v51 = vld [vmem:[%s3896_s12] ss:$0 sm:$0xff] }
 0x968   :  { %v2840_v20 = vpop.eup %2839  ;;  %v1073_v53 = vadd.f32 %v1069_v50, %v3521_v52  ;;  %v1165_v50 = vpop.f32.mrf.mxu2 }
 0x969   :  { %1118 = vrot.lane.b32.xlu0 %v2840_v20, %s3233_s3 }
 0x96a   :  { %2841 = vtanh.f32 %v1073_v53  ;;  %v2727_v56 = vmul.f32 -1.442695, %v1073_v53 }
 0x96b   :  { %2843 = vpow2.f32 %v2726_v55 }
 0x96c   :  { %2845 = vpow2.f32 %v2727_v56 }
 0x970   :  { %v2842_v54 = vpop.eup %2841 }
 0x971   :  { %1120 = vrot.lane.b32.xlu1 %v2842_v54, %s3233_s3  ;;  %v2844_v57 = vpop.eup %2843 }
 0x972   :  { %v1080_v58 = vadd.f32 1.0, %v2844_v57  ;;  %v2846_v59 = vpop.eup %2845 }
 0x973   :  { %v1081_v60 = vadd.f32 1.0, %v2846_v59 }
 0x974   :  { %2847 = vrcp.f32 %v1080_v58  ;;  %v1093_v7 = vand.u32 2147483648, %v1080_v58  ;;  %vm1087_vm7 = vweird.f32 %v1080_v58  ;;  %v1091_v18 = vand.u32 2147483647, %v1080_v58 }
 0x975   :  { %2849 = vrcp.f32 %v1081_v60  ;;  %v1108_v17 = vand.u32 2147483648, %v1081_v60  ;;  %vm1102_vm11 = vweird.f32 %v1081_v60  ;;  %v1106_v19 = vand.u32 2147483647, %v1081_v60 }
 0x976   :  { %v1094_v10 = vor.u32 1.1754944e-38, %v1093_v7  ;;  %vm1092_vm9 = vcmp.eq.f32.partialorder %v1091_v18, 8.507059e+37 }
 0x977   :  { %v1109_v22 = vor.u32 1.1754944e-38, %v1108_v17  ;;  %vm1107_vm13 = vcmp.eq.f32.partialorder %v1106_v19, 8.507059e+37 }
 0x97a   :  { %v2848_v61 = vpop.eup %2847 }
 0x97b   :  { %v1083_v62 = vmul.f32 %v2848_v61, %v1080_v58  ;;  %v2850_v0 = vpop.eup %2849  ;;  %vm1088_vm2 = vweird.f32 %v2848_v61 }
 0x97c   :  { %v1098_v3 = vmul.f32 %v2850_v0, %v1081_v60  ;;  %vm1089_vm8 = vmor %vm1087_vm7, %vm1088_vm2  ;;  %vm1103_vm10 = vweird.f32 %v2850_v0 }
 0x97d   :  { %v1084_v63 = vsub.f32 1.0, %v1083_v62  ;;  %vm1104_vm12 = vmor %vm1102_vm11, %vm1103_vm10 }
 0x97e   :  { %v1099_v5 = vsub.f32 1.0, %v1098_v3 }
 0x97f   :  { %v1085_v2 = vmul.f32 %v2848_v61, %v1084_v63 }
 0x980   :  { %v1100_v9 = vmul.f32 %v2850_v0, %v1099_v5 }
 0x981   :  { %v1086_v4 = vadd.f32 %v2848_v61, %v1085_v2 }
 0x982   :  { %v1101_v15 = vadd.f32 %v2850_v0, %v1100_v9 }
 0x983   :  { %v1090_v8 = vsel %vm1089_vm8, %v2848_v61, %v1086_v4 }
 0x984   :  { %v3526_v12 = vsel %vm1092_vm9, %v1094_v10, %v1090_v8  ;;  %v1105_v21 = vsel %vm1104_vm12, %v2850_v0, %v1101_v15 }
 0x985   :  { %v1110_v24 = vsel %vm1107_vm13, %v1109_v22, %v1105_v21  ;;  %v1114_v32 = vmul.f32 0.0, %v3526_v12 }
 0x986   :  { %v1115_v26 = vmul.f32 0.0, %v1110_v24 }
 0x9db   :  { %v1119_v11 = vpop.permute.xlu0 %1118 }
 0x9dc   :  { %v1124_v13 = vmul.f32 %v1119_v11, %v3526_v12 }
 0x9de   :  { %1128 = vrot.lane.b32.xlu0 %v1124_v13, %s3245_s9 }
 0x9e3   :  { %v1121_v23 = vpop.permute.xlu1 %1120 }
 0x9e4   :  { %v1125_v25 = vmul.f32 %v1121_v23, %v1110_v24 }
 0x9e6   :  { %1130 = vrot.lane.b32.xlu2 %v1125_v25, %s3245_s9 }
 0xa40   :  { %v1131_v27 = vpop.permute.xlu2 %1130 }
 0xa41   :  { %v3531_v28 = vadd.f32 %v1131_v27, %v1115_v26 }
 0xa43   :  { %2851 = vtanh.f32 %v3531_v28 }
 0xa49   :  { %v2852_v30 = vpop.eup %2851 }
 0xa4a   :  { %1142 = vrot.lane.b32.xlu1 %v2852_v30, %s3233_s3 }
 0xa50   :  { %v1129_v36 = vpop.permute.xlu0 %1128 }
 0xa51   :  { %v3536_v37 = vadd.f32 %v1129_v36, %v1114_v32 }
 0xa53   :  { %2853 = vtanh.f32 %v3536_v37 }
 0xa59   :  { %v2854_v38 = vpop.eup %2853 }
 0xa5a   :  { %1140 = vrot.lane.b32.xlu2 %v2854_v38, %s3233_s3 }
 0xab4   :  { %v1141_v35 = vpop.permute.xlu2 %1140 }
 0xab5   :  { %v1146_v1 = vmul.f32 %v1141_v35, %v3526_v12 }
 0xabc   :  { %v1143_v47 = vpop.permute.xlu1 %1142 }
 0xabd   :  { %v1147_v48 = vmul.f32 %v1143_v47, %v1110_v24 }
 0xabf   :  { %v1170_v14 = vrot.slane %v1147_v48, 7 }
 0xac1   :  { %v1172_v49 = vsel %vm1171_vm14, %v1170_v14, %v1146_v1 }
 0xac2   :  { %1173 = vrot.lane.b32.xlu0 %v1172_v49, %s3245_s9 }
 0xb34   :  { %v1174_v6 = vpop.permute.xlu0 %1173 }
 0xb35   :  { %2728 = vmatmul.msk.f32.vlgmr.msrb.gmra.mxu0 %vm207_vm1, %v1174_v6  ;;  %2730 = vmatmul.msk.f32.vlgmr.msra.gmra.mxu2 %vm207_vm1, %v1174_v6 }
 0xb36   :  { %1784 = vmatpush.msra.mxu2 %v3545_v41  ;;  %1755 = vmatpush.msrb.mxu0 %v3540_v39 }
 0xb38   :  { %1785 = vmatpush.msra.mxu2 %v3547_v42  ;;  %1756 = vmatpush.msrb.mxu0 %v3542_v40 }
 0xb3a   :  { %1786 = vmatpush.msra.mxu2 %v3555_v44  ;;  %1757 = vmatpush.msrb.mxu0 %v3550_v43 }
 0xb3c   :  { %1787 = vmatpush.msra.mxu2 %v3563_v46  ;;  %1758 = vmatpush.msrb.mxu0 %v3558_v45 }
 0xbb2   :  { %v1194_v20 = vpop.f32.mrf.mxu0 }
 0xbb3   :  { %v1195_v53 = vadd.f32 %v1194_v20, %v1165_v50 }
 0xbb5   :  { %v1197_v54 = vadd.f32 %v3609_v51, %v1195_v53 }
 0xbb7   :  { %2855 = vtanh.f32 %v1197_v54  ;;  %v2729_v2 = vmul.f32 -1.442695, %v1197_v54 }
 0xbb8   :  { %v1252_v55 = vpop.f32.mrf.mxu2 }
 0xbb9   :  { %v1256_v56 = vrot.slane %v1252_v55, 7  ;;  %v1260_v57 = vadd.f32 %v1252_v55, %v3521_v52 }
 0xbbb   :  { %v1259_v58 = vadd.f32 %v1256_v56, %v3518_v16  ;;  %2857 = vtanh.f32 %v1260_v57  ;;  %v2732_v62 = vmul.f32 -1.442695, %v1260_v57 }
 0xbbd   :  { %v2856_v59 = vpop.eup %2855  ;;  %2859 = vtanh.f32 %v1259_v58  ;;  %v2731_v5 = vmul.f32 -1.442695, %v1259_v58 }
 0xbbe   :  { %1220 = vrot.lane.b32.xlu0 %v2856_v59, %s3233_s3  ;;  %2861 = vpow2.f32 %v2732_v62 }
 0xbc1   :  { %v2858_v60 = vpop.eup %2857 }
 0xbc2   :  { %1313 = vrot.lane.b32.xlu2 %v2858_v60, %s3233_s3  ;;  %v1304_v60 = vrot.slane %v3531_v28, 7 }
 0xbc3   :  { %v2860_v61 = vpop.eup %2859 }
 0xbc4   :  { %1311 = vrot.lane.b32.xlu1 %v2860_v61, %s3233_s3  ;;  %v2862_v63 = vpop.eup %2861 }
 0xbc5   :  { %v1268_v0 = vadd.f32 1.0, %v2862_v63 }
 0xbc7   :  { %2863 = vrcp.f32 %v1268_v0  ;;  %v1295_v12 = vand.u32 2147483648, %v1268_v0  ;;  %vm1289_vm0 = vweird.f32 %v1268_v0  ;;  %v1293_v15 = vand.u32 2147483647, %v1268_v0 }
 0xbc8   :  { %2865 = vpow2.f32 %v2729_v2 }
 0xbc9   :  { %2867 = vpow2.f32 %v2731_v5  ;;  %v1296_v21 = vor.u32 1.1754944e-38, %v1295_v12  ;;  %vm1294_vm4 = vcmp.eq.f32.partialorder %v1293_v15, 8.507059e+37  ;;  %v1303_v5 = vrot.slane %v3536_v37, 7 }
 0xbcd   :  { %v2864_v3 = vpop.eup %2863 }
 0xbce   :  { %v1285_v4 = vmul.f32 %v2864_v3, %v1268_v0  ;;  %v2866_v7 = vpop.eup %2865  ;;  %vm1290_vm15 = vweird.f32 %v2864_v3 }
 0xbcf   :  { %v1201_v8 = vadd.f32 1.0, %v2866_v7  ;;  %v2868_v10 = vpop.eup %2867  ;;  %vm1291_vm3 = vmor %vm1289_vm0, %vm1290_vm15 }
 0xbd0   :  { %v1286_v18 = vsub.f32 1.0, %v1285_v4  ;;  %v1267_v13 = vadd.f32 1.0, %v2868_v10 }
 0xbd1   :  { %2869 = vrcp.f32 %v1201_v8  ;;  %v1213_v35 = vand.u32 2147483648, %v1201_v8  ;;  %vm1207_vm6 = vweird.f32 %v1201_v8  ;;  %v1211_v47 = vand.u32 2147483647, %v1201_v8 }
 0xbd2   :  { %v1287_v9 = vmul.f32 %v2864_v3, %v1286_v18  ;;  %2871 = vrcp.f32 %v1267_v13  ;;  %v1280_v53 = vand.u32 2147483648, %v1267_v13  ;;  %vm1274_vm9 = vweird.f32 %v1267_v13 }
 0xbd3   :  { %v1214_v14 = vor.u32 1.1754944e-38, %v1213_v35  ;;  %vm1212_vm7 = vcmp.eq.f32.partialorder %v1211_v47, 8.507059e+37  ;;  %v1278_v54 = vand.u32 2147483647, %v1267_v13 }
 0xbd4   :  { %v1288_v11 = vadd.f32 %v2864_v3, %v1287_v9  ;;  %v1281_v56 = vor.u32 1.1754944e-38, %v1280_v53 }
 0xbd5   :  { %vm1279_vm11 = vcmp.eq.f32.partialorder %v1278_v54, 8.507059e+37 }
 0xbd6   :  { %v1292_v17 = vsel %vm1291_vm3, %v2864_v3, %v1288_v11 }
 0xbd7   :  { %v2870_v19 = vpop.eup %2869  ;;  %v1297_v23 = vsel %vm1294_vm4, %v1296_v21, %v1292_v17 }
 0xbd8   :  { %v1203_v25 = vmul.f32 %v2870_v19, %v1201_v8  ;;  %v2872_v26 = vpop.eup %2871  ;;  %vm1208_vm5 = vweird.f32 %v2870_v19  ;;  %v1308_v61 = vmul.f32 %v1304_v60, %v1297_v23 }
 0xbd9   :  { %v1270_v30 = vmul.f32 %v2872_v26, %v1267_v13  ;;  %vm1209_vm2 = vmor %vm1207_vm6, %vm1208_vm5  ;;  %vm1275_vm8 = vweird.f32 %v2872_v26 }
 0xbda   :  { %v1204_v27 = vsub.f32 1.0, %v1203_v25  ;;  %vm1276_vm10 = vmor %vm1274_vm9, %vm1275_vm8 }
 0xbdb   :  { %v1271_v36 = vsub.f32 1.0, %v1270_v30 }
 0xbdc   :  { %v1205_v32 = vmul.f32 %v2870_v19, %v1204_v27 }
 0xbdd   :  { %v1272_v48 = vmul.f32 %v2872_v26, %v1271_v36 }
 0xbde   :  { %v1206_v38 = vadd.f32 %v2870_v19, %v1205_v32 }
 0xbdf   :  { %v1273_v50 = vadd.f32 %v2872_v26, %v1272_v48 }
 0xbe0   :  { %v1210_v1 = vsel %vm1209_vm2, %v2870_v19, %v1206_v38 }
 0xbe1   :  { %v1215_v6 = vsel %vm1212_vm7, %v1214_v14, %v1210_v1  ;;  %v1277_v55 = vsel %vm1276_vm10, %v2872_v26, %v1273_v50 }
 0xbe2   :  { %v1282_v58 = vsel %vm1279_vm11, %v1281_v56, %v1277_v55  ;;  %v1218_v2 = vmul.f32 0.0, %v1215_v6 }
 0xbe3   :  { %v1307_v7 = vmul.f32 %v1303_v5, %v1282_v58 }
 0xc1c   :  { %v1314_v22 = vpop.permute.xlu2 %1313 }
 0xc1d   :  { %v1318_v24 = vmul.f32 %v1314_v22, %v1297_v23 }
 0xc1f   :  { %1323 = vrot.lane.b32.xlu2 %v1318_v24, %s3245_s9 }
 0xc30   :  { %v1221_v49 = vpop.permute.xlu0 %1220 }
 0xc31   :  { %v1223_v20 = vmul.f32 %v1221_v49, %v1215_v6 }
 0xc33   :  { %1225 = vrot.lane.b32.xlu0 %v1223_v20, %s3245_s9 }
 0xc36   :  { %v1312_v57 = vpop.permute.xlu1 %1311 }
 0xc37   :  { %v1317_v59 = vmul.f32 %v1312_v57, %v1282_v58 }
 0xc39   :  { %1321 = vrot.lane.b32.xlu1 %v1317_v59, %s3245_s9 }
 0xc79   :  { %v1324_v62 = vpop.permute.xlu2 %1323 }
 0xc7a   :  { %v3621_v63 = vadd.f32 %v1324_v62, %v1308_v61 }
 0xc7c   :  { %2873 = vtanh.f32 %v3621_v63 }
 0xc82   :  { %v2874_v0 = vpop.eup %2873 }
 0xc83   :  { %1335 = vrot.lane.b32.xlu2 %v2874_v0, %s3233_s3 }
 0xca5   :  { %v1226_v3 = vpop.permute.xlu0 %1225 }
 0xca6   :  { %v3625_v4 = vadd.f32 %v1226_v3, %v1218_v2 }
 0xca8   :  { %2875 = vtanh.f32 %v3625_v4 }
 0xcab   :  { %v1322_v18 = vpop.permute.xlu1 %1321 }
 0xcac   :  { %v3629_v28 = vadd.f32 %v1322_v18, %v1307_v7 }
 0xcae   :  { %v2876_v8 = vpop.eup %2875  ;;  %2877 = vtanh.f32 %v3629_v28 }
 0xcaf   :  { %1231 = vrot.lane.b32.xlu0 %v2876_v8, %s3233_s3 }
 0xcb4   :  { %v2878_v9 = vpop.eup %2877 }
 0xcb5   :  { %1333 = vrot.lane.b32.xlu1 %v2878_v9, %s3233_s3 }
 0xcdd   :  { %v1336_v12 = vpop.permute.xlu2 %1335 }
 0xcde   :  { %v1340_v37 = vmul.f32 %v1336_v12, %v1297_v23 }
 0xd21   :  { %v1232_v10 = vpop.permute.xlu0 %1231 }
 0xd22   :  { %v1234_v11 = vmul.f32 %v1232_v10, %v1215_v6 }
 0xd24   :  { %1342 = vrot.lane.b32.xlu2 %v1234_v11, %s3245_s9 }
 0xd27   :  { %v1334_v13 = vpop.permute.xlu1 %1333 }
 0xd28   :  { %v1339_v15 = vmul.f32 %v1334_v13, %v1282_v58 }
 0xd2a   :  { %v1368_v17 = vrot.slane %v1339_v15, 1 }
 0xd2c   :  { %v1369_v19 = vsel %vm1171_vm14, %v1340_v37, %v1368_v17 }
 0xd2d   :  { %1370 = vrot.lane.b32.xlu1 %v1369_v19, %s3245_s9 }
 0xd7e   :  { %v1343_v21 = vpop.permute.xlu2 %1342 }
 0xd7f   :  { %2733 = vmatmul.msk.f32.vlgmr.msra.gmra.mxu3 %vm207_vm1, %v1343_v21 }
 0xd80   :  { %1842 = vmatpush.msra.mxu3 %v3493_v29 }
 0xd82   :  { %1843 = vmatpush.msra.mxu3 %v3496_v31 }
 0xd84   :  { %1844 = vmatpush.msra.mxu3 %v3499_v33 }
 0xd86   :  { %1845 = vmatpush.msra.mxu3 %v3502_v34 }
 0xd9f   :  { %v1371_v22 = vpop.permute.xlu1 %1370 }
 0xda0   :  { %2734 = vmatmul.msk.f32.vlgmr.msra.gmra.mxu1 %vm207_vm1, %v1371_v22  ;;  %2736 = vmatmul.msk.f32.vlgmr.msra.gmra.mxu0 %vm207_vm1, %v1371_v22 }
 0xda1   :  { %1954 = vmatpush.msra.mxu1 %v3540_v39  ;;  %1983 = vmatpush.msra.mxu0 %v3545_v41 }
 0xda3   :  { %1955 = vmatpush.msra.mxu1 %v3542_v40  ;;  %1984 = vmatpush.msra.mxu0 %v3547_v42 }
 0xda5   :  { %1956 = vmatpush.msra.mxu1 %v3550_v43  ;;  %1985 = vmatpush.msra.mxu0 %v3555_v44 }
 0xda7   :  { %1957 = vmatpush.msra.mxu1 %v3558_v45  ;;  %1986 = vmatpush.msra.mxu0 %v3563_v46 }
 0xe02   :  { %v1363_v23 = vpop.f32.mrf.mxu3 }
 0xe1d   :  { %v1391_v24 = vpop.f32.mrf.mxu1  ;;  %v1449_v25 = vpop.f32.mrf.mxu0 }
 0xe1e   :  { %v1392_v26 = vadd.f32 %v1391_v24, %v1363_v23  ;;  %v1453_v27 = vrot.slane %v1449_v25, 6  ;;  %v1454_v30 = vrot.slane %v1449_v25, 7 }
 0xe20   :  { %v1394_v32 = vadd.f32 %v3609_v51, %v1392_v26  ;;  %v1457_v36 = vadd.f32 %v1453_v27, %v3518_v16  ;;  %v1458_v38 = vadd.f32 %v1454_v30, %v3521_v52 }
 0xe22   :  { %2879 = vtanh.f32 %v1394_v32  ;;  %v2735_v1 = vmul.f32 -1.442695, %v1394_v32  ;;  %v2737_v50 = vmul.f32 -1.442695, %v1457_v36  ;;  %v2738_v53 = vmul.f32 -1.442695, %v1458_v38 }
 0xe23   :  { %2881 = vtanh.f32 %v1457_v36 }
 0xe24   :  { %2883 = vtanh.f32 %v1458_v38 }
 0xe25   :  { %2885 = vpow2.f32 %v2735_v1 }
 0xe28   :  { %v2880_v35 = vpop.eup %2879 }
 0xe29   :  { %v2882_v47 = vpop.eup %2881  ;;  %1417 = vrot.lane.b32.xlu2 %v2880_v35, %s3233_s3 }
 0xe2a   :  { %1509 = vrot.lane.b32.xlu0 %v2882_v47, %s3233_s3  ;;  %v2884_v48 = vpop.eup %2883 }
 0xe2b   :  { %1511 = vrot.lane.b32.xlu1 %v2884_v48, %s3233_s3  ;;  %v2886_v14 = vpop.eup %2885 }
 0xe2c   :  { %v1398_v49 = vadd.f32 1.0, %v2886_v14 }
 0xe2e   :  { %2887 = vrcp.f32 %v1398_v49  ;;  %v1410_v60 = vand.u32 2147483648, %v1398_v49  ;;  %vm1404_vm13 = vweird.f32 %v1398_v49  ;;  %v1408_v61 = vand.u32 2147483647, %v1398_v49 }
 0xe2f   :  { %2889 = vpow2.f32 %v2737_v50 }
 0xe30   :  { %2891 = vpow2.f32 %v2738_v53  ;;  %v1411_v2 = vor.u32 1.1754944e-38, %v1410_v60  ;;  %vm1409_vm0 = vcmp.eq.f32.partialorder %v1408_v61, 8.507059e+37  ;;  %v1502_v53 = vrot.slane %v3621_v63, 7 }
 0xe34   :  { %v2888_v6 = vpop.eup %2887 }
 0xe35   :  { %v1400_v20 = vmul.f32 %v2888_v6, %v1398_v49  ;;  %v2890_v56 = vpop.eup %2889  ;;  %vm1405_vm12 = vweird.f32 %v2888_v6 }
 0xe36   :  { %v1465_v57 = vadd.f32 1.0, %v2890_v56  ;;  %v2892_v59 = vpop.eup %2891  ;;  %vm1406_vm15 = vmor %vm1404_vm13, %vm1405_vm12 }
 0xe37   :  { %v1401_v54 = vsub.f32 1.0, %v1400_v20  ;;  %v1466_v62 = vadd.f32 1.0, %v2892_v59 }
 0xe38   :  { %2893 = vrcp.f32 %v1465_v57  ;;  %v1478_v17 = vand.u32 2147483648, %v1465_v57  ;;  %vm1472_vm4 = vweird.f32 %v1465_v57  ;;  %v1476_v19 = vand.u32 2147483647, %v1465_v57 }
 0xe39   :  { %v1402_v55 = vmul.f32 %v2888_v6, %v1401_v54  ;;  %2895 = vrcp.f32 %v1466_v62  ;;  %v1493_v23 = vand.u32 2147483648, %v1466_v62  ;;  %vm1487_vm2 = vweird.f32 %v1466_v62 }
 0xe3a   :  { %v1479_v24 = vor.u32 1.1754944e-38, %v1478_v17  ;;  %v1491_v25 = vand.u32 2147483647, %v1466_v62  ;;  %vm1477_vm7 = vcmp.eq.f32.partialorder %v1476_v19, 8.507059e+37 }
 0xe3b   :  { %v1403_v58 = vadd.f32 %v2888_v6, %v1402_v55  ;;  %v1494_v36 = vor.u32 1.1754944e-38, %v1493_v23 }
 0xe3c   :  { %vm1492_vm9 = vcmp.eq.f32.partialorder %v1491_v25, 8.507059e+37 }
 0xe3d   :  { %v1407_v0 = vsel %vm1406_vm15, %v2888_v6, %v1403_v58  ;;  %v1501_v6 = vrot.slane %v3629_v28, 7 }
 0xe3e   :  { %v1412_v5 = vsel %vm1409_vm0, %v1411_v2, %v1407_v0  ;;  %v2894_v18 = vpop.eup %2893 }
 0xe3f   :  { %v1468_v8 = vmul.f32 %v2894_v18, %v1465_v57  ;;  %v2896_v9 = vpop.eup %2895  ;;  %vm1473_vm3 = vweird.f32 %v2894_v18  ;;  %v1415_v48 = vmul.f32 %v1412_v5, %v3625_v4 }
 0xe40   :  { %v1483_v10 = vmul.f32 %v2896_v9, %v1466_v62  ;;  %vm1474_vm5 = vmor %vm1472_vm4, %vm1473_vm3  ;;  %vm1488_vm6 = vweird.f32 %v2896_v9 }
 0xe41   :  { %v1469_v11 = vsub.f32 1.0, %v1468_v8  ;;  %vm1489_vm8 = vmor %vm1487_vm2, %vm1488_vm6 }
 0xe42   :  { %v1484_v12 = vsub.f32 1.0, %v1483_v10 }
 0xe43   :  { %v1470_v13 = vmul.f32 %v2894_v18, %v1469_v11 }
 0xe44   :  { %v1485_v15 = vmul.f32 %v2896_v9, %v1484_v12 }
 0xe45   :  { %v1471_v37 = vadd.f32 %v2894_v18, %v1470_v13 }
 0xe46   :  { %v1486_v21 = vadd.f32 %v2896_v9, %v1485_v15 }
 0xe47   :  { %v1475_v22 = vsel %vm1474_vm5, %v2894_v18, %v1471_v37 }
 0xe48   :  { %v1480_v26 = vsel %vm1477_vm7, %v1479_v24, %v1475_v22  ;;  %v1490_v30 = vsel %vm1489_vm8, %v2896_v9, %v1486_v21 }
 0xe49   :  { %v1495_v35 = vsel %vm1492_vm9, %v1494_v36, %v1490_v30  ;;  %v1505_v50 = vmul.f32 %v1501_v6, %v1480_v26 }
 0xe4a   :  { %v1506_v55 = vmul.f32 %v1502_v53, %v1495_v35 }
 0xe83   :  { %v1418_v3 = vpop.permute.xlu2 %1417 }
 0xe84   :  { %v1420_v7 = vmul.f32 %v1418_v3, %v1412_v5 }
 0xe86   :  { %1422 = vrot.lane.b32.xlu2 %v1420_v7, %s3245_s9 }
 0xe9c   :  { %v1510_v27 = vpop.permute.xlu0 %1509 }
 0xe9d   :  { %v1515_v32 = vmul.f32 %v1510_v27, %v1480_v26  ;;  %v1512_v38 = vpop.permute.xlu1 %1511 }
 0xe9e   :  { %v1516_v47 = vmul.f32 %v1512_v38, %v1495_v35 }
 0xe9f   :  { %1519 = vrot.lane.b32.xlu0 %v1515_v32, %s3245_s9 }
 0xea0   :  { %1521 = vrot.lane.b32.xlu1 %v1516_v47, %s3245_s9 }
 0xee0   :  { %v1423_v1 = vpop.permute.xlu2 %1422 }
 0xee1   :  { %v3662_v14 = vadd.f32 %v1423_v1, %v1415_v48 }
 0xee3   :  { %2897 = vtanh.f32 %v3662_v14 }
 0xee9   :  { %v2898_v49 = vpop.eup %2897 }
 0xeea   :  { %1428 = vrot.lane.b32.xlu2 %v2898_v49, %s3233_s3 }
 0xf11   :  { %v1520_v20 = vpop.permute.xlu0 %1519 }
 0xf12   :  { %v3668_v54 = vadd.f32 %v1520_v20, %v1505_v50  ;;  %v1522_v4 = vpop.permute.xlu1 %1521 }
 0xf13   :  { %v3671_v56 = vadd.f32 %v1522_v4, %v1506_v55 }
 0xf14   :  { %2899 = vtanh.f32 %v3668_v54 }
 0xf15   :  { %2901 = vtanh.f32 %v3671_v56 }
 0xf1a   :  { %v2900_v57 = vpop.eup %2899 }
 0xf1b   :  { %1531 = vrot.lane.b32.xlu0 %v2900_v57, %s3233_s3  ;;  %v2902_v58 = vpop.eup %2901 }
 0xf1c   :  { %1533 = vrot.lane.b32.xlu1 %v2902_v58, %s3233_s3 }
 0xf44   :  { %v1429_v28 = vpop.permute.xlu2 %1428 }
 0xf45   :  { %v1431_v59 = vmul.f32 %v1429_v28, %v1412_v5 }
 0xf47   :  { %1540 = vrot.lane.b32.xlu1 %v1431_v59, %s3245_s9 }
 0xf8d   :  { %v1532_v63 = vpop.permute.xlu0 %1531 }
 0xf8e   :  { %v1537_v60 = vmul.f32 %v1532_v63, %v1480_v26  ;;  %v1534_v61 = vpop.permute.xlu1 %1533 }
 0xf8f   :  { %v1538_v62 = vmul.f32 %v1534_v61, %v1495_v35 }
 0xf90   :  { %v1566_v0 = vrot.slane %v1537_v60, 2 }
 0xf91   :  { %v1567_v2 = vrot.slane %v1538_v62, 1 }
 0xf93   :  { %v1568_v3 = vsel %vm1171_vm14, %v1567_v2, %v1566_v0 }
 0xf94   :  { %1569 = vrot.lane.b32.xlu0 %v1568_v3, %s3245_s9 }
 0xfb9   :  { %v1541_v7 = vpop.permute.xlu1 %1540 }
 0xfba   :  { %2739 = vmatmul.msk.f32.vlgmr.msrb.gmra.mxu2 %vm207_vm1, %v1541_v7 }
 0xfbb   :  { %2041 = vmatpush.msrb.mxu2 %v3493_v29 }
 0xfbd   :  { %2042 = vmatpush.msrb.mxu2 %v3496_v31 }
 0xfbf   :  { %2043 = vmatpush.msrb.mxu2 %v3499_v33 }
 0xfc1   :  { %2044 = vmatpush.msrb.mxu2 %v3502_v34 }
0x1006   :  { %v1570_v5 = vpop.permute.xlu0 %1569 }
0x1007   :  { %2740 = vmatmul.msk.f32.vlgmr.msrb.gmra.mxu3 %vm207_vm1, %v1570_v5  ;;  %2742 = vmatmul.msk.f32.vlgmr.msrb.gmra.mxu1 %vm207_vm1, %v1570_v5 }
0x1008   :  { %2153 = vmatpush.msrb.mxu3 %v3540_v39  ;;  %2182 = vmatpush.msrb.mxu1 %v3545_v41 }
0x100a   :  { %2154 = vmatpush.msrb.mxu3 %v3542_v40  ;;  %2183 = vmatpush.msrb.mxu1 %v3547_v42 }
0x100c   :  { %2155 = vmatpush.msrb.mxu3 %v3550_v43  ;;  %2184 = vmatpush.msrb.mxu1 %v3555_v44 }
0x100e   :  { %2156 = vmatpush.msrb.mxu3 %v3558_v45  ;;  %2185 = vmatpush.msrb.mxu1 %v3563_v46 }
0x103d   :  { %v1561_v8 = vpop.f32.mrf.mxu2 }
0x1084   :  { %v1648_v29 = vpop.f32.mrf.mxu1 }
0x1085   :  { %v1652_v31 = vrot.slane %v1648_v29, 5  ;;  %v1653_v33 = vrot.slane %v1648_v29, 6 }
0x1087   :  { %v1656_v34 = vadd.f32 %v1652_v31, %v3518_v16  ;;  %v1657_v18 = vadd.f32 %v1653_v33, %v3521_v52 }
0x1089   :  { %2903 = vtanh.f32 %v1656_v34  ;;  %v2743_v37 = vmul.f32 -1.442695, %v1656_v34  ;;  %v2744_v22 = vmul.f32 -1.442695, %v1657_v18 }
0x108a   :  { %2905 = vtanh.f32 %v1657_v18  ;;  %v1590_v9 = vpop.f32.mrf.mxu3 }
0x108b   :  { %v1591_v10 = vadd.f32 %v1590_v9, %v1561_v8 }
0x108d   :  { %v1593_v11 = vadd.f32 %v3609_v51, %v1591_v10  ;;  %v1700_v10 = vrot.slane %v3668_v54, 7 }
0x108f   :  { %v2904_v12 = vpop.eup %2903  ;;  %2907 = vtanh.f32 %v1593_v11  ;;  %v2741_v24 = vmul.f32 -1.442695, %v1593_v11 }
0x1090   :  { %v2906_v13 = vpop.eup %2905  ;;  %1708 = vrot.lane.b32.xlu2 %v2904_v12, %s3233_s3  ;;  %2909 = vpow2.f32 %v2743_v37  ;;  %v1701_v37 = vrot.slane %v3671_v56, 7 }
0x1091   :  { %1710 = vrot.lane.b32.xlu0 %v2906_v13, %s3233_s3 }
0x1095   :  { %v2908_v15 = vpop.eup %2907 }
0x1096   :  { %1616 = vrot.lane.b32.xlu1 %v2908_v15, %s3233_s3  ;;  %v2910_v17 = vpop.eup %2909 }
0x1097   :  { %v1664_v19 = vadd.f32 1.0, %v2910_v17 }
0x1099   :  { %2911 = vrcp.f32 %v1664_v19  ;;  %v1677_v36 = vand.u32 2147483648, %v1664_v19  ;;  %vm1671_vm11 = vweird.f32 %v1664_v19  ;;  %v1675_v35 = vand.u32 2147483647, %v1664_v19 }
0x109a   :  { %2913 = vpow2.f32 %v2744_v22 }
0x109b   :  { %2915 = vpow2.f32 %v2741_v24  ;;  %v1678_v1 = vor.u32 1.1754944e-38, %v1677_v36  ;;  %vm1676_vm13 = vcmp.eq.f32.partialorder %v1675_v35, 8.507059e+37 }
0x109f   :  { %v2912_v21 = vpop.eup %2911 }
0x10a0   :  { %v1667_v23 = vmul.f32 %v2912_v21, %v1664_v19  ;;  %v2914_v27 = vpop.eup %2913  ;;  %vm1672_vm10 = vweird.f32 %v2912_v21 }
0x10a1   :  { %v1665_v30 = vadd.f32 1.0, %v2914_v27  ;;  %v2916_v38 = vpop.eup %2915  ;;  %vm1673_vm12 = vmor %vm1671_vm11, %vm1672_vm10 }
0x10a2   :  { %v1668_v25 = vsub.f32 1.0, %v1667_v23  ;;  %v1597_v48 = vadd.f32 1.0, %v2916_v38 }
0x10a3   :  { %2917 = vrcp.f32 %v1665_v30  ;;  %v1692_v63 = vand.u32 2147483648, %v1665_v30  ;;  %vm1686_vm0 = vweird.f32 %v1665_v30  ;;  %v1690_v61 = vand.u32 2147483647, %v1665_v30 }
0x10a4   :  { %v1669_v26 = vmul.f32 %v2912_v21, %v1668_v25  ;;  %2919 = vrcp.f32 %v1597_v48  ;;  %v1609_v3 = vand.u32 2147483648, %v1597_v48  ;;  %vm1603_vm6 = vweird.f32 %v1597_v48 }
0x10a5   :  { %v1693_v0 = vor.u32 1.1754944e-38, %v1692_v63  ;;  %vm1691_vm5 = vcmp.eq.f32.partialorder %v1690_v61, 8.507059e+37  ;;  %v1607_v29 = vand.u32 2147483647, %v1597_v48 }
0x10a6   :  { %v1670_v32 = vadd.f32 %v2912_v21, %v1669_v26  ;;  %v1610_v34 = vor.u32 1.1754944e-38, %v1609_v3 }
0x10a7   :  { %vm1608_vm7 = vcmp.eq.f32.partialorder %v1607_v29, 8.507059e+37 }
0x10a8   :  { %v1674_v47 = vsel %vm1673_vm12, %v2912_v21, %v1670_v32 }
0x10a9   :  { %v1679_v6 = vsel %vm1676_vm13, %v1678_v1, %v1674_v47  ;;  %v2918_v20 = vpop.eup %2917  ;;  %v3732_v1 = vld [vmem:[#allocation10 + $0x18] sm:$0xff] }
0x10aa   :  { %v1682_v53 = vmul.f32 %v2918_v20, %v1665_v30  ;;  %v2920_v55 = vpop.eup %2919  ;;  %vm1687_vm15 = vweird.f32 %v2918_v20  ;;  %v1704_v11 = vmul.f32 %v1700_v10, %v1679_v6 }
0x10ab   :  { %v1599_v57 = vmul.f32 %v2920_v55, %v1597_v48  ;;  %vm1688_vm3 = vmor %vm1686_vm0, %vm1687_vm15  ;;  %vm1604_vm4 = vweird.f32 %v2920_v55 }
0x10ac   :  { %v1683_v4 = vsub.f32 1.0, %v1682_v53  ;;  %vm1605_vm2 = vmor %vm1603_vm6, %vm1604_vm4 }
0x10ad   :  { %v1600_v28 = vsub.f32 1.0, %v1599_v57 }
0x10ae   :  { %v1684_v58 = vmul.f32 %v2918_v20, %v1683_v4 }
0x10af   :  { %v1601_v60 = vmul.f32 %v2920_v55, %v1600_v28 }
0x10b0   :  { %v1685_v59 = vadd.f32 %v2918_v20, %v1684_v58 }
0x10b1   :  { %v1602_v2 = vadd.f32 %v2920_v55, %v1601_v60 }
0x10b2   :  { %v1689_v62 = vsel %vm1688_vm3, %v2918_v20, %v1685_v59 }
0x10b3   :  { %v1694_v5 = vsel %vm1691_vm5, %v1693_v0, %v1689_v62  ;;  %v1606_v33 = vsel %vm1605_vm2, %v2920_v55, %v1602_v2 }
0x10b4   :  { %v1611_v8 = vsel %vm1608_vm7, %v1610_v34, %v1606_v33  ;;  %v1705_v17 = vmul.f32 %v1701_v37, %v1694_v5 }
0x10b5   :  { %v1614_v22 = vmul.f32 %v1611_v8, %v3662_v14 }
0x10ea   :  { %v1709_v49 = vpop.permute.xlu2 %1708 }
0x10eb   :  { %v1714_v50 = vmul.f32 %v1709_v49, %v1679_v6 }
0x10ed   :  { %1718 = vrot.lane.b32.xlu2 %v1714_v50, %s3245_s9 }
0x1103   :  { %v1711_v7 = vpop.permute.xlu0 %1710 }
0x1104   :  { %v1715_v31 = vmul.f32 %v1711_v7, %v1694_v5 }
0x1106   :  { %1720 = vrot.lane.b32.xlu0 %v1715_v31, %s3245_s9 }
0x1108   :  { %v1617_v18 = vpop.permute.xlu1 %1616 }
0x1109   :  { %v1619_v9 = vmul.f32 %v1617_v18, %v1611_v8 }
0x110b   :  { %1621 = vrot.lane.b32.xlu1 %v1619_v9, %s3245_s9 }
0x1147   :  { %v1719_v12 = vpop.permute.xlu2 %1718 }
0x1148   :  { %v3704_v13 = vadd.f32 %v1719_v12, %v1704_v11 }
0x114a   :  { %2921 = vtanh.f32 %v3704_v13 }
0x1150   :  { %v2922_v15 = vpop.eup %2921 }
0x1151   :  { %1730 = vrot.lane.b32.xlu2 %v2922_v15, %s3233_s3 }
0x1178   :  { %v1721_v19 = vpop.permute.xlu0 %1720 }
0x1179   :  { %v3709_v21 = vadd.f32 %v1721_v19, %v1705_v17 }
0x117b   :  { %2923 = vtanh.f32 %v3709_v21 }
0x117d   :  { %v1622_v54 = vpop.permute.xlu1 %1621 }
0x117e   :  { %v3713_v23 = vadd.f32 %v1622_v54, %v1614_v22 }
0x1180   :  { %2925 = vtanh.f32 %v3713_v23 }
0x1181   :  { %v2924_v24 = vpop.eup %2923 }
0x1182   :  { %1732 = vrot.lane.b32.xlu0 %v2924_v24, %s3233_s3 }
0x1186   :  { %v2926_v25 = vpop.eup %2925 }
0x1187   :  { %1627 = vrot.lane.b32.xlu1 %v2926_v25, %s3233_s3 }
0x11ab   :  { %v1731_v56 = vpop.permute.xlu2 %1730 }
0x11ac   :  { %v1736_v26 = vmul.f32 %v1731_v56, %v1679_v6 }
0x11ae   :  { %v1765_v32 = vrot.slane %v1736_v26, 3 }
0x11f4   :  { %v1733_v27 = vpop.permute.xlu0 %1732 }
0x11f5   :  { %v1737_v30 = vmul.f32 %v1733_v27, %v1694_v5 }
0x11f7   :  { %v1766_v36 = vrot.slane %v1737_v30, 2 }
0x11f9   :  { %v1767_v38 = vsel %vm1171_vm14, %v1766_v36, %v1765_v32  ;;  %v1628_v14 = vpop.permute.xlu1 %1627 }
0x11fa   :  { %1768 = vrot.lane.b32.xlu2 %v1767_v38, %s3245_s9  ;;  %v1630_v35 = vmul.f32 %v1628_v14, %v1611_v8 }
0x11fc   :  { %1739 = vrot.lane.b32.xlu0 %v1630_v35, %s3245_s9 }
0x1254   :  { %v1769_v47 = vpop.permute.xlu2 %1768 }
0x1255   :  { %2746 = vmatmul.msk.f32.vlgmr.msra.gmra.mxu2 %vm207_vm1, %v1769_v47  ;;  %2748 = vmatmul.msk.f32.vlgmr.msra.gmra.mxu3 %vm207_vm1, %v1769_v47 }
0x1256   :  { %2381 = vmatpush.msra.mxu3 %v3545_v41  ;;  %2352 = vmatpush.msra.mxu2 %v3540_v39  ;;  %v3735_v39 = vld [vmem:[#allocation10 + $0x10] sm:$0xff]  ;;  %v3741_v41 = vld [vmem:[#allocation10] sm:$0xff] }
0x1258   :  { %2382 = vmatpush.msra.mxu3 %v3547_v42  ;;  %2353 = vmatpush.msra.mxu2 %v3542_v40  ;;  %v3738_v40 = vld [vmem:[#allocation10 + $0x8] sm:$0xff] }
0x125a   :  { %2383 = vmatpush.msra.mxu3 %v3555_v44  ;;  %2354 = vmatpush.msra.mxu2 %v3550_v43 }
0x125c   :  { %2384 = vmatpush.msra.mxu3 %v3563_v46  ;;  %2355 = vmatpush.msra.mxu2 %v3558_v45 }
0x126e   :  { %v1740_v48 = vpop.permute.xlu0 %1739 }
0x126f   :  { %2745 = vmatmul.msk.f32.vlgmr.msrb.gmra.mxu0 %vm207_vm1, %v1740_v48 }
0x1270   :  { %2240 = vmatpush.msrb.mxu0 %v3732_v1 }
0x1272   :  { %2241 = vmatpush.msrb.mxu0 %v3735_v39 }
0x1274   :  { %2242 = vmatpush.msrb.mxu0 %v3738_v40 }
0x1276   :  { %2243 = vmatpush.msrb.mxu0 %v3741_v41 }
0x12d8   :  { %v1847_v42 = vpop.f32.mrf.mxu3  ;;  %v1789_v50 = vpop.f32.mrf.mxu2 }
0x12d9   :  { %v1851_v43 = vrot.slane %v1847_v42, 4  ;;  %v1852_v44 = vrot.slane %v1847_v42, 5 }
0x12db   :  { %v1855_v45 = vadd.f32 %v1851_v43, %v3518_v16  ;;  %v1856_v46 = vadd.f32 %v1852_v44, %v3521_v52  ;;  %v1900_v44 = vrot.slane %v3709_v21, 7 }
0x12dd   :  { %2927 = vtanh.f32 %v1855_v45  ;;  %v2750_v57 = vmul.f32 -1.442695, %v1856_v46  ;;  %v2749_v63 = vmul.f32 -1.442695, %v1855_v45 }
0x12de   :  { %2929 = vtanh.f32 %v1856_v46 }
0x12e3   :  { %v2928_v49 = vpop.eup %2927 }
0x12e4   :  { %v2930_v6 = vpop.eup %2929  ;;  %1907 = vrot.lane.b32.xlu1 %v2928_v49, %s3233_s3 }
0x12e5   :  { %1909 = vrot.lane.b32.xlu2 %v2930_v6, %s3233_s3 }
0x12ec   :  { %v1760_v20 = vpop.f32.mrf.mxu0 }
0x12ed   :  { %v1790_v53 = vadd.f32 %v1789_v50, %v1760_v20  ;;  %v1899_v50 = vrot.slane %v3704_v13, 7 }
0x12ef   :  { %v1792_v55 = vadd.f32 %v3609_v51, %v1790_v53 }
0x12f1   :  { %2931 = vtanh.f32 %v1792_v55  ;;  %v2747_v29 = vmul.f32 -1.442695, %v1792_v55 }
0x12f2   :  { %2933 = vpow2.f32 %v2750_v57 }
0x12f7   :  { %v2932_v4 = vpop.eup %2931 }
0x12f8   :  { %1815 = vrot.lane.b32.xlu0 %v2932_v4, %s3233_s3  ;;  %v2934_v58 = vpop.eup %2933 }
0x12f9   :  { %v1864_v28 = vadd.f32 1.0, %v2934_v58 }
0x12fb   :  { %2935 = vrcp.f32 %v1864_v28  ;;  %v1891_v51 = vand.u32 2147483648, %v1864_v28  ;;  %vm1885_vm9 = vweird.f32 %v1864_v28  ;;  %v1889_v7 = vand.u32 2147483647, %v1864_v28 }
0x12fc   :  { %2937 = vpow2.f32 %v2749_v63 }
0x12fd   :  { %v1892_v31 = vor.u32 1.1754944e-38, %v1891_v51  ;;  %vm1890_vm11 = vcmp.eq.f32.partialorder %v1889_v7, 8.507059e+37  ;;  %v3039_v7 = vld [vmem:[#allocation13 + $0x18] sm:$0xff] }
0x1301   :  { %v2936_v59 = vpop.eup %2935 }
0x1302   :  { %v1881_v60 = vmul.f32 %v2936_v59, %v1864_v28  ;;  %v2938_v62 = vpop.eup %2937  ;;  %vm1886_vm8 = vweird.f32 %v2936_v59 }
0x1303   :  { %v1863_v2 = vadd.f32 1.0, %v2938_v62  ;;  %vm1887_vm10 = vmor %vm1885_vm9, %vm1886_vm8 }
0x1304   :  { %v1882_v61 = vsub.f32 1.0, %v1881_v60 }
0x1305   :  { %2939 = vrcp.f32 %v1863_v2  ;;  %v1876_v17 = vand.u32 2147483648, %v1863_v2  ;;  %vm1870_vm13 = vweird.f32 %v1863_v2  ;;  %v1874_v19 = vand.u32 2147483647, %v1863_v2 }
0x1306   :  { %v1883_v0 = vmul.f32 %v2936_v59, %v1882_v61  ;;  %2941 = vpow2.f32 %v2747_v29  ;;  %v3041_v29 = vld [vmem:[#allocation13 + $0x10] sm:$0xff] }
0x1307   :  { %v1877_v24 = vor.u32 1.1754944e-38, %v1876_v17  ;;  %vm1875_vm0 = vcmp.eq.f32.partialorder %v1874_v19, 8.507059e+37 }
0x1308   :  { %v1884_v3 = vadd.f32 %v2936_v59, %v1883_v0 }
0x130a   :  { %v1888_v5 = vsel %vm1887_vm10, %v2936_v59, %v1884_v3 }
0x130b   :  { %v1893_v34 = vsel %vm1890_vm11, %v1892_v31, %v1888_v5  ;;  %v2940_v18 = vpop.eup %2939  ;;  %v3040_v5 = vld [vmem:[#allocation11 + $0x18] sm:$0xff]  ;;  %v3042_v31 = vld [vmem:[#allocation11 + $0x10] sm:$0xff] }
0x130c   :  { %v1866_v9 = vmul.f32 %v2940_v18, %v1863_v2  ;;  %v2942_v10 = vpop.eup %2941  ;;  %vm1871_vm12 = vweird.f32 %v2940_v18  ;;  %v1904_v45 = vmul.f32 %v1900_v44, %v1893_v34 }
0x130d   :  { %v1796_v12 = vadd.f32 1.0, %v2942_v10  ;;  %vm1872_vm15 = vmor %vm1870_vm13, %vm1871_vm12 }
0x130e   :  { %v1867_v11 = vsub.f32 1.0, %v1866_v9 }
0x130f   :  { %2943 = vrcp.f32 %v1796_v12  ;;  %v1808_v38 = vand.u32 2147483648, %v1796_v12  ;;  %vm1802_vm4 = vweird.f32 %v1796_v12  ;;  %v1806_v14 = vand.u32 2147483647, %v1796_v12 }
0x1310   :  { %v1868_v15 = vmul.f32 %v2940_v18, %v1867_v11 }
0x1311   :  { %v1809_v47 = vor.u32 1.1754944e-38, %v1808_v38  ;;  %vm1807_vm6 = vcmp.eq.f32.partialorder %v1806_v14, 8.507059e+37 }
0x1312   :  { %v1869_v37 = vadd.f32 %v2940_v18, %v1868_v15 }
0x1314   :  { %v1873_v22 = vsel %vm1872_vm15, %v2940_v18, %v1869_v37 }
0x1315   :  { %v2944_v54 = vpop.eup %2943  ;;  %v1878_v25 = vsel %vm1875_vm0, %v1877_v24, %v1873_v22 }
0x1316   :  { %v1798_v27 = vmul.f32 %v2944_v54, %v1796_v12  ;;  %vm1803_vm3 = vweird.f32 %v2944_v54  ;;  %v1903_v20 = vmul.f32 %v1899_v50, %v1878_v25 }
0x1317   :  { %vm1804_vm5 = vmor %vm1802_vm4, %vm1803_vm3 }
0x1318   :  { %v1799_v30 = vsub.f32 1.0, %v1798_v27 }
0x131a   :  { %v1800_v32 = vmul.f32 %v2944_v54, %v1799_v30 }
0x131c   :  { %v1801_v36 = vadd.f32 %v2944_v54, %v1800_v32 }
0x131e   :  { %v1805_v35 = vsel %vm1804_vm5, %v2944_v54, %v1801_v36 }
0x131f   :  { %v1810_v42 = vsel %vm1807_vm6, %v1809_v47, %v1805_v35 }
0x1320   :  { %v1813_v21 = vmul.f32 %v1810_v42, %v3713_v23 }
0x133f   :  { %v1910_v33 = vpop.permute.xlu2 %1909 }
0x1340   :  { %v1914_v8 = vmul.f32 %v1910_v33, %v1893_v34  ;;  %v3046_v33 = vld [vmem:[#allocation11] sm:$0xff] }
0x1342   :  { %1919 = vrot.lane.b32.xlu2 %v1914_v8, %s3245_s9 }
0x1356   :  { %v1908_v56 = vpop.permute.xlu1 %1907 }
0x1357   :  { %v1913_v26 = vmul.f32 %v1908_v56, %v1878_v25 }
0x1359   :  { %1917 = vrot.lane.b32.xlu1 %v1913_v26, %s3245_s9 }
0x136a   :  { %v1816_v48 = vpop.permute.xlu0 %1815 }
0x136b   :  { %v1818_v43 = vmul.f32 %v1816_v48, %v1810_v42 }
0x136d   :  { %1820 = vrot.lane.b32.xlu0 %v1818_v43, %s3245_s9 }
0x139c   :  { %v1920_v46 = vpop.permute.xlu2 %1919 }
0x139d   :  { %v3754_v49 = vadd.f32 %v1920_v46, %v1904_v45 }
0x139f   :  { %2945 = vtanh.f32 %v3754_v49 }
0x13a5   :  { %v2946_v6 = vpop.eup %2945 }
0x13a6   :  { %1931 = vrot.lane.b32.xlu2 %v2946_v6, %s3233_s3 }
0x13cb   :  { %v1918_v53 = vpop.permute.xlu1 %1917 }
0x13cc   :  { %v3759_v55 = vadd.f32 %v1918_v53, %v1903_v20 }
0x13ce   :  { %2947 = vtanh.f32 %v3759_v55 }
0x13d4   :  { %v2948_v4 = vpop.eup %2947 }
0x13d5   :  { %1929 = vrot.lane.b32.xlu1 %v2948_v4, %s3233_s3 }
0x13df   :  { %v1821_v57 = vpop.permute.xlu0 %1820 }
0x13e0   :  { %v3764_v58 = vadd.f32 %v1821_v57, %v1813_v21 }
0x13e2   :  { %2949 = vtanh.f32 %v3764_v58 }
0x13e8   :  { %v2950_v28 = vpop.eup %2949 }
0x13e9   :  { %1826 = vrot.lane.b32.xlu0 %v2950_v28, %s3233_s3 }
0x1400   :  { %v1932_v13 = vpop.permute.xlu2 %1931 }
0x1401   :  { %v1936_v59 = vmul.f32 %v1932_v13, %v1893_v34 }
0x1403   :  { %v1965_v61 = vrot.slane %v1936_v59, 3 }
0x1447   :  { %v1930_v63 = vpop.permute.xlu1 %1929 }
0x1448   :  { %v1935_v60 = vmul.f32 %v1930_v63, %v1878_v25 }
0x144a   :  { %v1964_v62 = vrot.slane %v1935_v60, 4 }
0x144c   :  { %v1966_v0 = vsel %vm1171_vm14, %v1965_v61, %v1964_v62 }
0x144d   :  { %1967 = vrot.lane.b32.xlu1 %v1966_v0, %s3245_s9 }
0x145b   :  { %v1827_v2 = vpop.permute.xlu0 %1826 }
0x145c   :  { %v1829_v23 = vmul.f32 %v1827_v2, %v1810_v42 }
0x145e   :  { %1938 = vrot.lane.b32.xlu2 %v1829_v23, %s3245_s9 }
0x14b8   :  { %v1939_v3 = vpop.permute.xlu2 %1938 }
0x14b9   :  { %2751 = vmatmul.msk.f32.vlgmr.msra.gmra.mxu1 %vm207_vm1, %v1939_v3 }
0x14ba   :  { %2439 = vmatpush.msra.mxu1 %v3732_v1  ;;  %v3043_v1 = vld [vmem:[#allocation13 + $0x8] sm:$0xff] }
0x14bc   :  { %2440 = vmatpush.msra.mxu1 %v3735_v39  ;;  %v3044_v39 = vld [vmem:[#allocation11 + $0x8] sm:$0xff] }
0x14be   :  { %2441 = vmatpush.msra.mxu1 %v3738_v40  ;;  %v3045_v40 = vld [vmem:[#allocation13] sm:$0xff] }
0x14bf   :  { %v1968_v51 = vpop.permute.xlu1 %1967 }
0x14c0   :  { %2752 = vmatmul.msk.f32.vlgmr.msra.gmra.mxu0 %vm207_vm1, %v1968_v51  ;;  %2754 = vmatmul.msk.f32.vlgmr.msrb.gmra.mxu2 %vm207_vm1, %v1968_v51 }
0x14c1   :  { %2442 = vmatpush.msra.mxu1 %v3741_v41  ;;  %2551 = vmatpush.msra.mxu0 %v3039_v7  ;;  %v3781_v41 = vld [vmem:[%s3896_s12] ss:$0 sm:$0xff] }
0x14c2   :  { %2580 = vmatpush.msrb.mxu2 %v3040_v5 }
0x14c3   :  { %2552 = vmatpush.msra.mxu0 %v3041_v29 }
0x14c4   :  { %2581 = vmatpush.msrb.mxu2 %v3042_v31 }
0x14c5   :  { %2553 = vmatpush.msra.mxu0 %v3043_v1 }
0x14c6   :  { %2582 = vmatpush.msrb.mxu2 %v3044_v39 }
0x14c7   :  { %2554 = vmatpush.msra.mxu0 %v3045_v40 }
0x14c8   :  { %2583 = vmatpush.msrb.mxu2 %v3046_v33 }
0x1536   :  { %v1959_v34 = vpop.f32.mrf.mxu1 }
0x153d   :  { %v1988_v18 = vpop.f32.mrf.mxu0 }
0x153e   :  { %v1989_v8 = vadd.f32 %v1988_v18, %v1959_v34 }
0x1540   :  { %v1991_v9 = vadd.f32 %v3781_v41, %v1989_v8 }
0x1542   :  { %2951 = vtanh.f32 %v1991_v9  ;;  %v2753_v54 = vmul.f32 -1.442695, %v1991_v9  ;;  %v2098_v9 = vrot.slane %v3759_v55, 7 }
0x1543   :  { %v2046_v10 = vpop.f32.mrf.mxu2 }
0x1544   :  { %v2050_v11 = vrot.slane %v2046_v10, 3  ;;  %v2051_v12 = vrot.slane %v2046_v10, 4  ;;  %v2099_v10 = vrot.slane %v3754_v49, 7 }
0x1546   :  { %v2054_v15 = vadd.f32 %v2050_v11, %v3518_v16  ;;  %v2055_v37 = vadd.f32 %v2051_v12, %v3521_v52 }
0x1548   :  { %v2952_v17 = vpop.eup %2951  ;;  %2953 = vtanh.f32 %v2054_v15  ;;  %v2755_v27 = vmul.f32 -1.442695, %v2054_v15  ;;  %v2756_v32 = vmul.f32 -1.442695, %v2055_v37 }
0x1549   :  { %2955 = vtanh.f32 %v2055_v37  ;;  %2014 = vrot.lane.b32.xlu2 %v2952_v17, %s3233_s3 }
0x154a   :  { %2957 = vpow2.f32 %v2753_v54 }
0x154e   :  { %v2954_v19 = vpop.eup %2953 }
0x154f   :  { %v2956_v22 = vpop.eup %2955  ;;  %2106 = vrot.lane.b32.xlu0 %v2954_v19, %s3233_s3 }
0x1550   :  { %2108 = vrot.lane.b32.xlu1 %v2956_v22, %s3233_s3  ;;  %v2958_v24 = vpop.eup %2957 }
0x1551   :  { %v1995_v25 = vadd.f32 1.0, %v2958_v24 }
0x1553   :  { %2959 = vrcp.f32 %v1995_v25  ;;  %v2007_v14 = vand.u32 2147483648, %v1995_v25  ;;  %vm2001_vm7 = vweird.f32 %v1995_v25  ;;  %v2005_v47 = vand.u32 2147483647, %v1995_v25 }
0x1554   :  { %2961 = vpow2.f32 %v2755_v27 }
0x1555   :  { %2963 = vpow2.f32 %v2756_v32  ;;  %v2008_v44 = vor.u32 1.1754944e-38, %v2007_v14  ;;  %vm2006_vm9 = vcmp.eq.f32.partialorder %v2005_v47, 8.507059e+37 }
0x1559   :  { %v2960_v56 = vpop.eup %2959 }
0x155a   :  { %v1997_v26 = vmul.f32 %v2960_v56, %v1995_v25  ;;  %vm2002_vm2 = vweird.f32 %v2960_v56  ;;  %v2962_v35 = vpop.eup %2961 }
0x155b   :  { %v2964_v48 = vpop.eup %2963  ;;  %vm2003_vm8 = vmor %vm2001_vm7, %vm2002_vm2  ;;  %v2062_v43 = vadd.f32 1.0, %v2962_v35 }
0x155c   :  { %v1998_v30 = vsub.f32 1.0, %v1997_v26  ;;  %v2063_v45 = vadd.f32 1.0, %v2964_v48 }
0x155d   :  { %2965 = vrcp.f32 %v2062_v43  ;;  %v2075_v61 = vand.u32 2147483648, %v2062_v43  ;;  %vm2069_vm12 = vweird.f32 %v2062_v43  ;;  %v2073_v0 = vand.u32 2147483647, %v2062_v43 }
0x155e   :  { %v1999_v36 = vmul.f32 %v2960_v56, %v1998_v30  ;;  %2967 = vrcp.f32 %v2063_v45  ;;  %v2090_v62 = vand.u32 2147483648, %v2063_v45  ;;  %vm2084_vm13 = vweird.f32 %v2063_v45 }
0x155f   :  { %v2088_v2 = vand.u32 2147483647, %v2063_v45  ;;  %v2076_v51 = vor.u32 1.1754944e-38, %v2075_v61  ;;  %vm2074_vm3 = vcmp.eq.f32.partialorder %v2073_v0, 8.507059e+37 }
0x1560   :  { %v2000_v38 = vadd.f32 %v2960_v56, %v1999_v36  ;;  %v2091_v7 = vor.u32 1.1754944e-38, %v2090_v62 }
0x1561   :  { %vm2089_vm4 = vcmp.eq.f32.partialorder %v2088_v2, 8.507059e+37 }
0x1562   :  { %v2004_v42 = vsel %vm2003_vm8, %v2960_v56, %v2000_v38 }
0x1563   :  { %v2009_v6 = vsel %vm2006_vm9, %v2008_v44, %v2004_v42  ;;  %v2966_v20 = vpop.eup %2965 }
0x1564   :  { %v2968_v53 = vpop.eup %2967  ;;  %v2065_v4 = vmul.f32 %v2966_v20, %v2062_v43  ;;  %vm2070_vm10 = vweird.f32 %v2966_v20  ;;  %v2012_v33 = vmul.f32 %v2009_v6, %v3764_v58 }
0x1565   :  { %v2080_v21 = vmul.f32 %v2968_v53, %v2063_v45  ;;  %vm2085_vm11 = vweird.f32 %v2968_v53  ;;  %vm2071_vm15 = vmor %vm2069_vm12, %vm2070_vm10 }
0x1566   :  { %v2066_v57 = vsub.f32 1.0, %v2065_v4  ;;  %vm2086_vm0 = vmor %vm2084_vm13, %vm2085_vm11 }
0x1567   :  { %v2081_v28 = vsub.f32 1.0, %v2080_v21 }
0x1568   :  { %v2067_v13 = vmul.f32 %v2966_v20, %v2066_v57 }
0x1569   :  { %v2082_v59 = vmul.f32 %v2968_v53, %v2081_v28 }
0x156a   :  { %v2068_v63 = vadd.f32 %v2966_v20, %v2067_v13 }
0x156b   :  { %v2083_v60 = vadd.f32 %v2968_v53, %v2082_v59 }
0x156c   :  { %v2072_v23 = vsel %vm2071_vm15, %v2966_v20, %v2068_v63 }
0x156d   :  { %v2087_v3 = vsel %vm2086_vm0, %v2968_v53, %v2083_v60  ;;  %v2077_v29 = vsel %vm2074_vm3, %v2076_v51, %v2072_v23 }
0x156e   :  { %v2092_v1 = vsel %vm2089_vm4, %v2091_v7, %v2087_v3  ;;  %v2102_v11 = vmul.f32 %v2098_v9, %v2077_v29 }
0x156f   :  { %v2103_v12 = vmul.f32 %v2099_v10, %v2092_v1 }
0x15a3   :  { %v2015_v46 = vpop.permute.xlu2 %2014 }
0x15a4   :  { %v2017_v50 = vmul.f32 %v2015_v46, %v2009_v6 }
0x15a6   :  { %2019 = vrot.lane.b32.xlu2 %v2017_v50, %s3245_s9 }
0x15c1   :  { %v2107_v5 = vpop.permute.xlu0 %2106 }
0x15c2   :  { %v2109_v31 = vpop.permute.xlu1 %2108  ;;  %v2112_v39 = vmul.f32 %v2107_v5, %v2077_v29 }
0x15c3   :  { %v2113_v40 = vmul.f32 %v2109_v31, %v2092_v1 }
0x15c4   :  { %2116 = vrot.lane.b32.xlu0 %v2112_v39, %s3245_s9 }
0x15c5   :  { %2118 = vrot.lane.b32.xlu1 %v2113_v40, %s3245_s9 }
0x1600   :  { %v2020_v34 = vpop.permute.xlu2 %2019 }
0x1601   :  { %v3793_v18 = vadd.f32 %v2020_v34, %v2012_v33 }
0x1603   :  { %2969 = vtanh.f32 %v3793_v18 }
0x1609   :  { %v2970_v8 = vpop.eup %2969 }
0x160a   :  { %2025 = vrot.lane.b32.xlu2 %v2970_v8, %s3233_s3 }
0x1636   :  { %v2117_v15 = vpop.permute.xlu0 %2116 }
0x1637   :  { %v2119_v37 = vpop.permute.xlu1 %2118  ;;  %v3799_v17 = vadd.f32 %v2117_v15, %v2102_v11 }
0x1638   :  { %v3801_v19 = vadd.f32 %v2119_v37, %v2103_v12 }
0x1639   :  { %2971 = vtanh.f32 %v3799_v17 }
0x163a   :  { %2973 = vtanh.f32 %v3801_v19 }
0x163f   :  { %v2972_v58 = vpop.eup %2971 }
0x1640   :  { %v2974_v22 = vpop.eup %2973  ;;  %2128 = vrot.lane.b32.xlu0 %v2972_v58, %s3233_s3 }
0x1641   :  { %2130 = vrot.lane.b32.xlu1 %v2974_v22, %s3233_s3 }
0x1664   :  { %v2026_v55 = vpop.permute.xlu2 %2025 }
0x1665   :  { %v2028_v49 = vmul.f32 %v2026_v55, %v2009_v6 }
0x1667   :  { %2137 = vrot.lane.b32.xlu0 %v2028_v49, %s3245_s9 }
0x16b2   :  { %v2129_v54 = vpop.permute.xlu0 %2128 }
0x16b3   :  { %v2131_v24 = vpop.permute.xlu1 %2130  ;;  %v2134_v25 = vmul.f32 %v2129_v54, %v2077_v29 }
0x16b4   :  { %v2135_v56 = vmul.f32 %v2131_v24, %v2092_v1 }
0x16b5   :  { %v2163_v26 = vrot.slane %v2134_v25, 5 }
0x16b6   :  { %v2164_v27 = vrot.slane %v2135_v56, 4 }
0x16b8   :  { %v2165_v30 = vsel %vm1171_vm14, %v2164_v27, %v2163_v26 }
0x16b9   :  { %2166 = vrot.lane.b32.xlu1 %v2165_v30, %s3245_s9 }
0x16d9   :  { %v2138_v32 = vpop.permute.xlu0 %2137 }
0x16da   :  { %2757 = vmatmul.msk.f32.vlgmr.msrb.gmra.mxu3 %vm207_vm1, %v2138_v32 }
0x172b   :  { %v2167_v36 = vpop.permute.xlu1 %2166 }
0x172c   :  { %2758 = vmatmul.msk.f32.vlgmr.msrb.gmra.mxu1 %vm207_vm1, %v2167_v36  ;;  %2760 = vmatmul.msk.f32.vlgmr.msrb.gmra.mxu0 %vm207_vm1, %v2167_v36  ;;  %v2297_v36 = vrot.slane %v3799_v17, 7 }
0x175d   :  { %v2158_v38 = vpop.f32.mrf.mxu3 }
0x17a9   :  { %v2187_v14 = vpop.f32.mrf.mxu1  ;;  %v2245_v35 = vpop.f32.mrf.mxu0 }
0x17aa   :  { %v2188_v47 = vadd.f32 %v2187_v14, %v2158_v38  ;;  %v2249_v48 = vrot.slane %v2245_v35, 2  ;;  %v2250_v42 = vrot.slane %v2245_v35, 3 }
0x17ac   :  { %v2190_v43 = vadd.f32 %v3781_v41, %v2188_v47  ;;  %v2253_v44 = vadd.f32 %v2249_v48, %v3518_v16  ;;  %v2254_v45 = vadd.f32 %v2250_v42, %v3521_v52 }
0x17ae   :  { %2975 = vtanh.f32 %v2190_v43  ;;  %v2761_v20 = vmul.f32 -1.442695, %v2253_v44  ;;  %v2759_v57 = vmul.f32 -1.442695, %v2190_v43  ;;  %v2762_v13 = vmul.f32 -1.442695, %v2254_v45 }
0x17af   :  { %2977 = vtanh.f32 %v2253_v44  ;;  %v2298_v44 = vrot.slane %v3801_v19, 7 }
0x17b0   :  { %2979 = vtanh.f32 %v2254_v45 }
0x17b1   :  { %2981 = vpow2.f32 %v2761_v20 }
0x17b4   :  { %v2976_v46 = vpop.eup %2975 }
0x17b5   :  { %v2978_v6 = vpop.eup %2977  ;;  %2213 = vrot.lane.b32.xlu1 %v2976_v46, %s3233_s3 }
0x17b6   :  { %2305 = vrot.lane.b32.xlu2 %v2978_v6, %s3233_s3  ;;  %v2980_v50 = vpop.eup %2979 }
0x17b7   :  { %2307 = vrot.lane.b32.xlu0 %v2980_v50, %s3233_s3  ;;  %v2982_v53 = vpop.eup %2981 }
0x17b8   :  { %v2261_v4 = vadd.f32 1.0, %v2982_v53 }
0x17ba   :  { %2983 = vrcp.f32 %v2261_v4  ;;  %v2274_v2 = vand.u32 2147483648, %v2261_v4  ;;  %vm2268_vm6 = vweird.f32 %v2261_v4  ;;  %v2272_v23 = vand.u32 2147483647, %v2261_v4 }
0x17bb   :  { %2985 = vpow2.f32 %v2759_v57 }
0x17bc   :  { %2987 = vpow2.f32 %v2762_v13  ;;  %v2275_v7 = vor.u32 1.1754944e-38, %v2274_v2  ;;  %vm2273_vm7 = vcmp.eq.f32.partialorder %v2272_v23, 8.507059e+37 }
0x17c0   :  { %v2984_v21 = vpop.eup %2983 }
0x17c1   :  { %v2264_v28 = vmul.f32 %v2984_v21, %v2261_v4  ;;  %v2986_v63 = vpop.eup %2985  ;;  %vm2269_vm5 = vweird.f32 %v2984_v21 }
0x17c2   :  { %v2194_v61 = vadd.f32 1.0, %v2986_v63  ;;  %v2988_v62 = vpop.eup %2987  ;;  %vm2270_vm2 = vmor %vm2268_vm6, %vm2269_vm5 }
0x17c3   :  { %v2265_v59 = vsub.f32 1.0, %v2264_v28  ;;  %v2262_v3 = vadd.f32 1.0, %v2988_v62 }
0x17c4   :  { %2989 = vrcp.f32 %v2194_v61  ;;  %v2206_v11 = vand.u32 2147483648, %v2194_v61  ;;  %vm2200_vm9 = vweird.f32 %v2194_v61  ;;  %v2204_v15 = vand.u32 2147483647, %v2194_v61 }
0x17c5   :  { %v2266_v60 = vmul.f32 %v2984_v21, %v2265_v59  ;;  %2991 = vrcp.f32 %v2262_v3  ;;  %v2289_v55 = vand.u32 2147483648, %v2262_v3  ;;  %vm2283_vm13 = vweird.f32 %v2262_v3 }
0x17c6   :  { %v2207_v58 = vor.u32 1.1754944e-38, %v2206_v11  ;;  %vm2205_vm12 = vcmp.eq.f32.partialorder %v2204_v15, 8.507059e+37  ;;  %v2287_v24 = vand.u32 2147483647, %v2262_v3 }
0x17c7   :  { %v2267_v0 = vadd.f32 %v2984_v21, %v2266_v60  ;;  %v2290_v26 = vor.u32 1.1754944e-38, %v2289_v55 }
0x17c8   :  { %vm2288_vm0 = vcmp.eq.f32.partialorder %v2287_v24, 8.507059e+37 }
0x17c9   :  { %v2271_v51 = vsel %vm2270_vm2, %v2984_v21, %v2267_v0 }
0x17ca   :  { %v2276_v5 = vsel %vm2273_vm7, %v2275_v7, %v2271_v51  ;;  %v2990_v31 = vpop.eup %2989 }
0x17cb   :  { %v2196_v39 = vmul.f32 %v2990_v31, %v2194_v61  ;;  %v2992_v40 = vpop.eup %2991  ;;  %vm2201_vm8 = vweird.f32 %v2990_v31  ;;  %v2301_v38 = vmul.f32 %v2297_v36, %v2276_v5 }
0x17cc   :  { %v2279_v34 = vmul.f32 %v2992_v40, %v2262_v3  ;;  %vm2202_vm10 = vmor %vm2200_vm9, %vm2201_vm8  ;;  %vm2284_vm11 = vweird.f32 %v2992_v40 }
0x17cd   :  { %v2197_v33 = vsub.f32 1.0, %v2196_v39  ;;  %vm2285_vm15 = vmor %vm2283_vm13, %vm2284_vm11 }
0x17ce   :  { %v2280_v9 = vsub.f32 1.0, %v2279_v34 }
0x17cf   :  { %v2198_v8 = vmul.f32 %v2990_v31, %v2197_v33 }
0x17d0   :  { %v2281_v12 = vmul.f32 %v2992_v40, %v2280_v9 }
0x17d1   :  { %v2199_v10 = vadd.f32 %v2990_v31, %v2198_v8 }
0x17d2   :  { %v2282_v22 = vadd.f32 %v2992_v40, %v2281_v12 }
0x17d3   :  { %v2203_v37 = vsel %vm2202_vm10, %v2990_v31, %v2199_v10 }
0x17d4   :  { %v2208_v54 = vsel %vm2205_vm12, %v2207_v58, %v2203_v37  ;;  %v2286_v56 = vsel %vm2285_vm15, %v2992_v40, %v2282_v22 }
0x17d5   :  { %v2291_v27 = vsel %vm2288_vm0, %v2290_v26, %v2286_v56  ;;  %v2211_v48 = vmul.f32 %v2208_v54, %v3793_v18 }
0x17d6   :  { %v2302_v45 = vmul.f32 %v2298_v44, %v2291_v27 }
0x1810   :  { %v2306_v29 = vpop.permute.xlu2 %2305 }
0x1811   :  { %v2311_v1 = vmul.f32 %v2306_v29, %v2276_v5 }
0x1813   :  { %2315 = vrot.lane.b32.xlu2 %v2311_v1, %s3245_s9 }
0x1827   :  { %v2214_v49 = vpop.permute.xlu1 %2213 }
0x1828   :  { %v2216_v25 = vmul.f32 %v2214_v49, %v2208_v54 }
0x1829   :  { %v2308_v30 = vpop.permute.xlu0 %2307 }
0x182a   :  { %2218 = vrot.lane.b32.xlu1 %v2216_v25, %s3245_s9  ;;  %v2312_v32 = vmul.f32 %v2308_v30, %v2291_v27 }
0x182c   :  { %2317 = vrot.lane.b32.xlu0 %v2312_v32, %s3245_s9 }
0x186d   :  { %v2316_v14 = vpop.permute.xlu2 %2315 }
0x186e   :  { %v3823_v35 = vadd.f32 %v2316_v14, %v2301_v38 }
0x1870   :  { %2993 = vtanh.f32 %v3823_v35 }
0x1876   :  { %v2994_v47 = vpop.eup %2993 }
0x1877   :  { %2327 = vrot.lane.b32.xlu2 %v2994_v47, %s3233_s3 }
0x189c   :  { %v2219_v42 = vpop.permute.xlu1 %2218 }
0x189d   :  { %v3828_v43 = vadd.f32 %v2219_v42, %v2211_v48 }
0x189e   :  { %v2318_v17 = vpop.permute.xlu0 %2317 }
0x189f   :  { %2995 = vtanh.f32 %v3828_v43  ;;  %v3832_v46 = vadd.f32 %v2318_v17, %v2302_v45 }
0x18a1   :  { %2997 = vtanh.f32 %v3832_v46 }
0x18a5   :  { %v2996_v6 = vpop.eup %2995 }
0x18a6   :  { %2224 = vrot.lane.b32.xlu1 %v2996_v6, %s3233_s3 }
0x18a7   :  { %v2998_v50 = vpop.eup %2997 }
0x18a8   :  { %2329 = vrot.lane.b32.xlu0 %v2998_v50, %s3233_s3 }
0x18d1   :  { %v2328_v20 = vpop.permute.xlu2 %2327 }
0x18d2   :  { %v2333_v19 = vmul.f32 %v2328_v20, %v2276_v5 }
0x18d4   :  { %v2362_v57 = vrot.slane %v2333_v19, 6 }
0x1918   :  { %v2225_v18 = vpop.permute.xlu1 %2224 }
0x1919   :  { %v2227_v53 = vmul.f32 %v2225_v18, %v2208_v54 }
0x191a   :  { %v2330_v4 = vpop.permute.xlu0 %2329 }
0x191b   :  { %2336 = vrot.lane.b32.xlu0 %v2227_v53, %s3245_s9  ;;  %v2334_v21 = vmul.f32 %v2330_v4, %v2291_v27 }
0x191d   :  { %v2363_v28 = vrot.slane %v2334_v21, 5 }
0x191f   :  { %v2364_v13 = vsel %vm1171_vm14, %v2363_v28, %v2362_v57 }
0x1920   :  { %2365 = vrot.lane.b32.xlu2 %v2364_v13, %s3245_s9  ;;  %v2497_v13 = vrot.slane %v3832_v46, 7 }
0x197a   :  { %v2366_v59 = vpop.permute.xlu2 %2365 }
0x197b   :  { %2764 = vmatmul.msk.f32.vlgmr.msra.gmra.mxu3 %vm207_vm1, %v2366_v59  ;;  %2766 = vmatmul.msk.f32.vlgmr.msra.gmra.mxu1 %vm207_vm1, %v2366_v59 }
0x198d   :  { %v2337_v63 = vpop.permute.xlu0 %2336 }
0x198e   :  { %2763 = vmatmul.msk.f32.vlgmr.msra.gmra.mxu2 %vm207_vm1, %v2337_v63 }
0x19f8   :  { %v2444_v60 = vpop.f32.mrf.mxu1 }
0x19f9   :  { %v2448_v61 = vrot.slane %v2444_v60, 1  ;;  %v2449_v62 = vrot.slane %v2444_v60, 2 }
0x19fb   :  { %v2452_v0 = vadd.f32 %v2448_v61, %v3518_v16  ;;  %v2453_v2 = vadd.f32 %v2449_v62, %v3521_v52  ;;  %v2496_v62 = vrot.slane %v3823_v35, 7 }
0x19fd   :  { %2999 = vtanh.f32 %v2452_v0  ;;  %v2768_v16 = vmul.f32 -1.442695, %v2453_v2  ;;  %v2767_v40 = vmul.f32 -1.442695, %v2452_v0 }
0x19fe   :  { %3001 = vtanh.f32 %v2453_v2  ;;  %v2386_v51 = vpop.f32.mrf.mxu3 }
0x1a03   :  { %v3000_v23 = vpop.eup %2999 }
0x1a04   :  { %v3002_v3 = vpop.eup %3001  ;;  %2504 = vrot.lane.b32.xlu1 %v3000_v23, %s3233_s3 }
0x1a05   :  { %2506 = vrot.lane.b32.xlu2 %v3002_v3, %s3233_s3 }
0x1a11   :  { %v2357_v7 = vpop.f32.mrf.mxu2 }
0x1a12   :  { %v2387_v5 = vadd.f32 %v2386_v51, %v2357_v7 }
0x1a14   :  { %v2389_v29 = vadd.f32 %v3781_v41, %v2387_v5 }
0x1a16   :  { %3003 = vtanh.f32 %v2389_v29  ;;  %v2765_v22 = vmul.f32 -1.442695, %v2389_v29 }
0x1a17   :  { %3005 = vpow2.f32 %v2768_v16 }
0x1a1c   :  { %v3004_v31 = vpop.eup %3003 }
0x1a1d   :  { %2412 = vrot.lane.b32.xlu0 %v3004_v31, %s3233_s3  ;;  %v3006_v52 = vpop.eup %3005 }
0x1a1e   :  { %v2461_v1 = vadd.f32 1.0, %v3006_v52 }
0x1a20   :  { %3007 = vrcp.f32 %v2461_v1  ;;  %v2488_v12 = vand.u32 2147483648, %v2461_v1  ;;  %vm2482_vm4 = vweird.f32 %v2461_v1  ;;  %v2486_v15 = vand.u32 2147483647, %v2461_v1 }
0x1a21   :  { %3009 = vpow2.f32 %v2767_v40 }
0x1a22   :  { %v2489_v58 = vor.u32 1.1754944e-38, %v2488_v12  ;;  %vm2487_vm6 = vcmp.eq.f32.partialorder %v2486_v15, 8.507059e+37 }
0x1a26   :  { %v3008_v39 = vpop.eup %3007 }
0x1a27   :  { %v2478_v33 = vmul.f32 %v3008_v39, %v2461_v1  ;;  %v3010_v8 = vpop.eup %3009  ;;  %vm2483_vm3 = vweird.f32 %v3008_v39 }
0x1a28   :  { %v2460_v10 = vadd.f32 1.0, %v3010_v8  ;;  %vm2484_vm5 = vmor %vm2482_vm4, %vm2483_vm3 }
0x1a29   :  { %v2479_v34 = vsub.f32 1.0, %v2478_v33 }
0x1a2a   :  { %3011 = vrcp.f32 %v2460_v10  ;;  %v2473_v36 = vand.u32 2147483648, %v2460_v10  ;;  %vm2467_vm7 = vweird.f32 %v2460_v10  ;;  %v2471_v38 = vand.u32 2147483647, %v2460_v10 }
0x1a2b   :  { %v2480_v9 = vmul.f32 %v3008_v39, %v2479_v34  ;;  %3013 = vpow2.f32 %v2765_v22 }
0x1a2c   :  { %v2474_v47 = vor.u32 1.1754944e-38, %v2473_v36  ;;  %vm2472_vm9 = vcmp.eq.f32.partialorder %v2471_v38, 8.507059e+37 }
0x1a2d   :  { %v2481_v11 = vadd.f32 %v3008_v39, %v2480_v9 }
0x1a2f   :  { %v2485_v37 = vsel %vm2484_vm5, %v3008_v39, %v2481_v11 }
0x1a30   :  { %v2490_v49 = vsel %vm2487_vm6, %v2489_v58, %v2485_v37  ;;  %v3012_v54 = vpop.eup %3011 }
0x1a31   :  { %v2463_v25 = vmul.f32 %v3012_v54, %v2460_v10  ;;  %v3014_v26 = vpop.eup %3013  ;;  %vm2468_vm2 = vweird.f32 %v3012_v54  ;;  %v2501_v59 = vmul.f32 %v2497_v13, %v2490_v49 }
0x1a32   :  { %v2393_v30 = vadd.f32 1.0, %v3014_v26  ;;  %vm2469_vm8 = vmor %vm2467_vm7, %vm2468_vm2 }
0x1a33   :  { %v2464_v56 = vsub.f32 1.0, %v2463_v25 }
0x1a34   :  { %3015 = vrcp.f32 %v2393_v30  ;;  %v2405_v20 = vand.u32 2147483648, %v2393_v30  ;;  %vm2399_vm11 = vweird.f32 %v2393_v30  ;;  %v2403_v53 = vand.u32 2147483647, %v2393_v30 }
0x1a35   :  { %v2465_v27 = vmul.f32 %v3012_v54, %v2464_v56 }
0x1a36   :  { %v2406_v4 = vor.u32 1.1754944e-38, %v2405_v20  ;;  %vm2404_vm13 = vcmp.eq.f32.partialorder %v2403_v53, 8.507059e+37 }
0x1a37   :  { %v2466_v32 = vadd.f32 %v3012_v54, %v2465_v27 }
0x1a39   :  { %v2470_v14 = vsel %vm2469_vm8, %v3012_v54, %v2466_v32 }
0x1a3a   :  { %v3016_v48 = vpop.eup %3015  ;;  %v2475_v44 = vsel %vm2472_vm9, %v2474_v47, %v2470_v14 }
0x1a3b   :  { %v2395_v17 = vmul.f32 %v3016_v48, %v2393_v30  ;;  %vm2400_vm10 = vweird.f32 %v3016_v48  ;;  %v2500_v0 = vmul.f32 %v2496_v62, %v2475_v44 }
0x1a3c   :  { %vm2401_vm12 = vmor %vm2399_vm11, %vm2400_vm10 }
0x1a3d   :  { %v2396_v6 = vsub.f32 1.0, %v2395_v17 }
0x1a3f   :  { %v2397_v50 = vmul.f32 %v3016_v48, %v2396_v6 }
0x1a41   :  { %v2398_v18 = vadd.f32 %v3016_v48, %v2397_v50 }
0x1a43   :  { %v2402_v19 = vsel %vm2401_vm12, %v3016_v48, %v2398_v18  ;;  %v2629_v48 = vld [vmem:[%s3897_s13 + $0x18] sm:$0xff]  ;;  %v2806_v18 = vld [vmem:[#allocation2] ss:$0 sm:$0xff] }
0x1a44   :  { %v2407_v57 = vsel %vm2404_vm13, %v2406_v4, %v2402_v19  ;;  %2651 = vmatpush.msrb.mxu3 %v2629_v48 }
0x1a45   :  { %v2410_v51 = vmul.f32 %v2407_v57, %v3828_v43 }
0x1a5f   :  { %v2507_v55 = vpop.permute.xlu2 %2506 }
0x1a60   :  { %v2511_v24 = vmul.f32 %v2507_v55, %v2490_v49 }
0x1a62   :  { %2516 = vrot.lane.b32.xlu2 %v2511_v24, %s3245_s9 }
0x1a76   :  { %v2505_v42 = vpop.permute.xlu1 %2504 }
0x1a77   :  { %v2510_v45 = vmul.f32 %v2505_v42, %v2475_v44  ;;  %v2628_v42 = vld [vmem:[%s3897_s13 + $0x10] sm:$0xff] }
0x1a78   :  { %2652 = vmatpush.msrb.mxu3 %v2628_v42 }
0x1a79   :  { %2514 = vrot.lane.b32.xlu1 %v2510_v45, %s3245_s9  ;;  %v2626_v45 = vld [vmem:[%s3897_s13] sm:$0xff] }
0x1a8f   :  { %v2413_v21 = vpop.permute.xlu0 %2412 }
0x1a90   :  { %v2415_v28 = vmul.f32 %v2413_v21, %v2407_v57 }
0x1a92   :  { %2417 = vrot.lane.b32.xlu0 %v2415_v28, %s3245_s9 }
0x1abc   :  { %v2517_v63 = vpop.permute.xlu2 %2516 }
0x1abd   :  { %v2521_v60 = vadd.f32 %v2517_v63, %v2501_v59 }
0x1abf   :  { %3017 = vtanh.f32 %v2521_v60 }
0x1ac5   :  { %v3018_v61 = vpop.eup %3017 }
0x1ac6   :  { %2528 = vrot.lane.b32.xlu2 %v3018_v61, %s3233_s3 }
0x1aeb   :  { %v2515_v2 = vpop.permute.xlu1 %2514 }
0x1aec   :  { %v2520_v23 = vadd.f32 %v2515_v2, %v2500_v0 }
0x1aee   :  { %3019 = vtanh.f32 %v2520_v23 }
0x1af4   :  { %v3020_v3 = vpop.eup %3019 }
0x1af5   :  { %2526 = vrot.lane.b32.xlu1 %v3020_v3, %s3233_s3 }
0x1b04   :  { %v2418_v7 = vpop.permute.xlu0 %2417 }
0x1b05   :  { %v2420_v46 = vadd.f32 %v2418_v7, %v2410_v51 }
0x1b07   :  { %3021 = vtanh.f32 %v2420_v46 }
0x1b0d   :  { %v3022_v5 = vpop.eup %3021 }
0x1b0e   :  { %2423 = vrot.lane.b32.xlu0 %v3022_v5, %s3233_s3 }
0x1b20   :  { %v2529_v29 = vpop.permute.xlu2 %2528 }
0x1b21   :  { %v2533_v31 = vmul.f32 %v2529_v29, %v2490_v49 }
0x1b23   :  { %v2562_v35 = vrot.slane %v2533_v31, 6 }
0x1b67   :  { %v2527_v16 = vpop.permute.xlu1 %2526 }
0x1b68   :  { %v2532_v52 = vmul.f32 %v2527_v16, %v2475_v44  ;;  %v2627_v44 = vld [vmem:[%s3897_s13 + $0x8] sm:$0xff] }
0x1b69   :  { %2653 = vmatpush.msrb.mxu3 %v2627_v44 }
0x1b6a   :  { %v2561_v1 = vrot.slane %v2532_v52, 7 }
0x1b6b   :  { %2654 = vmatpush.msrb.mxu3 %v2626_v45 }
0x1b6c   :  { %v2563_v39 = vsel %vm1171_vm14, %v2562_v35, %v2561_v1 }
0x1b6d   :  { %2564 = vrot.lane.b32.xlu1 %v2563_v39, %s3245_s9 }
0x1b80   :  { %v2424_v40 = vpop.permute.xlu0 %2423 }
0x1b81   :  { %v2426_v33 = vmul.f32 %v2424_v40, %v2407_v57 }
0x1b83   :  { %2535 = vrot.lane.b32.xlu2 %v2426_v33, %s3245_s9 }
0x1bdd   :  { %v2536_v43 = vpop.permute.xlu2 %2535 }
0x1bde   :  { %2769 = vmatmul.msk.f32.vlgmr.msra.gmra.mxu0 %vm207_vm1, %v2536_v43 }
0x1bdf   :  { %v2565_v34 = vpop.permute.xlu1 %2564 }
0x1be0   :  { %2770 = vmatmul.msk.f32.vlgmr.msrb.gmra.mxu2 %vm207_vm1, %v2565_v34 }
0x1c5b   :  { %v2556_v8 = vpop.f32.mrf.mxu0 }
0x1c63   :  { %v2585_v9 = vpop.f32.mrf.mxu2 }
0x1c64   :  { %v2586_v10 = vadd.f32 %v2585_v9, %v2556_v8 }
0x1c66   :  { %v2588_v11 = vadd.f32 %v3781_v41, %v2586_v10 }
0x1c68   :  { %3023 = vtanh.f32 %v2588_v11  ;;  %v2771_v15 = vmul.f32 -1.442695, %v2588_v11 }
0x1c6a   :  { %3025 = vpow2.f32 %v2771_v15 }
0x1c6e   :  { %v3024_v12 = vpop.eup %3023 }
0x1c6f   :  { %2611 = vrot.lane.b32.xlu0 %v3024_v12, %s3233_s3 }
0x1c70   :  { %v3026_v37 = vpop.eup %3025 }
0x1c71   :  { %v2592_v58 = vadd.f32 1.0, %v3026_v37 }
0x1c73   :  { %3027 = vrcp.f32 %v2592_v58  ;;  %v2604_v25 = vand.u32 2147483648, %v2592_v58  ;;  %vm2598_vm15 = vweird.f32 %v2592_v58  ;;  %v2602_v56 = vand.u32 2147483647, %v2592_v58 }
0x1c75   :  { %v2605_v26 = vor.u32 1.1754944e-38, %v2604_v25  ;;  %vm2603_vm3 = vcmp.eq.f32.partialorder %v2602_v56, 8.507059e+37 }
0x1c79   :  { %v3028_v22 = vpop.eup %3027 }
0x1c7a   :  { %v2594_v55 = vmul.f32 %v3028_v22, %v2592_v58  ;;  %vm2599_vm14 = vweird.f32 %v3028_v22 }
0x1c7b   :  { %vm2600_vm0 = vmor %vm2598_vm15, %vm2599_vm14 }
0x1c7c   :  { %v2595_v49 = vsub.f32 1.0, %v2594_v55 }
0x1c7e   :  { %v2596_v54 = vmul.f32 %v3028_v22, %v2595_v49 }
0x1c80   :  { %v2597_v24 = vadd.f32 %v3028_v22, %v2596_v54 }
0x1c82   :  { %v2601_v41 = vsel %vm2600_vm0, %v3028_v22, %v2597_v24 }
0x1c83   :  { %v2606_v30 = vsel %vm2603_vm3, %v2605_v26, %v2601_v41 }
0x1c84   :  { %v2609_v36 = vmul.f32 %v2606_v30, %v2420_v46 }
0x1ce1   :  { %v2612_v27 = vpop.permute.xlu0 %2611 }
0x1ce2   :  { %v2614_v32 = vmul.f32 %v2612_v27, %v2606_v30 }
0x1ce4   :  { %2616 = vrot.lane.b32.xlu1 %v2614_v32, %s3245_s9 }
0x1d56   :  { %v2617_v38 = vpop.permute.xlu1 %2616 }
0x1d57   :  { %v2619_v14 = vadd.f32 %v2617_v38, %v2609_v36 }
0x1d59   :  { %3029 = vtanh.f32 %v2619_v14 }
0x1d5f   :  { %v3030_v47 = vpop.eup %3029 }
0x1d60   :  { %2622 = vrot.lane.b32.xlu2 %v3030_v47, %s3233_s3 }
0x1dba   :  { %v2623_v17 = vpop.permute.xlu2 %2622 }
0x1dbb   :  { %v2625_v6 = vmul.f32 %v2623_v17, %v2606_v30 }
0x1dbd   :  { %2635 = vrot.lane.b32.xlu0 %v2625_v6, %s3245_s9 }
0x1e2f   :  { %v2636_v50 = vpop.permute.xlu0 %2635 }
0x1e30   :  { %2772 = vmatmul.msk.f32.vlgmr.msrb.gmra.mxu3 %vm207_vm1, %v2636_v50  ;;  %vm2678_vm1 = vcmask 1024  }
0x1eb3   :  { %v2656_v20 = vpop.f32.mrf.mxu3 }
0x1eb4   :  { %v2657_v53 = vadd.f32 %v2806_v18, %v2656_v20 }
0x1eb6   :  { %v2773_v19 = vmul.f32 -1.442695, %v2657_v53 }
0x1eb8   :  { %3031 = vpow2.f32 %v2773_v19 }
0x1ebe   :  { %v3032_v4 = vpop.eup %3031 }
0x1ebf   :  { %v2662_v21 = vadd.f32 1.0, %v3032_v4 }
0x1ec1   :  { %3033 = vrcp.f32 %v2662_v21  ;;  %v2674_v59 = vand.u32 2147483648, %v2662_v21  ;;  %v2672_v60 = vand.u32 2147483647, %v2662_v21  ;;  %vm2668_vm5 = vweird.f32 %v2662_v21 }
0x1ec3   :  { %v2675_v62 = vor.u32 1.1754944e-38, %v2674_v59  ;;  %vm2673_vm2 = vcmp.eq.f32.partialorder %v2672_v60, 8.507059e+37 }
0x1ec7   :  { %v3034_v57 = vpop.eup %3033 }
0x1ec8   :  { %v2664_v28 = vmul.f32 %v3034_v57, %v2662_v21  ;;  %vm2669_vm4 = vweird.f32 %v3034_v57 }
0x1ec9   :  { %vm2670_vm6 = vmor %vm2668_vm5, %vm2669_vm4 }
0x1eca   :  { %v2665_v13 = vsub.f32 1.0, %v2664_v28 }
0x1ecc   :  { %v2666_v63 = vmul.f32 %v3034_v57, %v2665_v13 }
0x1ece   :  { %v2667_v61 = vadd.f32 %v3034_v57, %v2666_v63 }
0x1ed0   :  { %v2671_v0 = vsel %vm2670_vm6, %v3034_v57, %v2667_v61 }
0x1ed1   :  { %v2676_v2 = vsel %vm2673_vm2, %v2675_v62, %v2671_v0 }
0x1ed2   :  { %2679 = vst.msk [vmem:[%s3899_s15] sm:$0x3] %vm2678_vm1, %v2676_v2 }
0x1ed3   :  { %2684 = vsyncpa [#allocation4], 1 }
0x1ed4   :  { %2685 = vsyncpa [#allocation6], 1 }
0x1ed5   :  { %2686 = vsyncpa [#allocation9], 1 }
0x1ed6   :  { %2687 = vsyncpa [#allocation12], 1 }

</bundles_post_ra>
